<compile_context>
chip_gen: v7x
topology: tpu7x:2x2x1
jax: 0.10.0
libtpu: 0.0.40
codegen_flags: <defaults>
</compile_context>

<pallas_src>
import functools

import jax
import jax.numpy as jnp
from jax.experimental import pallas as pl
from jax.experimental.pallas import tpu as pltpu

_BN_EPS = 1e-5
_TM_MAX = 512
_TN_MAX = 512
_TK_MAX = 1024


def _round_up(x, m):
    return ((x + m - 1) // m) * m


# ----------------------------- Pallas kernel --------------------------------
def _mm_affine_kernel(*refs, relu, has_add):
    if has_add:
        a_ref, b_ref, s_ref, t_ref, add_ref, o_ref, acc_ref = refs
    else:
        a_ref, b_ref, s_ref, t_ref, o_ref, acc_ref = refs
        add_ref = None

    k = pl.program_id(2)

    @pl.when(k == 0)
    def _():
        acc_ref[...] = jnp.zeros_like(acc_ref)

    acc_ref[...] += jnp.dot(a_ref[...], b_ref[...],
                            preferred_element_type=jnp.float32)

    @pl.when(k == pl.num_programs(2) - 1)
    def _():
        # epilogue in f32 vregs (no bf16 VPU on v5e)
        y = acc_ref[...] * s_ref[...] + t_ref[...]
        if has_add:
            y = y + add_ref[...].astype(jnp.float32)
        if relu:
            y = jnp.maximum(y, 0.0)
        o_ref[...] = y.astype(o_ref.dtype)


def matmul_prepared(a, prep, relu=False, add=None, out_dtype=jnp.bfloat16):
    """(M,K) @ prepared (Kp,Np) weight, fused scale/shift[/add][/ReLU] epilogue.

    The weight/scale/shift are already padded, BN-folded and bf16-cast at init
    time (prepare_params); only the activation K-pad happens per call (tiny,
    fuses with the im2col producer).
    """
    M, K = a.shape
    assert K == prep["k"], (K, prep["k"])
    w = prep["w"]
    Kp, Np = w.shape
    N = prep["n"]

    a = a.astype(jnp.bfloat16)               # no-op for the conv path (already bf16)
    if Kp != K:
        a = jnp.pad(a, ((0, 0), (0, Kp - K)))

    tk = Kp if Kp <= _TK_MAX else _TK_MAX    # prep aligns Kp to _TK_MAX when K is large
    tn = min(_TN_MAX, Np)
    nn = pl.cdiv(Np, tn)
    nk = Kp // tk

    # 16-aligned tm (bf16 packing); ensure >= 2 parallel blocks when possible
    # so the v7x megacore gets both TensorCores and the pipeline can overlap.
    tm = min(_TM_MAX, _round_up(M, 16))
    if nn * pl.cdiv(M, tm) < 2:
        tm = max(16, min(tm, _round_up(-(-M // 2), 16)))
    nm = pl.cdiv(M, tm)

    has_add = add is not None
    in_specs = [
        pl.BlockSpec((tm, tk), lambda i, j, k: (i, k)),
        pl.BlockSpec((tk, tn), lambda i, j, k: (k, j)),
        pl.BlockSpec((1, tn), lambda i, j, k: (0, j)),
        pl.BlockSpec((1, tn), lambda i, j, k: (0, j)),
    ]
    operands = [a, w, prep["scale"], prep["shift"]]
    if has_add:
        add_p = add.astype(jnp.float32)      # keep the fused add in f32 (accuracy)
        if Np != N:
            add_p = jnp.pad(add_p, ((0, 0), (0, Np - N)))
        in_specs.append(pl.BlockSpec((tm, tn), lambda i, j, k: (i, j)))
        operands.append(add_p)

    # Real double-buffered footprint of this kernel (not the full physical VMEM).
    out_bytes = jnp.dtype(out_dtype).itemsize
    need = (2 * (tm * tk * 2 + tk * tn * 2 + tm * tn * out_bytes
                 + (tm * tn * 4 if has_add else 0))
            + tm * tn * 4 + 4 * tn * 4)
    vmem_limit = int(min(max(2 * need, 8 << 20), 32 << 20))

    out = pl.pallas_call(
        functools.partial(_mm_affine_kernel, relu=relu, has_add=has_add),
        out_shape=jax.ShapeDtypeStruct((M, Np), out_dtype),
        grid=(nm, nn, nk),
        in_specs=in_specs,
        out_specs=pl.BlockSpec((tm, tn), lambda i, j, k: (i, j)),
        scratch_shapes=[pltpu.VMEM((tm, tn), jnp.float32)],
        compiler_params=pltpu.CompilerParams(
            dimension_semantics=("parallel", "parallel", "arbitrary"),
            vmem_limit_bytes=vmem_limit),
    )(*operands)

    return out if Np == N else out[:, :N]


# ----------------------------- one-time weight prep --------------------------
def _affine_from_bn(bn, bias, oc):
    # TODO(synk): BatchNorm folded in eval mode (running stats), not batch stats.
    if bn is None:
        return jnp.ones((oc,), jnp.float32), bias.astype(jnp.float32)
    gamma, beta, mean, var = bn
    eff = gamma / jnp.sqrt(var + _BN_EPS)
    return eff, beta + eff * (bias - mean)


def _prep_mm(wm, scale, shift):
    K, N = wm.shape
    Kp = _round_up(K, 128) if K <= _TK_MAX else _round_up(K, _TK_MAX)
    Np = _round_up(N, 128)
    w = jnp.pad(wm, ((0, Kp - K), (0, Np - N))).astype(jnp.bfloat16)
    s = jnp.pad(scale.astype(jnp.float32), (0, Np - N)).reshape(1, Np)
    t = jnp.pad(shift.astype(jnp.float32), (0, Np - N)).reshape(1, Np)
    return dict(w=w, scale=s, shift=t, k=K, n=N)


def prep_conv(w_hwio, b, bn):
    kh, kw, ic, oc = w_hwio.shape
    scale, shift = _affine_from_bn(bn, b, oc)
    p = _prep_mm(w_hwio.reshape(kh * kw * ic, oc), scale, shift)
    p.update(kh=kh, kw=kw, oc=oc)
    return p


def _subpixel_weight(w_hwio):
    """(3,3,IC,OC) equivalent-conv weight -> (4*IC, 4*OC) sub-pixel matrix.

    Rows = 2x2 input taps (0,0),(0,1),(1,0),(1,1); cols = output phases (a,b)
    row-major, for ConvTranspose2d(k=3, s=2, p=1, output_padding=1).
    """
    kh, kw, ic, oc = w_hwio.shape
    z = jnp.zeros((ic, oc), w_hwio.dtype)
    w = w_hwio
    row00 = jnp.concatenate([w[1, 1], w[1, 0], w[0, 1], w[0, 0]], axis=1)
    row01 = jnp.concatenate([z,       w[1, 2], z,       w[0, 2]], axis=1)
    row10 = jnp.concatenate([z,       z,       w[2, 1], w[2, 0]], axis=1)
    row11 = jnp.concatenate([z,       z,       z,       w[2, 2]], axis=1)
    return jnp.concatenate([row00, row01, row10, row11], axis=0)


def prep_convT(w_t, b, bn):
    # TODO(synk): sub-pixel decomposition not yet numerically validated against
    # torch.nn.ConvTranspose2d; phase table could be off by one phase.
    ic, oc = w_t.shape[0], w_t.shape[1]
    w_hwio = jnp.flip(w_t, (2, 3)).transpose(2, 3, 0, 1)      # equivalent conv, HWIO
    wsub = _subpixel_weight(w_hwio)                           # (4*ic, 4*oc)
    scale, shift = _affine_from_bn(bn, b, oc)
    p = _prep_mm(wsub, jnp.tile(scale, 4), jnp.tile(shift, 4))
    p.update(oc=oc)
    return p


def prep_mm_layer(wm, b, bn):
    K, N = wm.shape
    scale, shift = _affine_from_bn(bn, b, N)
    return _prep_mm(wm, scale, shift)


def prep_block(blk):
    return dict(c1=prep_conv(blk["w1"], blk["b1"], blk["bn1"]),
                g=prep_mm_layer(blk["wg"], blk["bg"], blk["bng"]),
                c2=prep_conv(blk["w2"], blk["b2"], blk["bn2"]))


def prepare_params(raw):
    enc, dec = raw["enc"], raw["dec"]
    return dict(
        enc=dict(init=prep_conv(enc["init_w"], enc["init_b"], enc["init_bn"]),
                 downs=[prep_conv(w, b, bn) for (w, b, bn) in enc["downs"]],
                 blocks=[prep_block(b) for b in enc["blocks"]]),
        dec=dict(blocks=[prep_block(b) for b in dec["blocks"]],
                 ups=[prep_convT(w, b, bn) for (w, b, bn) in dec["ups"]],
                 out=prep_conv(dec["out_w"], dec["out_b"], None)))


# ----------------------------- conv helpers (NHWC, bf16) ---------------------
def _im2col_nhwc(x, kh, kw, stride):
    # TODO(synk): im2col / spatial padding stay as XLA glue; halo-BlockSpec or
    # tap-axis accumulation (no patch materialization) not implemented.
    n, h, w, c = x.shape
    oh = (h - kh) // stride + 1
    ow = (w - kw) // stride + 1
    cols = []
    for i in range(kh):
        for j in range(kw):
            cols.append(x[:, i:i + stride * oh:stride, j:j + stride * ow:stride, :])
    p = jnp.stack(cols, axis=3)                         # (n, oh, ow, kh*kw, c)
    return p.reshape(n * oh * ow, kh * kw * c), oh, ow


def conv2d(x, prep, stride=1, pad=0, pad_mode="constant", relu=False, add=None,
           out_dtype=jnp.bfloat16):
    """NHWC conv: bf16 im2col (XLA) + Pallas matmul with fused BN/bias/add/ReLU."""
    x = x.astype(jnp.bfloat16)              # patches materialize in bf16
    if pad > 0:
        x = jnp.pad(x, ((0, 0), (pad, pad), (pad, pad), (0, 0)), mode=pad_mode)
    n = x.shape[0]
    patches, oh, ow = _im2col_nhwc(x, prep["kh"], prep["kw"], stride)
    add_flat = None if add is None else add.reshape(n * oh * ow, prep["oc"])
    y = matmul_prepared(patches, prep, relu=relu, add=add_flat, out_dtype=out_dtype)
    return y.reshape(n, oh, ow, prep["oc"])


def conv_transpose2d(x, prep, relu=False):
    """ConvTranspose2d(k=3, s=2, p=1, output_padding=1) as sub-pixel matmul."""
    n, h, w, _ = x.shape
    oc = prep["oc"]
    xp = jnp.pad(x.astype(jnp.bfloat16), ((0, 0), (0, 1), (0, 1), (0, 0)))
    patches, _, _ = _im2col_nhwc(xp, 2, 2, 1)           # K = 4*ic
    y = matmul_prepared(patches, prep, relu=relu)
    # depth-to-space: (n,h,w,2,2,oc) -> (n,2h,2w,oc)
    y = y.reshape(n, h, w, 2, 2, oc).transpose(0, 1, 3, 2, 4, 5)
    return y.reshape(n, 2 * h, 2 * w, oc)


# ----------------------------- FFC pieces ------------------------------------
def fourier_unit(x, g):
    # TODO(synk): rfft2/irfft2 have no Pallas TPU primitive; they stay in XLA
    # while the per-frequency 1x1 conv (+BN+ReLU) runs in the Pallas kernel.
    n, h, w, c = x.shape
    xf = jnp.fft.rfft2(x.astype(jnp.float32), axes=(1, 2), norm="ortho")
    wf = xf.shape[2]
    stacked = jnp.concatenate([xf.real, xf.imag], axis=-1).reshape(n * h * wf, 2 * c)
    y = matmul_prepared(stacked, g, relu=True, out_dtype=jnp.float32)
    y = y.reshape(n, h, wf, 2 * c)
    yc = jax.lax.complex(y[..., :c], y[..., c:])
    return jnp.fft.irfft2(yc, s=(h, w), axes=(1, 2), norm="ortho")


def ffc_resnet_block(x, p):
    # TODO(synk): whole-block fusion (pad+conv1+spectral+conv2+residual in one
    # pallas_call with a VMEM-resident trunk) not done; the spectral branch is
    # fused into conv1's epilogue via the f32 `add` operand.
    # TODO(synk): exact FFC ratio_gin/ratio_gout channel split not implemented;
    # full-channel local(3x3)+spectral branches are used.
    glb = fourier_unit(x, p["g"])
    y = conv2d(x, p["c1"], stride=1, pad=1, pad_mode="reflect", relu=True, add=glb)
    y = conv2d(y, p["c2"], stride=1, pad=1, pad_mode="reflect", relu=False)
    return x + y


# ----------------------------- parameters (raw PyTorch-like layout) ----------
class KeyGen:
    def __init__(self, seed):
        self.key = jax.random.PRNGKey(seed)

    def __call__(self):
        self.key, sub = jax.random.split(self.key)
        return sub


def _conv_init(kg, kh, kw, ic, oc):
    fan_in = ic * kh * kw
    w = jax.random.normal(kg(), (kh, kw, ic, oc), jnp.float32) / jnp.sqrt(fan_in)
    b = 0.01 * jax.random.normal(kg(), (oc,), jnp.float32)
    return w, b


def _convT_init(kg, ic, oc, k=3):
    fan_in = ic * k * k
    w = jax.random.normal(kg(), (ic, oc, k, k), jnp.float32) / jnp.sqrt(fan_in)
    b = 0.01 * jax.random.normal(kg(), (oc,), jnp.float32)
    return w, b


def _mat_init(kg, k_in, n_out):
    w = jax.random.normal(kg(), (k_in, n_out), jnp.float32) / jnp.sqrt(k_in)
    b = 0.01 * jax.random.normal(kg(), (n_out,), jnp.float32)
    return w, b


def _bn_init(kg, c):
    gamma = 1.0 + 0.1 * jax.random.normal(kg(), (c,), jnp.float32)
    beta = 0.1 * jax.random.normal(kg(), (c,), jnp.float32)
    return gamma, beta, jnp.zeros((c,), jnp.float32), jnp.ones((c,), jnp.float32)


def _block_init(kg, c):
    w1, b1 = _conv_init(kg, 3, 3, c, c)
    wg, bg = _mat_init(kg, 2 * c, 2 * c)
    w2, b2 = _conv_init(kg, 3, 3, c, c)
    return dict(w1=w1, b1=b1, bn1=_bn_init(kg, c),
                wg=wg, bg=bg, bng=_bn_init(kg, 2 * c),
                w2=w2, b2=b2, bn2=_bn_init(kg, c))


def init_params(seed, input_nc, output_nc, ngf=8, n_downsampling=2,
                e_blocks=4, d_blocks=1, max_features=1024):
    kg = KeyGen(seed)
    feat = lambda i: min(ngf * (2 ** i), max_features)
    enc = {}
    enc["init_w"], enc["init_b"] = _conv_init(kg, 7, 7, 2 * input_nc, ngf)
    enc["init_bn"] = _bn_init(kg, ngf)
    enc["downs"] = []
    for i in range(n_downsampling):
        w, b = _conv_init(kg, 3, 3, feat(i), feat(i + 1))
        enc["downs"].append((w, b, _bn_init(kg, feat(i + 1))))
    c = feat(n_downsampling)
    enc["blocks"] = [_block_init(kg, c) for _ in range(e_blocks)]
    dec = {}
    dec["blocks"] = [_block_init(kg, c) for _ in range(d_blocks)]
    dec["ups"] = []
    for i in range(n_downsampling):
        ic, oc = feat(n_downsampling - i), feat(n_downsampling - i - 1)
        w, b = _convT_init(kg, ic, oc)              # PyTorch ConvTranspose2d layout
        dec["ups"].append((w, b, _bn_init(kg, oc)))
    dec["out_w"], dec["out_b"] = _conv_init(kg, 7, 7, ngf, output_nc)
    return dict(enc=enc, dec=dec)


# ----------------------------- model forward (NHWC internally) ---------------
def encoder_forward(p, x):
    y = conv2d(x, p["init"], stride=1, pad=3, pad_mode="reflect", relu=True)
    for cp in p["downs"]:
        y = conv2d(y, cp, stride=2, pad=1, pad_mode="constant", relu=True)
    for blk in p["blocks"]:
        y = ffc_resnet_block(y, blk)
    return y


def decoder_forward(p, x):
    y = x
    for blk in p["blocks"]:
        y = ffc_resnet_block(y, blk)
    for up in p["ups"]:
        y = conv_transpose2d(y, up, relu=True)
    # add_out_act=False -> no output activation
    return conv2d(y, p["out"], stride=1, pad=3, pad_mode="reflect", relu=False,
                  out_dtype=jnp.float32)


def fourier_sino_aenet(prepared, ma_sinogram, metal_trace, global_skip=False):
    h, w = ma_sinogram.shape[-2], ma_sinogram.shape[-1]
    if h != w:
        sino_in = jnp.concatenate(
            [ma_sinogram[:, :, :-1, :], metal_trace[:, :, :-1, :]], axis=1)
        sino_cut = ma_sinogram[:, :, -1, :][:, :, None, :]
    else:
        sino_in = jnp.concatenate([ma_sinogram, metal_trace], axis=1)
        sino_cut = None
    x = sino_in.transpose(0, 2, 3, 1)                 # NCHW -> NHWC once
    latent_x = encoder_forward(prepared["enc"], x)
    y = decoder_forward(prepared["dec"], latent_x)
    sino_out = y.transpose(0, 3, 1, 2).astype(ma_sinogram.dtype)   # NHWC -> NCHW once
    if h != w:
        sino_out = jnp.concatenate([sino_out, sino_cut], axis=2)
    if global_skip:
        sino_out = sino_out + ma_sinogram
    return sino_out


# ----------------------------- demo ------------------------------------------
if __name__ == "__main__":
    key = jax.random.PRNGKey(0)
    k1, k2 = jax.random.split(key)
    B, C, H, W = 2, 1, 17, 16        # h != w exercises the sino_cut branch
    ma = jax.random.normal(k1, (B, C, H, W), jnp.float32)
    mt = (jax.random.uniform(k2, (B, C, H, W)) > 0.5).astype(jnp.float32)

    raw = init_params(0, input_nc=C, output_nc=C, ngf=8, n_downsampling=2,
                      e_blocks=4, d_blocks=1)
    # One-time weight prep (BN fold, K/N pad, bf16 cast, sub-pixel matrices)
    # hoisted out of the per-step forward; captured by closure below.
    prepared = prepare_params(raw)

    fwd = jax.jit(lambda a, b: fourier_sino_aenet(prepared, a, b, global_skip=False))
    out = jax.block_until_ready(fwd(ma, mt))

    assert out.shape == (B, C, H, W), out.shape
    assert bool(jnp.all(jnp.isfinite(out)))
    print("KERNEL_OK")
</pallas_src>

<mosaic_0001>
module attributes {stable_mosaic.version = 11 : i64} {
  func.func @_mm_affine_kernel(%arg0: i32, %arg1: i32, %arg2: i32, %arg3: memref<256x128xbf16, #tpu.memory_space<vmem>>, %arg4: memref<128x128xbf16, #tpu.memory_space<vmem>>, %arg5: memref<1x128xf32, #tpu.memory_space<vmem>>, %arg6: memref<1x128xf32, #tpu.memory_space<vmem>>, %arg7: memref<256x128xbf16, #tpu.memory_space<vmem>>, %arg8: memref<256x128xf32, #tpu.memory_space<vmem>>) attributes {dimension_semantics = [#tpu.dimension_semantics<parallel>, #tpu.dimension_semantics<parallel>, #tpu.dimension_semantics<arbitrary>], iteration_bounds = array<i64: 2, 1, 1>, scalar_prefetch = 0 : i64, scratch_operands = 1 : i64, tpu.core_type = #tpu.core_type<tc>, window_params = [{transform_indices = @transform_0, window_bounds = array<i64: 256, 128>}, {transform_indices = @transform_1, window_bounds = array<i64: 128, 128>}, {transform_indices = @transform_2, window_bounds = array<i64: 1, 128>}, {transform_indices = @transform_3, window_bounds = array<i64: 1, 128>}, {transform_indices = @transform_4, window_bounds = array<i64: 256, 128>}]} {
    %c0_i32 = arith.constant 0 : i32
    %0 = arith.cmpi eq, %arg2, %c0_i32 : i32
    %1 = arith.extui %0 : i1 to i32
    %c0_i32_0 = arith.constant 0 : i32
    %2 = arith.cmpi ne, %1, %c0_i32_0 : i32
    scf.if %2 {
      %cst_10 = arith.constant 0.000000e+00 : f32
      %12 = vector.broadcast %cst_10 : f32 to vector<256x128xf32>
      %c0_11 = arith.constant 0 : index
      %c0_12 = arith.constant 0 : index
      %13 = vector.load %arg8[%c0_11, %c0_12] : memref<256x128xf32, #tpu.memory_space<vmem>>, vector<256x128xf32>
      tpu.vector_store %arg8[%c0_11, %c0_12], %12 {strides = array<i32>} : memref<256x128xf32, #tpu.memory_space<vmem>>, vector<256x128xf32>,
    } else {
    }
    %c0 = arith.constant 0 : index
    %c0_1 = arith.constant 0 : index
    %3 = vector.load %arg8[%c0, %c0_1] : memref<256x128xf32, #tpu.memory_space<vmem>>, vector<256x128xf32>
    %c0_2 = arith.constant 0 : index
    %c0_3 = arith.constant 0 : index
    %4 = vector.load %arg3[%c0_2, %c0_3] : memref<256x128xbf16, #tpu.memory_space<vmem>>, vector<256x128xbf16>
    %c0_4 = arith.constant 0 : index
    %c0_5 = arith.constant 0 : index
    %5 = vector.load %arg4[%c0_4, %c0_5] : memref<128x128xbf16, #tpu.memory_space<vmem>>, vector<128x128xbf16>
    %cst = arith.constant dense<0.000000e+00> : vector<256x128xf32>
    %6 = tpu.matmul %4, %5, %cst {dimension_numbers = #tpu.dot_dimension_numbers<[1], [0], [0], [1], [0, 0, 1, 1], [], []>} : vector<256x128xbf16>, vector<128x128xbf16>, vector<256x128xf32> -> vector<256x128xf32>
    %7 = arith.addf %3, %6 : vector<256x128xf32>
    %c0_6 = arith.constant 0 : index
    %c0_7 = arith.constant 0 : index
    %8 = vector.load %arg8[%c0_6, %c0_7] : memref<256x128xf32, #tpu.memory_space<vmem>>, vector<256x128xf32>
    tpu.vector_store %arg8[%c0_6, %c0_7], %7 {strides = array<i32>} : memref<256x128xf32, #tpu.memory_space<vmem>>, vector<256x128xf32>,
    %c0_i32_8 = arith.constant 0 : i32
    %9 = arith.cmpi eq, %arg2, %c0_i32_8 : i32
    %10 = arith.extui %9 : i1 to i32
    %c0_i32_9 = arith.constant 0 : i32
    %11 = arith.cmpi ne, %10, %c0_i32_9 : i32
    scf.if %11 {
      %c0_10 = arith.constant 0 : index
      %c0_11 = arith.constant 0 : index
      %12 = vector.load %arg8[%c0_10, %c0_11] : memref<256x128xf32, #tpu.memory_space<vmem>>, vector<256x128xf32>
      %c0_12 = arith.constant 0 : index
      %c0_13 = arith.constant 0 : index
      %13 = vector.load %arg5[%c0_12, %c0_13] : memref<1x128xf32, #tpu.memory_space<vmem>>, vector<1x128xf32>
      %14 = vector.broadcast %13 : vector<1x128xf32> to vector<256x128xf32>
      %15 = arith.mulf %12, %14 : vector<256x128xf32>
      %c0_14 = arith.constant 0 : index
      %c0_15 = arith.constant 0 : index
      %16 = vector.load %arg6[%c0_14, %c0_15] : memref<1x128xf32, #tpu.memory_space<vmem>>, vector<1x128xf32>
      %17 = vector.broadcast %16 : vector<1x128xf32> to vector<256x128xf32>
      %18 = arith.addf %15, %17 : vector<256x128xf32>
      %cst_16 = arith.constant 0.000000e+00 : f32
      %19 = vector.broadcast %cst_16 : f32 to vector<256x128xf32>
      %20 = arith.maximumf %18, %19 : vector<256x128xf32>
      %21 = arith.truncf %20 : vector<256x128xf32> to vector<256x128xbf16>
      %c0_17 = arith.constant 0 : index
      %c0_18 = arith.constant 0 : index
      %22 = vector.load %arg7[%c0_17, %c0_18] : memref<256x128xbf16, #tpu.memory_space<vmem>>, vector<256x128xbf16>
      tpu.vector_store %arg7[%c0_17, %c0_18], %21 {strides = array<i32>} : memref<256x128xbf16, #tpu.memory_space<vmem>>, vector<256x128xbf16>,
    } else {
    }
    return
  }
  func.func @transform_0(%arg0: i32, %arg1: i32, %arg2: i32) -> (i32, i32) {
    %c0_i32 = arith.constant 0 : i32
    return %arg0, %arg2 : i32, i32
  }
  func.func @transform_1(%arg0: i32, %arg1: i32, %arg2: i32) -> (i32, i32) {
    %c0_i32 = arith.constant 0 : i32
    return %arg2, %arg1 : i32, i32
  }
  func.func @transform_2(%arg0: i32, %arg1: i32, %arg2: i32) -> (i32, i32) {
    %c0_i32 = arith.constant 0 : i32
    %c0_i32_0 = arith.constant 0 : i32
    return %c0_i32, %arg1 : i32, i32
  }
  func.func @transform_3(%arg0: i32, %arg1: i32, %arg2: i32) -> (i32, i32) {
    %c0_i32 = arith.constant 0 : i32
    %c0_i32_0 = arith.constant 0 : i32
    return %c0_i32, %arg1 : i32, i32
  }
  func.func @transform_4(%arg0: i32, %arg1: i32, %arg2: i32) -> (i32, i32) {
    %c0_i32 = arith.constant 0 : i32
    return %arg0, %arg1 : i32, i32
  }
}

module attributes {stable_mosaic.version = 11 : i64} {
  func.func @_mm_affine_kernel(%arg0: i32, %arg1: i32, %arg2: i32, %arg3: memref<64x128xbf16, #tpu.memory_space<vmem>>, %arg4: memref<128x128xbf16, #tpu.memory_space<vmem>>, %arg5: memref<1x128xf32, #tpu.memory_space<vmem>>, %arg6: memref<1x128xf32, #tpu.memory_space<vmem>>, %arg7: memref<64x128xbf16, #tpu.memory_space<vmem>>, %arg8: memref<64x128xf32, #tpu.memory_space<vmem>>) attributes {dimension_semantics = [#tpu.dimension_semantics<parallel>, #tpu.dimension_semantics<parallel>, #tpu.dimension_semantics<arbitrary>], iteration_bounds = array<i64: 2, 1, 1>, scalar_prefetch = 0 : i64, scratch_operands = 1 : i64, tpu.core_type = #tpu.core_type<tc>, window_params = [{transform_indices = @transform_0, window_bounds = array<i64: 64, 128>}, {transform_indices = @transform_1, window_bounds = array<i64: 128, 128>}, {transform_indices = @transform_2, window_bounds = array<i64: 1, 128>}, {transform_indices = @transform_3, window_bounds = array<i64: 1, 128>}, {transform_indices = @transform_4, window_bounds = array<i64: 64, 128>}]} {
    %c0_i32 = arith.constant 0 : i32
    %0 = arith.cmpi eq, %arg2, %c0_i32 : i32
    %1 = arith.extui %0 : i1 to i32
    %c0_i32_0 = arith.constant 0 : i32
    %2 = arith.cmpi ne, %1, %c0_i32_0 : i32
    scf.if %2 {
      %cst_10 = arith.constant 0.000000e+00 : f32
      %12 = vector.broadcast %cst_10 : f32 to vector<64x128xf32>
      %c0_11 = arith.constant 0 : index
      %c0_12 = arith.constant 0 : index
      %13 = vector.load %arg8[%c0_11, %c0_12] : memref<64x128xf32, #tpu.memory_space<vmem>>, vector<64x128xf32>
      tpu.vector_store %arg8[%c0_11, %c0_12], %12 {strides = array<i32>} : memref<64x128xf32, #tpu.memory_space<vmem>>, vector<64x128xf32>,
    } else {
    }
    %c0 = arith.constant 0 : index
    %c0_1 = arith.constant 0 : index
    %3 = vector.load %arg8[%c0, %c0_1] : memref<64x128xf32, #tpu.memory_space<vmem>>, vector<64x128xf32>
    %c0_2 = arith.constant 0 : index
    %c0_3 = arith.constant 0 : index
    %4 = vector.load %arg3[%c0_2, %c0_3] : memref<64x128xbf16, #tpu.memory_space<vmem>>, vector<64x128xbf16>
    %c0_4 = arith.constant 0 : index
    %c0_5 = arith.constant 0 : index
    %5 = vector.load %arg4[%c0_4, %c0_5] : memref<128x128xbf16, #tpu.memory_space<vmem>>, vector<128x128xbf16>
    %cst = arith.constant dense<0.000000e+00> : vector<64x128xf32>
    %6 = tpu.matmul %4, %5, %cst {dimension_numbers = #tpu.dot_dimension_numbers<[1], [0], [0], [1], [0, 0, 1, 1], [], []>} : vector<64x128xbf16>, vector<128x128xbf16>, vector<64x128xf32> -> vector<64x128xf32>
    %7 = arith.addf %3, %6 : vector<64x128xf32>
    %c0_6 = arith.constant 0 : index
    %c0_7 = arith.constant 0 : index
    %8 = vector.load %arg8[%c0_6, %c0_7] : memref<64x128xf32, #tpu.memory_space<vmem>>, vector<64x128xf32>
    tpu.vector_store %arg8[%c0_6, %c0_7], %7 {strides = array<i32>} : memref<64x128xf32, #tpu.memory_space<vmem>>, vector<64x128xf32>,
    %c0_i32_8 = arith.constant 0 : i32
    %9 = arith.cmpi eq, %arg2, %c0_i32_8 : i32
    %10 = arith.extui %9 : i1 to i32
    %c0_i32_9 = arith.constant 0 : i32
    %11 = arith.cmpi ne, %10, %c0_i32_9 : i32
    scf.if %11 {
      %c0_10 = arith.constant 0 : index
      %c0_11 = arith.constant 0 : index
      %12 = vector.load %arg8[%c0_10, %c0_11] : memref<64x128xf32, #tpu.memory_space<vmem>>, vector<64x128xf32>
      %c0_12 = arith.constant 0 : index
      %c0_13 = arith.constant 0 : index
      %13 = vector.load %arg5[%c0_12, %c0_13] : memref<1x128xf32, #tpu.memory_space<vmem>>, vector<1x128xf32>
      %14 = vector.broadcast %13 : vector<1x128xf32> to vector<64x128xf32>
      %15 = arith.mulf %12, %14 : vector<64x128xf32>
      %c0_14 = arith.constant 0 : index
      %c0_15 = arith.constant 0 : index
      %16 = vector.load %arg6[%c0_14, %c0_15] : memref<1x128xf32, #tpu.memory_space<vmem>>, vector<1x128xf32>
      %17 = vector.broadcast %16 : vector<1x128xf32> to vector<64x128xf32>
      %18 = arith.addf %15, %17 : vector<64x128xf32>
      %cst_16 = arith.constant 0.000000e+00 : f32
      %19 = vector.broadcast %cst_16 : f32 to vector<64x128xf32>
      %20 = arith.maximumf %18, %19 : vector<64x128xf32>
      %21 = arith.truncf %20 : vector<64x128xf32> to vector<64x128xbf16>
      %c0_17 = arith.constant 0 : index
      %c0_18 = arith.constant 0 : index
      %22 = vector.load %arg7[%c0_17, %c0_18] : memref<64x128xbf16, #tpu.memory_space<vmem>>, vector<64x128xbf16>
      tpu.vector_store %arg7[%c0_17, %c0_18], %21 {strides = array<i32>} : memref<64x128xbf16, #tpu.memory_space<vmem>>, vector<64x128xbf16>,
    } else {
    }
    return
  }
  func.func @transform_0(%arg0: i32, %arg1: i32, %arg2: i32) -> (i32, i32) {
    %c0_i32 = arith.constant 0 : i32
    return %arg0, %arg2 : i32, i32
  }
  func.func @transform_1(%arg0: i32, %arg1: i32, %arg2: i32) -> (i32, i32) {
    %c0_i32 = arith.constant 0 : i32
    return %arg2, %arg1 : i32, i32
  }
  func.func @transform_2(%arg0: i32, %arg1: i32, %arg2: i32) -> (i32, i32) {
    %c0_i32 = arith.constant 0 : i32
    %c0_i32_0 = arith.constant 0 : i32
    return %c0_i32, %arg1 : i32, i32
  }
  func.func @transform_3(%arg0: i32, %arg1: i32, %arg2: i32) -> (i32, i32) {
    %c0_i32 = arith.constant 0 : i32
    %c0_i32_0 = arith.constant 0 : i32
    return %c0_i32, %arg1 : i32, i32
  }
  func.func @transform_4(%arg0: i32, %arg1: i32, %arg2: i32) -> (i32, i32) {
    %c0_i32 = arith.constant 0 : i32
    return %arg0, %arg1 : i32, i32
  }
}

module attributes {stable_mosaic.version = 11 : i64} {
  func.func @_mm_affine_kernel(%arg0: i32, %arg1: i32, %arg2: i32, %arg3: memref<16x256xbf16, #tpu.memory_space<vmem>>, %arg4: memref<256x128xbf16, #tpu.memory_space<vmem>>, %arg5: memref<1x128xf32, #tpu.memory_space<vmem>>, %arg6: memref<1x128xf32, #tpu.memory_space<vmem>>, %arg7: memref<16x128xbf16, #tpu.memory_space<vmem>>, %arg8: memref<16x128xf32, #tpu.memory_space<vmem>>) attributes {dimension_semantics = [#tpu.dimension_semantics<parallel>, #tpu.dimension_semantics<parallel>, #tpu.dimension_semantics<arbitrary>], iteration_bounds = array<i64: 2, 1, 1>, scalar_prefetch = 0 : i64, scratch_operands = 1 : i64, tpu.core_type = #tpu.core_type<tc>, window_params = [{transform_indices = @transform_0, window_bounds = array<i64: 16, 256>}, {transform_indices = @transform_1, window_bounds = array<i64: 256, 128>}, {transform_indices = @transform_2, window_bounds = array<i64: 1, 128>}, {transform_indices = @transform_3, window_bounds = array<i64: 1, 128>}, {transform_indices = @transform_4, window_bounds = array<i64: 16, 128>}]} {
    %c0_i32 = arith.constant 0 : i32
    %0 = arith.cmpi eq, %arg2, %c0_i32 : i32
    %1 = arith.extui %0 : i1 to i32
    %c0_i32_0 = arith.constant 0 : i32
    %2 = arith.cmpi ne, %1, %c0_i32_0 : i32
    scf.if %2 {
      %cst_10 = arith.constant 0.000000e+00 : f32
      %12 = vector.broadcast %cst_10 : f32 to vector<16x128xf32>
      %c0_11 = arith.constant 0 : index
      %c0_12 = arith.constant 0 : index
      %13 = vector.load %arg8[%c0_11, %c0_12] : memref<16x128xf32, #tpu.memory_space<vmem>>, vector<16x128xf32>
      tpu.vector_store %arg8[%c0_11, %c0_12], %12 {strides = array<i32>} : memref<16x128xf32, #tpu.memory_space<vmem>>, vector<16x128xf32>,
    } else {
    }
    %c0 = arith.constant 0 : index
    %c0_1 = arith.constant 0 : index
    %3 = vector.load %arg8[%c0, %c0_1] : memref<16x128xf32, #tpu.memory_space<vmem>>, vector<16x128xf32>
    %c0_2 = arith.constant 0 : index
    %c0_3 = arith.constant 0 : index
    %4 = vector.load %arg3[%c0_2, %c0_3] : memref<16x256xbf16, #tpu.memory_space<vmem>>, vector<16x256xbf16>
    %c0_4 = arith.constant 0 : index
    %c0_5 = arith.constant 0 : index
    %5 = vector.load %arg4[%c0_4, %c0_5] : memref<256x128xbf16, #tpu.memory_space<vmem>>, vector<256x128xbf16>
    %cst = arith.constant dense<0.000000e+00> : vector<16x128xf32>
    %6 = tpu.matmul %4, %5, %cst {dimension_numbers = #tpu.dot_dimension_numbers<[1], [0], [0], [1], [0, 0, 1, 1], [], []>} : vector<16x256xbf16>, vector<256x128xbf16>, vector<16x128xf32> -> vector<16x128xf32>
    %7 = arith.addf %3, %6 : vector<16x128xf32>
    %c0_6 = arith.constant 0 : index
    %c0_7 = arith.constant 0 : index
    %8 = vector.load %arg8[%c0_6, %c0_7] : memref<16x128xf32, #tpu.memory_space<vmem>>, vector<16x128xf32>
    tpu.vector_store %arg8[%c0_6, %c0_7], %7 {strides = array<i32>} : memref<16x128xf32, #tpu.memory_space<vmem>>, vector<16x128xf32>,
    %c0_i32_8 = arith.constant 0 : i32
    %9 = arith.cmpi eq, %arg2, %c0_i32_8 : i32
    %10 = arith.extui %9 : i1 to i32
    %c0_i32_9 = arith.constant 0 : i32
    %11 = arith.cmpi ne, %10, %c0_i32_9 : i32
    scf.if %11 {
      %c0_10 = arith.constant 0 : index
      %c0_11 = arith.constant 0 : index
      %12 = vector.load %arg8[%c0_10, %c0_11] : memref<16x128xf32, #tpu.memory_space<vmem>>, vector<16x128xf32>
      %c0_12 = arith.constant 0 : index
      %c0_13 = arith.constant 0 : index
      %13 = vector.load %arg5[%c0_12, %c0_13] : memref<1x128xf32, #tpu.memory_space<vmem>>, vector<1x128xf32>
      %14 = vector.broadcast %13 : vector<1x128xf32> to vector<16x128xf32>
      %15 = arith.mulf %12, %14 : vector<16x128xf32>
      %c0_14 = arith.constant 0 : index
      %c0_15 = arith.constant 0 : index
      %16 = vector.load %arg6[%c0_14, %c0_15] : memref<1x128xf32, #tpu.memory_space<vmem>>, vector<1x128xf32>
      %17 = vector.broadcast %16 : vector<1x128xf32> to vector<16x128xf32>
      %18 = arith.addf %15, %17 : vector<16x128xf32>
      %cst_16 = arith.constant 0.000000e+00 : f32
      %19 = vector.broadcast %cst_16 : f32 to vector<16x128xf32>
      %20 = arith.maximumf %18, %19 : vector<16x128xf32>
      %21 = arith.truncf %20 : vector<16x128xf32> to vector<16x128xbf16>
      %c0_17 = arith.constant 0 : index
      %c0_18 = arith.constant 0 : index
      %22 = vector.load %arg7[%c0_17, %c0_18] : memref<16x128xbf16, #tpu.memory_space<vmem>>, vector<16x128xbf16>
      tpu.vector_store %arg7[%c0_17, %c0_18], %21 {strides = array<i32>} : memref<16x128xbf16, #tpu.memory_space<vmem>>, vector<16x128xbf16>,
    } else {
    }
    return
  }
  func.func @transform_0(%arg0: i32, %arg1: i32, %arg2: i32) -> (i32, i32) {
    %c0_i32 = arith.constant 0 : i32
    return %arg0, %arg2 : i32, i32
  }
  func.func @transform_1(%arg0: i32, %arg1: i32, %arg2: i32) -> (i32, i32) {
    %c0_i32 = arith.constant 0 : i32
    return %arg2, %arg1 : i32, i32
  }
  func.func @transform_2(%arg0: i32, %arg1: i32, %arg2: i32) -> (i32, i32) {
    %c0_i32 = arith.constant 0 : i32
    %c0_i32_0 = arith.constant 0 : i32
    return %c0_i32, %arg1 : i32, i32
  }
  func.func @transform_3(%arg0: i32, %arg1: i32, %arg2: i32) -> (i32, i32) {
    %c0_i32 = arith.constant 0 : i32
    %c0_i32_0 = arith.constant 0 : i32
    return %c0_i32, %arg1 : i32, i32
  }
  func.func @transform_4(%arg0: i32, %arg1: i32, %arg2: i32) -> (i32, i32) {
    %c0_i32 = arith.constant 0 : i32
    return %arg0, %arg1 : i32, i32
  }
}

module attributes {stable_mosaic.version = 11 : i64} {
  func.func @_mm_affine_kernel(%arg0: i32, %arg1: i32, %arg2: i32, %arg3: memref<16x128xbf16, #tpu.memory_space<vmem>>, %arg4: memref<128x128xbf16, #tpu.memory_space<vmem>>, %arg5: memref<1x128xf32, #tpu.memory_space<vmem>>, %arg6: memref<1x128xf32, #tpu.memory_space<vmem>>, %arg7: memref<16x128xf32, #tpu.memory_space<vmem>>, %arg8: memref<16x128xf32, #tpu.memory_space<vmem>>) attributes {dimension_semantics = [#tpu.dimension_semantics<parallel>, #tpu.dimension_semantics<parallel>, #tpu.dimension_semantics<arbitrary>], iteration_bounds = array<i64: 2, 1, 1>, scalar_prefetch = 0 : i64, scratch_operands = 1 : i64, tpu.core_type = #tpu.core_type<tc>, window_params = [{transform_indices = @transform_0, window_bounds = array<i64: 16, 128>}, {transform_indices = @transform_1, window_bounds = array<i64: 128, 128>}, {transform_indices = @transform_2, window_bounds = array<i64: 1, 128>}, {transform_indices = @transform_3, window_bounds = array<i64: 1, 128>}, {transform_indices = @transform_4, window_bounds = array<i64: 16, 128>}]} {
    %c0_i32 = arith.constant 0 : i32
    %0 = arith.cmpi eq, %arg2, %c0_i32 : i32
    %1 = arith.extui %0 : i1 to i32
    %c0_i32_0 = arith.constant 0 : i32
    %2 = arith.cmpi ne, %1, %c0_i32_0 : i32
    scf.if %2 {
      %cst_10 = arith.constant 0.000000e+00 : f32
      %12 = vector.broadcast %cst_10 : f32 to vector<16x128xf32>
      %c0_11 = arith.constant 0 : index
      %c0_12 = arith.constant 0 : index
      %13 = vector.load %arg8[%c0_11, %c0_12] : memref<16x128xf32, #tpu.memory_space<vmem>>, vector<16x128xf32>
      tpu.vector_store %arg8[%c0_11, %c0_12], %12 {strides = array<i32>} : memref<16x128xf32, #tpu.memory_space<vmem>>, vector<16x128xf32>,
    } else {
    }
    %c0 = arith.constant 0 : index
    %c0_1 = arith.constant 0 : index
    %3 = vector.load %arg8[%c0, %c0_1] : memref<16x128xf32, #tpu.memory_space<vmem>>, vector<16x128xf32>
    %c0_2 = arith.constant 0 : index
    %c0_3 = arith.constant 0 : index
    %4 = vector.load %arg3[%c0_2, %c0_3] : memref<16x128xbf16, #tpu.memory_space<vmem>>, vector<16x128xbf16>
    %c0_4 = arith.constant 0 : index
    %c0_5 = arith.constant 0 : index
    %5 = vector.load %arg4[%c0_4, %c0_5] : memref<128x128xbf16, #tpu.memory_space<vmem>>, vector<128x128xbf16>
    %cst = arith.constant dense<0.000000e+00> : vector<16x128xf32>
    %6 = tpu.matmul %4, %5, %cst {dimension_numbers = #tpu.dot_dimension_numbers<[1], [0], [0], [1], [0, 0, 1, 1], [], []>} : vector<16x128xbf16>, vector<128x128xbf16>, vector<16x128xf32> -> vector<16x128xf32>
    %7 = arith.addf %3, %6 : vector<16x128xf32>
    %c0_6 = arith.constant 0 : index
    %c0_7 = arith.constant 0 : index
    %8 = vector.load %arg8[%c0_6, %c0_7] : memref<16x128xf32, #tpu.memory_space<vmem>>, vector<16x128xf32>
    tpu.vector_store %arg8[%c0_6, %c0_7], %7 {strides = array<i32>} : memref<16x128xf32, #tpu.memory_space<vmem>>, vector<16x128xf32>,
    %c0_i32_8 = arith.constant 0 : i32
    %9 = arith.cmpi eq, %arg2, %c0_i32_8 : i32
    %10 = arith.extui %9 : i1 to i32
    %c0_i32_9 = arith.constant 0 : i32
    %11 = arith.cmpi ne, %10, %c0_i32_9 : i32
    scf.if %11 {
      %c0_10 = arith.constant 0 : index
      %c0_11 = arith.constant 0 : index
      %12 = vector.load %arg8[%c0_10, %c0_11] : memref<16x128xf32, #tpu.memory_space<vmem>>, vector<16x128xf32>
      %c0_12 = arith.constant 0 : index
      %c0_13 = arith.constant 0 : index
      %13 = vector.load %arg5[%c0_12, %c0_13] : memref<1x128xf32, #tpu.memory_space<vmem>>, vector<1x128xf32>
      %14 = vector.broadcast %13 : vector<1x128xf32> to vector<16x128xf32>
      %15 = arith.mulf %12, %14 : vector<16x128xf32>
      %c0_14 = arith.constant 0 : index
      %c0_15 = arith.constant 0 : index
      %16 = vector.load %arg6[%c0_14, %c0_15] : memref<1x128xf32, #tpu.memory_space<vmem>>, vector<1x128xf32>
      %17 = vector.broadcast %16 : vector<1x128xf32> to vector<16x128xf32>
      %18 = arith.addf %15, %17 : vector<16x128xf32>
      %cst_16 = arith.constant 0.000000e+00 : f32
      %19 = vector.broadcast %cst_16 : f32 to vector<16x128xf32>
      %20 = arith.maximumf %18, %19 : vector<16x128xf32>
      %c0_17 = arith.constant 0 : index
      %c0_18 = arith.constant 0 : index
      %21 = vector.load %arg7[%c0_17, %c0_18] : memref<16x128xf32, #tpu.memory_space<vmem>>, vector<16x128xf32>
      tpu.vector_store %arg7[%c0_17, %c0_18], %20 {strides = array<i32>} : memref<16x128xf32, #tpu.memory_space<vmem>>, vector<16x128xf32>,
    } else {
    }
    return
  }
  func.func @transform_0(%arg0: i32, %arg1: i32, %arg2: i32) -> (i32, i32) {
    %c0_i32 = arith.constant 0 : i32
    return %arg0, %arg2 : i32, i32
  }
  func.func @transform_1(%arg0: i32, %arg1: i32, %arg2: i32) -> (i32, i32) {
    %c0_i32 = arith.constant 0 : i32
    return %arg2, %arg1 : i32, i32
  }
  func.func @transform_2(%arg0: i32, %arg1: i32, %arg2: i32) -> (i32, i32) {
    %c0_i32 = arith.constant 0 : i32
    %c0_i32_0 = arith.constant 0 : i32
    return %c0_i32, %arg1 : i32, i32
  }
  func.func @transform_3(%arg0: i32, %arg1: i32, %arg2: i32) -> (i32, i32) {
    %c0_i32 = arith.constant 0 : i32
    %c0_i32_0 = arith.constant 0 : i32
    return %c0_i32, %arg1 : i32, i32
  }
  func.func @transform_4(%arg0: i32, %arg1: i32, %arg2: i32) -> (i32, i32) {
    %c0_i32 = arith.constant 0 : i32
    return %arg0, %arg1 : i32, i32
  }
}

module attributes {stable_mosaic.version = 11 : i64} {
  func.func @_mm_affine_kernel(%arg0: i32, %arg1: i32, %arg2: i32, %arg3: memref<16x384xbf16, #tpu.memory_space<vmem>>, %arg4: memref<384x128xbf16, #tpu.memory_space<vmem>>, %arg5: memref<1x128xf32, #tpu.memory_space<vmem>>, %arg6: memref<1x128xf32, #tpu.memory_space<vmem>>, %arg7: memref<16x128xbf16, #tpu.memory_space<vmem>>, %arg8: memref<16x128xf32, #tpu.memory_space<vmem>>) attributes {dimension_semantics = [#tpu.dimension_semantics<parallel>, #tpu.dimension_semantics<parallel>, #tpu.dimension_semantics<arbitrary>], iteration_bounds = array<i64: 2, 1, 1>, scalar_prefetch = 0 : i64, scratch_operands = 1 : i64, tpu.core_type = #tpu.core_type<tc>, window_params = [{transform_indices = @transform_0, window_bounds = array<i64: 16, 384>}, {transform_indices = @transform_1, window_bounds = array<i64: 384, 128>}, {transform_indices = @transform_2, window_bounds = array<i64: 1, 128>}, {transform_indices = @transform_3, window_bounds = array<i64: 1, 128>}, {transform_indices = @transform_4, window_bounds = array<i64: 16, 128>}]} {
    %c0_i32 = arith.constant 0 : i32
    %0 = arith.cmpi eq, %arg2, %c0_i32 : i32
    %1 = arith.extui %0 : i1 to i32
    %c0_i32_0 = arith.constant 0 : i32
    %2 = arith.cmpi ne, %1, %c0_i32_0 : i32
    scf.if %2 {
      %cst_10 = arith.constant 0.000000e+00 : f32
      %12 = vector.broadcast %cst_10 : f32 to vector<16x128xf32>
      %c0_11 = arith.constant 0 : index
      %c0_12 = arith.constant 0 : index
      %13 = vector.load %arg8[%c0_11, %c0_12] : memref<16x128xf32, #tpu.memory_space<vmem>>, vector<16x128xf32>
      tpu.vector_store %arg8[%c0_11, %c0_12], %12 {strides = array<i32>} : memref<16x128xf32, #tpu.memory_space<vmem>>, vector<16x128xf32>,
    } else {
    }
    %c0 = arith.constant 0 : index
    %c0_1 = arith.constant 0 : index
    %3 = vector.load %arg8[%c0, %c0_1] : memref<16x128xf32, #tpu.memory_space<vmem>>, vector<16x128xf32>
    %c0_2 = arith.constant 0 : index
    %c0_3 = arith.constant 0 : index
    %4 = vector.load %arg3[%c0_2, %c0_3] : memref<16x384xbf16, #tpu.memory_space<vmem>>, vector<16x384xbf16>
    %c0_4 = arith.constant 0 : index
    %c0_5 = arith.constant 0 : index
    %5 = vector.load %arg4[%c0_4, %c0_5] : memref<384x128xbf16, #tpu.memory_space<vmem>>, vector<384x128xbf16>
    %cst = arith.constant dense<0.000000e+00> : vector<16x128xf32>
    %6 = tpu.matmul %4, %5, %cst {dimension_numbers = #tpu.dot_dimension_numbers<[1], [0], [0], [1], [0, 0, 1, 1], [], []>} : vector<16x384xbf16>, vector<384x128xbf16>, vector<16x128xf32> -> vector<16x128xf32>
    %7 = arith.addf %3, %6 : vector<16x128xf32>
    %c0_6 = arith.constant 0 : index
    %c0_7 = arith.constant 0 : index
    %8 = vector.load %arg8[%c0_6, %c0_7] : memref<16x128xf32, #tpu.memory_space<vmem>>, vector<16x128xf32>
    tpu.vector_store %arg8[%c0_6, %c0_7], %7 {strides = array<i32>} : memref<16x128xf32, #tpu.memory_space<vmem>>, vector<16x128xf32>,
    %c0_i32_8 = arith.constant 0 : i32
    %9 = arith.cmpi eq, %arg2, %c0_i32_8 : i32
    %10 = arith.extui %9 : i1 to i32
    %c0_i32_9 = arith.constant 0 : i32
    %11 = arith.cmpi ne, %10, %c0_i32_9 : i32
    scf.if %11 {
      %c0_10 = arith.constant 0 : index
      %c0_11 = arith.constant 0 : index
      %12 = vector.load %arg8[%c0_10, %c0_11] : memref<16x128xf32, #tpu.memory_space<vmem>>, vector<16x128xf32>
      %c0_12 = arith.constant 0 : index
      %c0_13 = arith.constant 0 : index
      %13 = vector.load %arg5[%c0_12, %c0_13] : memref<1x128xf32, #tpu.memory_space<vmem>>, vector<1x128xf32>
      %14 = vector.broadcast %13 : vector<1x128xf32> to vector<16x128xf32>
      %15 = arith.mulf %12, %14 : vector<16x128xf32>
      %c0_14 = arith.constant 0 : index
      %c0_15 = arith.constant 0 : index
      %16 = vector.load %arg6[%c0_14, %c0_15] : memref<1x128xf32, #tpu.memory_space<vmem>>, vector<1x128xf32>
      %17 = vector.broadcast %16 : vector<1x128xf32> to vector<16x128xf32>
      %18 = arith.addf %15, %17 : vector<16x128xf32>
      %19 = arith.truncf %18 : vector<16x128xf32> to vector<16x128xbf16>
      %c0_16 = arith.constant 0 : index
      %c0_17 = arith.constant 0 : index
      %20 = vector.load %arg7[%c0_16, %c0_17] : memref<16x128xbf16, #tpu.memory_space<vmem>>, vector<16x128xbf16>
      tpu.vector_store %arg7[%c0_16, %c0_17], %19 {strides = array<i32>} : memref<16x128xbf16, #tpu.memory_space<vmem>>, vector<16x128xbf16>,
    } else {
    }
    return
  }
  func.func @transform_0(%arg0: i32, %arg1: i32, %arg2: i32) -> (i32, i32) {
    %c0_i32 = arith.constant 0 : i32
    return %arg0, %arg2 : i32, i32
  }
  func.func @transform_1(%arg0: i32, %arg1: i32, %arg2: i32) -> (i32, i32) {
    %c0_i32 = arith.constant 0 : i32
    return %arg2, %arg1 : i32, i32
  }
  func.func @transform_2(%arg0: i32, %arg1: i32, %arg2: i32) -> (i32, i32) {
    %c0_i32 = arith.constant 0 : i32
    %c0_i32_0 = arith.constant 0 : i32
    return %c0_i32, %arg1 : i32, i32
  }
  func.func @transform_3(%arg0: i32, %arg1: i32, %arg2: i32) -> (i32, i32) {
    %c0_i32 = arith.constant 0 : i32
    %c0_i32_0 = arith.constant 0 : i32
    return %c0_i32, %arg1 : i32, i32
  }
  func.func @transform_4(%arg0: i32, %arg1: i32, %arg2: i32) -> (i32, i32) {
    %c0_i32 = arith.constant 0 : i32
    return %arg0, %arg1 : i32, i32
  }
}

module attributes {stable_mosaic.version = 11 : i64} {
  func.func @_mm_affine_kernel(%arg0: i32, %arg1: i32, %arg2: i32, %arg3: memref<16x384xbf16, #tpu.memory_space<vmem>>, %arg4: memref<384x128xbf16, #tpu.memory_space<vmem>>, %arg5: memref<1x128xf32, #tpu.memory_space<vmem>>, %arg6: memref<1x128xf32, #tpu.memory_space<vmem>>, %arg7: memref<16x128xf32, #tpu.memory_space<vmem>>, %arg8: memref<16x128xbf16, #tpu.memory_space<vmem>>, %arg9: memref<16x128xf32, #tpu.memory_space<vmem>>) attributes {dimension_semantics = [#tpu.dimension_semantics<parallel>, #tpu.dimension_semantics<parallel>, #tpu.dimension_semantics<arbitrary>], iteration_bounds = array<i64: 2, 1, 1>, scalar_prefetch = 0 : i64, scratch_operands = 1 : i64, tpu.core_type = #tpu.core_type<tc>, window_params = [{transform_indices = @transform_0, window_bounds = array<i64: 16, 384>}, {transform_indices = @transform_1, window_bounds = array<i64: 384, 128>}, {transform_indices = @transform_2, window_bounds = array<i64: 1, 128>}, {transform_indices = @transform_3, window_bounds = array<i64: 1, 128>}, {transform_indices = @transform_4, window_bounds = array<i64: 16, 128>}, {transform_indices = @transform_5, window_bounds = array<i64: 16, 128>}]} {
    %c0_i32 = arith.constant 0 : i32
    %0 = arith.cmpi eq, %arg2, %c0_i32 : i32
    %1 = arith.extui %0 : i1 to i32
    %c0_i32_0 = arith.constant 0 : i32
    %2 = arith.cmpi ne, %1, %c0_i32_0 : i32
    scf.if %2 {
      %cst_10 = arith.constant 0.000000e+00 : f32
      %12 = vector.broadcast %cst_10 : f32 to vector<16x128xf32>
      %c0_11 = arith.constant 0 : index
      %c0_12 = arith.constant 0 : index
      %13 = vector.load %arg9[%c0_11, %c0_12] : memref<16x128xf32, #tpu.memory_space<vmem>>, vector<16x128xf32>
      tpu.vector_store %arg9[%c0_11, %c0_12], %12 {strides = array<i32>} : memref<16x128xf32, #tpu.memory_space<vmem>>, vector<16x128xf32>,
    } else {
    }
    %c0 = arith.constant 0 : index
    %c0_1 = arith.constant 0 : index
    %3 = vector.load %arg9[%c0, %c0_1] : memref<16x128xf32, #tpu.memory_space<vmem>>, vector<16x128xf32>
    %c0_2 = arith.constant 0 : index
    %c0_3 = arith.constant 0 : index
    %4 = vector.load %arg3[%c0_2, %c0_3] : memref<16x384xbf16, #tpu.memory_space<vmem>>, vector<16x384xbf16>
    %c0_4 = arith.constant 0 : index
    %c0_5 = arith.constant 0 : index
    %5 = vector.load %arg4[%c0_4, %c0_5] : memref<384x128xbf16, #tpu.memory_space<vmem>>, vector<384x128xbf16>
    %cst = arith.constant dense<0.000000e+00> : vector<16x128xf32>
    %6 = tpu.matmul %4, %5, %cst {dimension_numbers = #tpu.dot_dimension_numbers<[1], [0], [0], [1], [0, 0, 1, 1], [], []>} : vector<16x384xbf16>, vector<384x128xbf16>, vector<16x128xf32> -> vector<16x128xf32>
    %7 = arith.addf %3, %6 : vector<16x128xf32>
    %c0_6 = arith.constant 0 : index
    %c0_7 = arith.constant 0 : index
    %8 = vector.load %arg9[%c0_6, %c0_7] : memref<16x128xf32, #tpu.memory_space<vmem>>, vector<16x128xf32>
    tpu.vector_store %arg9[%c0_6, %c0_7], %7 {strides = array<i32>} : memref<16x128xf32, #tpu.memory_space<vmem>>, vector<16x128xf32>,
    %c0_i32_8 = arith.constant 0 : i32
    %9 = arith.cmpi eq, %arg2, %c0_i32_8 : i32
    %10 = arith.extui %9 : i1 to i32
    %c0_i32_9 = arith.constant 0 : i32
    %11 = arith.cmpi ne, %10, %c0_i32_9 : i32
    scf.if %11 {
      %c0_10 = arith.constant 0 : index
      %c0_11 = arith.constant 0 : index
      %12 = vector.load %arg9[%c0_10, %c0_11] : memref<16x128xf32, #tpu.memory_space<vmem>>, vector<16x128xf32>
      %c0_12 = arith.constant 0 : index
      %c0_13 = arith.constant 0 : index
      %13 = vector.load %arg5[%c0_12, %c0_13] : memref<1x128xf32, #tpu.memory_space<vmem>>, vector<1x128xf32>
      %14 = vector.broadcast %13 : vector<1x128xf32> to vector<16x128xf32>
      %15 = arith.mulf %12, %14 : vector<16x128xf32>
      %c0_14 = arith.constant 0 : index
      %c0_15 = arith.constant 0 : index
      %16 = vector.load %arg6[%c0_14, %c0_15] : memref<1x128xf32, #tpu.memory_space<vmem>>, vector<1x128xf32>
      %17 = vector.broadcast %16 : vector<1x128xf32> to vector<16x128xf32>
      %18 = arith.addf %15, %17 : vector<16x128xf32>
      %c0_16 = arith.constant 0 : index
      %c0_17 = arith.constant 0 : index
      %19 = vector.load %arg7[%c0_16, %c0_17] : memref<16x128xf32, #tpu.memory_space<vmem>>, vector<16x128xf32>
      %20 = arith.addf %18, %19 : vector<16x128xf32>
      %cst_18 = arith.constant 0.000000e+00 : f32
      %21 = vector.broadcast %cst_18 : f32 to vector<16x128xf32>
      %22 = arith.maximumf %20, %21 : vector<16x128xf32>
      %23 = arith.truncf %22 : vector<16x128xf32> to vector<16x128xbf16>
      %c0_19 = arith.constant 0 : index
      %c0_20 = arith.constant 0 : index
      %24 = vector.load %arg8[%c0_19, %c0_20] : memref<16x128xbf16, #tpu.memory_space<vmem>>, vector<16x128xbf16>
      tpu.vector_store %arg8[%c0_19, %c0_20], %23 {strides = array<i32>} : memref<16x128xbf16, #tpu.memory_space<vmem>>, vector<16x128xbf16>,
    } else {
    }
    return
  }
  func.func @transform_0(%arg0: i32, %arg1: i32, %arg2: i32) -> (i32, i32) {
    %c0_i32 = arith.constant 0 : i32
    return %arg0, %arg2 : i32, i32
  }
  func.func @transform_1(%arg0: i32, %arg1: i32, %arg2: i32) -> (i32, i32) {
    %c0_i32 = arith.constant 0 : i32
    return %arg2, %arg1 : i32, i32
  }
  func.func @transform_2(%arg0: i32, %arg1: i32, %arg2: i32) -> (i32, i32) {
    %c0_i32 = arith.constant 0 : i32
    %c0_i32_0 = arith.constant 0 : i32
    return %c0_i32, %arg1 : i32, i32
  }
  func.func @transform_3(%arg0: i32, %arg1: i32, %arg2: i32) -> (i32, i32) {
    %c0_i32 = arith.constant 0 : i32
    %c0_i32_0 = arith.constant 0 : i32
    return %c0_i32, %arg1 : i32, i32
  }
  func.func @transform_4(%arg0: i32, %arg1: i32, %arg2: i32) -> (i32, i32) {
    %c0_i32 = arith.constant 0 : i32
    return %arg0, %arg1 : i32, i32
  }
  func.func @transform_5(%arg0: i32, %arg1: i32, %arg2: i32) -> (i32, i32) {
    %c0_i32 = arith.constant 0 : i32
    return %arg0, %arg1 : i32, i32
  }
}

module attributes {stable_mosaic.version = 11 : i64} {
  func.func @_mm_affine_kernel(%arg0: i32, %arg1: i32, %arg2: i32, %arg3: memref<16x128xbf16, #tpu.memory_space<vmem>>, %arg4: memref<128x128xbf16, #tpu.memory_space<vmem>>, %arg5: memref<1x128xf32, #tpu.memory_space<vmem>>, %arg6: memref<1x128xf32, #tpu.memory_space<vmem>>, %arg7: memref<16x128xf32, #tpu.memory_space<vmem>>, %arg8: memref<16x128xf32, #tpu.memory_space<vmem>>) attributes {dimension_semantics = [#tpu.dimension_semantics<parallel>, #tpu.dimension_semantics<parallel>, #tpu.dimension_semantics<arbitrary>], iteration_bounds = array<i64: 2, 1, 1>, scalar_prefetch = 0 : i64, scratch_operands = 1 : i64, tpu.core_type = #tpu.core_type<tc>, window_params = [{transform_indices = @transform_0, window_bounds = array<i64: 16, 128>}, {transform_indices = @transform_1, window_bounds = array<i64: 128, 128>}, {transform_indices = @transform_2, window_bounds = array<i64: 1, 128>}, {transform_indices = @transform_3, window_bounds = array<i64: 1, 128>}, {transform_indices = @transform_4, window_bounds = array<i64: 16, 128>}]} {
    %c0_i32 = arith.constant 0 : i32
    %0 = arith.cmpi eq, %arg2, %c0_i32 : i32
    %1 = arith.extui %0 : i1 to i32
    %c0_i32_0 = arith.constant 0 : i32
    %2 = arith.cmpi ne, %1, %c0_i32_0 : i32
    scf.if %2 {
      %cst_10 = arith.constant 0.000000e+00 : f32
      %12 = vector.broadcast %cst_10 : f32 to vector<16x128xf32>
      %c0_11 = arith.constant 0 : index
      %c0_12 = arith.constant 0 : index
      %13 = vector.load %arg8[%c0_11, %c0_12] : memref<16x128xf32, #tpu.memory_space<vmem>>, vector<16x128xf32>
      tpu.vector_store %arg8[%c0_11, %c0_12], %12 {strides = array<i32>} : memref<16x128xf32, #tpu.memory_space<vmem>>, vector<16x128xf32>,
    } else {
    }
    %c0 = arith.constant 0 : index
    %c0_1 = arith.constant 0 : index
    %3 = vector.load %arg8[%c0, %c0_1] : memref<16x128xf32, #tpu.memory_space<vmem>>, vector<16x128xf32>
    %c0_2 = arith.constant 0 : index
    %c0_3 = arith.constant 0 : index
    %4 = vector.load %arg3[%c0_2, %c0_3] : memref<16x128xbf16, #tpu.memory_space<vmem>>, vector<16x128xbf16>
    %c0_4 = arith.constant 0 : index
    %c0_5 = arith.constant 0 : index
    %5 = vector.load %arg4[%c0_4, %c0_5] : memref<128x128xbf16, #tpu.memory_space<vmem>>, vector<128x128xbf16>
    %cst = arith.constant dense<0.000000e+00> : vector<16x128xf32>
    %6 = tpu.matmul %4, %5, %cst {dimension_numbers = #tpu.dot_dimension_numbers<[1], [0], [0], [1], [0, 0, 1, 1], [], []>} : vector<16x128xbf16>, vector<128x128xbf16>, vector<16x128xf32> -> vector<16x128xf32>
    %7 = arith.addf %3, %6 : vector<16x128xf32>
    %c0_6 = arith.constant 0 : index
    %c0_7 = arith.constant 0 : index
    %8 = vector.load %arg8[%c0_6, %c0_7] : memref<16x128xf32, #tpu.memory_space<vmem>>, vector<16x128xf32>
    tpu.vector_store %arg8[%c0_6, %c0_7], %7 {strides = array<i32>} : memref<16x128xf32, #tpu.memory_space<vmem>>, vector<16x128xf32>,
    %c0_i32_8 = arith.constant 0 : i32
    %9 = arith.cmpi eq, %arg2, %c0_i32_8 : i32
    %10 = arith.extui %9 : i1 to i32
    %c0_i32_9 = arith.constant 0 : i32
    %11 = arith.cmpi ne, %10, %c0_i32_9 : i32
    scf.if %11 {
      %c0_10 = arith.constant 0 : index
      %c0_11 = arith.constant 0 : index
      %12 = vector.load %arg8[%c0_10, %c0_11] : memref<16x128xf32, #tpu.memory_space<vmem>>, vector<16x128xf32>
      %c0_12 = arith.constant 0 : index
      %c0_13 = arith.constant 0 : index
      %13 = vector.load %arg5[%c0_12, %c0_13] : memref<1x128xf32, #tpu.memory_space<vmem>>, vector<1x128xf32>
      %14 = vector.broadcast %13 : vector<1x128xf32> to vector<16x128xf32>
      %15 = arith.mulf %12, %14 : vector<16x128xf32>
      %c0_14 = arith.constant 0 : index
      %c0_15 = arith.constant 0 : index
      %16 = vector.load %arg6[%c0_14, %c0_15] : memref<1x128xf32, #tpu.memory_space<vmem>>, vector<1x128xf32>
      %17 = vector.broadcast %16 : vector<1x128xf32> to vector<16x128xf32>
      %18 = arith.addf %15, %17 : vector<16x128xf32>
      %cst_16 = arith.constant 0.000000e+00 : f32
      %19 = vector.broadcast %cst_16 : f32 to vector<16x128xf32>
      %20 = arith.maximumf %18, %19 : vector<16x128xf32>
      %c0_17 = arith.constant 0 : index
      %c0_18 = arith.constant 0 : index
      %21 = vector.load %arg7[%c0_17, %c0_18] : memref<16x128xf32, #tpu.memory_space<vmem>>, vector<16x128xf32>
      tpu.vector_store %arg7[%c0_17, %c0_18], %20 {strides = array<i32>} : memref<16x128xf32, #tpu.memory_space<vmem>>, vector<16x128xf32>,
    } else {
    }
    return
  }
  func.func @transform_0(%arg0: i32, %arg1: i32, %arg2: i32) -> (i32, i32) {
    %c0_i32 = arith.constant 0 : i32
    return %arg0, %arg2 : i32, i32
  }
  func.func @transform_1(%arg0: i32, %arg1: i32, %arg2: i32) -> (i32, i32) {
    %c0_i32 = arith.constant 0 : i32
    return %arg2, %arg1 : i32, i32
  }
  func.func @transform_2(%arg0: i32, %arg1: i32, %arg2: i32) -> (i32, i32) {
    %c0_i32 = arith.constant 0 : i32
    %c0_i32_0 = arith.constant 0 : i32
    return %c0_i32, %arg1 : i32, i32
  }
  func.func @transform_3(%arg0: i32, %arg1: i32, %arg2: i32) -> (i32, i32) {
    %c0_i32 = arith.constant 0 : i32
    %c0_i32_0 = arith.constant 0 : i32
    return %c0_i32, %arg1 : i32, i32
  }
  func.func @transform_4(%arg0: i32, %arg1: i32, %arg2: i32) -> (i32, i32) {
    %c0_i32 = arith.constant 0 : i32
    return %arg0, %arg1 : i32, i32
  }
}

module attributes {stable_mosaic.version = 11 : i64} {
  func.func @_mm_affine_kernel(%arg0: i32, %arg1: i32, %arg2: i32, %arg3: memref<16x384xbf16, #tpu.memory_space<vmem>>, %arg4: memref<384x128xbf16, #tpu.memory_space<vmem>>, %arg5: memref<1x128xf32, #tpu.memory_space<vmem>>, %arg6: memref<1x128xf32, #tpu.memory_space<vmem>>, %arg7: memref<16x128xbf16, #tpu.memory_space<vmem>>, %arg8: memref<16x128xf32, #tpu.memory_space<vmem>>) attributes {dimension_semantics = [#tpu.dimension_semantics<parallel>, #tpu.dimension_semantics<parallel>, #tpu.dimension_semantics<arbitrary>], iteration_bounds = array<i64: 2, 1, 1>, scalar_prefetch = 0 : i64, scratch_operands = 1 : i64, tpu.core_type = #tpu.core_type<tc>, window_params = [{transform_indices = @transform_0, window_bounds = array<i64: 16, 384>}, {transform_indices = @transform_1, window_bounds = array<i64: 384, 128>}, {transform_indices = @transform_2, window_bounds = array<i64: 1, 128>}, {transform_indices = @transform_3, window_bounds = array<i64: 1, 128>}, {transform_indices = @transform_4, window_bounds = array<i64: 16, 128>}]} {
    %c0_i32 = arith.constant 0 : i32
    %0 = arith.cmpi eq, %arg2, %c0_i32 : i32
    %1 = arith.extui %0 : i1 to i32
    %c0_i32_0 = arith.constant 0 : i32
    %2 = arith.cmpi ne, %1, %c0_i32_0 : i32
    scf.if %2 {
      %cst_10 = arith.constant 0.000000e+00 : f32
      %12 = vector.broadcast %cst_10 : f32 to vector<16x128xf32>
      %c0_11 = arith.constant 0 : index
      %c0_12 = arith.constant 0 : index
      %13 = vector.load %arg8[%c0_11, %c0_12] : memref<16x128xf32, #tpu.memory_space<vmem>>, vector<16x128xf32>
      tpu.vector_store %arg8[%c0_11, %c0_12], %12 {strides = array<i32>} : memref<16x128xf32, #tpu.memory_space<vmem>>, vector<16x128xf32>,
    } else {
    }
    %c0 = arith.constant 0 : index
    %c0_1 = arith.constant 0 : index
    %3 = vector.load %arg8[%c0, %c0_1] : memref<16x128xf32, #tpu.memory_space<vmem>>, vector<16x128xf32>
    %c0_2 = arith.constant 0 : index
    %c0_3 = arith.constant 0 : index
    %4 = vector.load %arg3[%c0_2, %c0_3] : memref<16x384xbf16, #tpu.memory_space<vmem>>, vector<16x384xbf16>
    %c0_4 = arith.constant 0 : index
    %c0_5 = arith.constant 0 : index
    %5 = vector.load %arg4[%c0_4, %c0_5] : memref<384x128xbf16, #tpu.memory_space<vmem>>, vector<384x128xbf16>
    %cst = arith.constant dense<0.000000e+00> : vector<16x128xf32>
    %6 = tpu.matmul %4, %5, %cst {dimension_numbers = #tpu.dot_dimension_numbers<[1], [0], [0], [1], [0, 0, 1, 1], [], []>} : vector<16x384xbf16>, vector<384x128xbf16>, vector<16x128xf32> -> vector<16x128xf32>
    %7 = arith.addf %3, %6 : vector<16x128xf32>
    %c0_6 = arith.constant 0 : index
    %c0_7 = arith.constant 0 : index
    %8 = vector.load %arg8[%c0_6, %c0_7] : memref<16x128xf32, #tpu.memory_space<vmem>>, vector<16x128xf32>
    tpu.vector_store %arg8[%c0_6, %c0_7], %7 {strides = array<i32>} : memref<16x128xf32, #tpu.memory_space<vmem>>, vector<16x128xf32>,
    %c0_i32_8 = arith.constant 0 : i32
    %9 = arith.cmpi eq, %arg2, %c0_i32_8 : i32
    %10 = arith.extui %9 : i1 to i32
    %c0_i32_9 = arith.constant 0 : i32
    %11 = arith.cmpi ne, %10, %c0_i32_9 : i32
    scf.if %11 {
      %c0_10 = arith.constant 0 : index
      %c0_11 = arith.constant 0 : index
      %12 = vector.load %arg8[%c0_10, %c0_11] : memref<16x128xf32, #tpu.memory_space<vmem>>, vector<16x128xf32>
      %c0_12 = arith.constant 0 : index
      %c0_13 = arith.constant 0 : index
      %13 = vector.load %arg5[%c0_12, %c0_13] : memref<1x128xf32, #tpu.memory_space<vmem>>, vector<1x128xf32>
      %14 = vector.broadcast %13 : vector<1x128xf32> to vector<16x128xf32>
      %15 = arith.mulf %12, %14 : vector<16x128xf32>
      %c0_14 = arith.constant 0 : index
      %c0_15 = arith.constant 0 : index
      %16 = vector.load %arg6[%c0_14, %c0_15] : memref<1x128xf32, #tpu.memory_space<vmem>>, vector<1x128xf32>
      %17 = vector.broadcast %16 : vector<1x128xf32> to vector<16x128xf32>
      %18 = arith.addf %15, %17 : vector<16x128xf32>
      %19 = arith.truncf %18 : vector<16x128xf32> to vector<16x128xbf16>
      %c0_16 = arith.constant 0 : index
      %c0_17 = arith.constant 0 : index
      %20 = vector.load %arg7[%c0_16, %c0_17] : memref<16x128xbf16, #tpu.memory_space<vmem>>, vector<16x128xbf16>
      tpu.vector_store %arg7[%c0_16, %c0_17], %19 {strides = array<i32>} : memref<16x128xbf16, #tpu.memory_space<vmem>>, vector<16x128xbf16>,
    } else {
    }
    return
  }
  func.func @transform_0(%arg0: i32, %arg1: i32, %arg2: i32) -> (i32, i32) {
    %c0_i32 = arith.constant 0 : i32
    return %arg0, %arg2 : i32, i32
  }
  func.func @transform_1(%arg0: i32, %arg1: i32, %arg2: i32) -> (i32, i32) {
    %c0_i32 = arith.constant 0 : i32
    return %arg2, %arg1 : i32, i32
  }
  func.func @transform_2(%arg0: i32, %arg1: i32, %arg2: i32) -> (i32, i32) {
    %c0_i32 = arith.constant 0 : i32
    %c0_i32_0 = arith.constant 0 : i32
    return %c0_i32, %arg1 : i32, i32
  }
  func.func @transform_3(%arg0: i32, %arg1: i32, %arg2: i32) -> (i32, i32) {
    %c0_i32 = arith.constant 0 : i32
    %c0_i32_0 = arith.constant 0 : i32
    return %c0_i32, %arg1 : i32, i32
  }
  func.func @transform_4(%arg0: i32, %arg1: i32, %arg2: i32) -> (i32, i32) {
    %c0_i32 = arith.constant 0 : i32
    return %arg0, %arg1 : i32, i32
  }
}

module attributes {stable_mosaic.version = 11 : i64} {
  func.func @_mm_affine_kernel(%arg0: i32, %arg1: i32, %arg2: i32, %arg3: memref<16x384xbf16, #tpu.memory_space<vmem>>, %arg4: memref<384x128xbf16, #tpu.memory_space<vmem>>, %arg5: memref<1x128xf32, #tpu.memory_space<vmem>>, %arg6: memref<1x128xf32, #tpu.memory_space<vmem>>, %arg7: memref<16x128xf32, #tpu.memory_space<vmem>>, %arg8: memref<16x128xbf16, #tpu.memory_space<vmem>>, %arg9: memref<16x128xf32, #tpu.memory_space<vmem>>) attributes {dimension_semantics = [#tpu.dimension_semantics<parallel>, #tpu.dimension_semantics<parallel>, #tpu.dimension_semantics<arbitrary>], iteration_bounds = array<i64: 2, 1, 1>, scalar_prefetch = 0 : i64, scratch_operands = 1 : i64, tpu.core_type = #tpu.core_type<tc>, window_params = [{transform_indices = @transform_0, window_bounds = array<i64: 16, 384>}, {transform_indices = @transform_1, window_bounds = array<i64: 384, 128>}, {transform_indices = @transform_2, window_bounds = array<i64: 1, 128>}, {transform_indices = @transform_3, window_bounds = array<i64: 1, 128>}, {transform_indices = @transform_4, window_bounds = array<i64: 16, 128>}, {transform_indices = @transform_5, window_bounds = array<i64: 16, 128>}]} {
    %c0_i32 = arith.constant 0 : i32
    %0 = arith.cmpi eq, %arg2, %c0_i32 : i32
    %1 = arith.extui %0 : i1 to i32
    %c0_i32_0 = arith.constant 0 : i32
    %2 = arith.cmpi ne, %1, %c0_i32_0 : i32
    scf.if %2 {
      %cst_10 = arith.constant 0.000000e+00 : f32
      %12 = vector.broadcast %cst_10 : f32 to vector<16x128xf32>
      %c0_11 = arith.constant 0 : index
      %c0_12 = arith.constant 0 : index
      %13 = vector.load %arg9[%c0_11, %c0_12] : memref<16x128xf32, #tpu.memory_space<vmem>>, vector<16x128xf32>
      tpu.vector_store %arg9[%c0_11, %c0_12], %12 {strides = array<i32>} : memref<16x128xf32, #tpu.memory_space<vmem>>, vector<16x128xf32>,
    } else {
    }
    %c0 = arith.constant 0 : index
    %c0_1 = arith.constant 0 : index
    %3 = vector.load %arg9[%c0, %c0_1] : memref<16x128xf32, #tpu.memory_space<vmem>>, vector<16x128xf32>
    %c0_2 = arith.constant 0 : index
    %c0_3 = arith.constant 0 : index
    %4 = vector.load %arg3[%c0_2, %c0_3] : memref<16x384xbf16, #tpu.memory_space<vmem>>, vector<16x384xbf16>
    %c0_4 = arith.constant 0 : index
    %c0_5 = arith.constant 0 : index
    %5 = vector.load %arg4[%c0_4, %c0_5] : memref<384x128xbf16, #tpu.memory_space<vmem>>, vector<384x128xbf16>
    %cst = arith.constant dense<0.000000e+00> : vector<16x128xf32>
    %6 = tpu.matmul %4, %5, %cst {dimension_numbers = #tpu.dot_dimension_numbers<[1], [0], [0], [1], [0, 0, 1, 1], [], []>} : vector<16x384xbf16>, vector<384x128xbf16>, vector<16x128xf32> -> vector<16x128xf32>
    %7 = arith.addf %3, %6 : vector<16x128xf32>
    %c0_6 = arith.constant 0 : index
    %c0_7 = arith.constant 0 : index
    %8 = vector.load %arg9[%c0_6, %c0_7] : memref<16x128xf32, #tpu.memory_space<vmem>>, vector<16x128xf32>
    tpu.vector_store %arg9[%c0_6, %c0_7], %7 {strides = array<i32>} : memref<16x128xf32, #tpu.memory_space<vmem>>, vector<16x128xf32>,
    %c0_i32_8 = arith.constant 0 : i32
    %9 = arith.cmpi eq, %arg2, %c0_i32_8 : i32
    %10 = arith.extui %9 : i1 to i32
    %c0_i32_9 = arith.constant 0 : i32
    %11 = arith.cmpi ne, %10, %c0_i32_9 : i32
    scf.if %11 {
      %c0_10 = arith.constant 0 : index
      %c0_11 = arith.constant 0 : index
      %12 = vector.load %arg9[%c0_10, %c0_11] : memref<16x128xf32, #tpu.memory_space<vmem>>, vector<16x128xf32>
      %c0_12 = arith.constant 0 : index
      %c0_13 = arith.constant 0 : index
      %13 = vector.load %arg5[%c0_12, %c0_13] : memref<1x128xf32, #tpu.memory_space<vmem>>, vector<1x128xf32>
      %14 = vector.broadcast %13 : vector<1x128xf32> to vector<16x128xf32>
      %15 = arith.mulf %12, %14 : vector<16x128xf32>
      %c0_14 = arith.constant 0 : index
      %c0_15 = arith.constant 0 : index
      %16 = vector.load %arg6[%c0_14, %c0_15] : memref<1x128xf32, #tpu.memory_space<vmem>>, vector<1x128xf32>
      %17 = vector.broadcast %16 : vector<1x128xf32> to vector<16x128xf32>
      %18 = arith.addf %15, %17 : vector<16x128xf32>
      %c0_16 = arith.constant 0 : index
      %c0_17 = arith.constant 0 : index
      %19 = vector.load %arg7[%c0_16, %c0_17] : memref<16x128xf32, #tpu.memory_space<vmem>>, vector<16x128xf32>
      %20 = arith.addf %18, %19 : vector<16x128xf32>
      %cst_18 = arith.constant 0.000000e+00 : f32
      %21 = vector.broadcast %cst_18 : f32 to vector<16x128xf32>
      %22 = arith.maximumf %20, %21 : vector<16x128xf32>
      %23 = arith.truncf %22 : vector<16x128xf32> to vector<16x128xbf16>
      %c0_19 = arith.constant 0 : index
      %c0_20 = arith.constant 0 : index
      %24 = vector.load %arg8[%c0_19, %c0_20] : memref<16x128xbf16, #tpu.memory_space<vmem>>, vector<16x128xbf16>
      tpu.vector_store %arg8[%c0_19, %c0_20], %23 {strides = array<i32>} : memref<16x128xbf16, #tpu.memory_space<vmem>>, vector<16x128xbf16>,
    } else {
    }
    return
  }
  func.func @transform_0(%arg0: i32, %arg1: i32, %arg2: i32) -> (i32, i32) {
    %c0_i32 = arith.constant 0 : i32
    return %arg0, %arg2 : i32, i32
  }
  func.func @transform_1(%arg0: i32, %arg1: i32, %arg2: i32) -> (i32, i32) {
    %c0_i32 = arith.constant 0 : i32
    return %arg2, %arg1 : i32, i32
  }
  func.func @transform_2(%arg0: i32, %arg1: i32, %arg2: i32) -> (i32, i32) {
    %c0_i32 = arith.constant 0 : i32
    %c0_i32_0 = arith.constant 0 : i32
    return %c0_i32, %arg1 : i32, i32
  }
  func.func @transform_3(%arg0: i32, %arg1: i32, %arg2: i32) -> (i32, i32) {
    %c0_i32 = arith.constant 0 : i32
    %c0_i32_0 = arith.constant 0 : i32
    return %c0_i32, %arg1 : i32, i32
  }
  func.func @transform_4(%arg0: i32, %arg1: i32, %arg2: i32) -> (i32, i32) {
    %c0_i32 = arith.constant 0 : i32
    return %arg0, %arg1 : i32, i32
  }
  func.func @transform_5(%arg0: i32, %arg1: i32, %arg2: i32) -> (i32, i32) {
    %c0_i32 = arith.constant 0 : i32
    return %arg0, %arg1 : i32, i32
  }
}

module attributes {stable_mosaic.version = 11 : i64} {
  func.func @_mm_affine_kernel(%arg0: i32, %arg1: i32, %arg2: i32, %arg3: memref<16x128xbf16, #tpu.memory_space<vmem>>, %arg4: memref<128x128xbf16, #tpu.memory_space<vmem>>, %arg5: memref<1x128xf32, #tpu.memory_space<vmem>>, %arg6: memref<1x128xf32, #tpu.memory_space<vmem>>, %arg7: memref<16x128xbf16, #tpu.memory_space<vmem>>, %arg8: memref<16x128xf32, #tpu.memory_space<vmem>>) attributes {dimension_semantics = [#tpu.dimension_semantics<parallel>, #tpu.dimension_semantics<parallel>, #tpu.dimension_semantics<arbitrary>], iteration_bounds = array<i64: 2, 1, 1>, scalar_prefetch = 0 : i64, scratch_operands = 1 : i64, tpu.core_type = #tpu.core_type<tc>, window_params = [{transform_indices = @transform_0, window_bounds = array<i64: 16, 128>}, {transform_indices = @transform_1, window_bounds = array<i64: 128, 128>}, {transform_indices = @transform_2, window_bounds = array<i64: 1, 128>}, {transform_indices = @transform_3, window_bounds = array<i64: 1, 128>}, {transform_indices = @transform_4, window_bounds = array<i64: 16, 128>}]} {
    %c0_i32 = arith.constant 0 : i32
    %0 = arith.cmpi eq, %arg2, %c0_i32 : i32
    %1 = arith.extui %0 : i1 to i32
    %c0_i32_0 = arith.constant 0 : i32
    %2 = arith.cmpi ne, %1, %c0_i32_0 : i32
    scf.if %2 {
      %cst_10 = arith.constant 0.000000e+00 : f32
      %12 = vector.broadcast %cst_10 : f32 to vector<16x128xf32>
      %c0_11 = arith.constant 0 : index
      %c0_12 = arith.constant 0 : index
      %13 = vector.load %arg8[%c0_11, %c0_12] : memref<16x128xf32, #tpu.memory_space<vmem>>, vector<16x128xf32>
      tpu.vector_store %arg8[%c0_11, %c0_12], %12 {strides = array<i32>} : memref<16x128xf32, #tpu.memory_space<vmem>>, vector<16x128xf32>,
    } else {
    }
    %c0 = arith.constant 0 : index
    %c0_1 = arith.constant 0 : index
    %3 = vector.load %arg8[%c0, %c0_1] : memref<16x128xf32, #tpu.memory_space<vmem>>, vector<16x128xf32>
    %c0_2 = arith.constant 0 : index
    %c0_3 = arith.constant 0 : index
    %4 = vector.load %arg3[%c0_2, %c0_3] : memref<16x128xbf16, #tpu.memory_space<vmem>>, vector<16x128xbf16>
    %c0_4 = arith.constant 0 : index
    %c0_5 = arith.constant 0 : index
    %5 = vector.load %arg4[%c0_4, %c0_5] : memref<128x128xbf16, #tpu.memory_space<vmem>>, vector<128x128xbf16>
    %cst = arith.constant dense<0.000000e+00> : vector<16x128xf32>
    %6 = tpu.matmul %4, %5, %cst {dimension_numbers = #tpu.dot_dimension_numbers<[1], [0], [0], [1], [0, 0, 1, 1], [], []>} : vector<16x128xbf16>, vector<128x128xbf16>, vector<16x128xf32> -> vector<16x128xf32>
    %7 = arith.addf %3, %6 : vector<16x128xf32>
    %c0_6 = arith.constant 0 : index
    %c0_7 = arith.constant 0 : index
    %8 = vector.load %arg8[%c0_6, %c0_7] : memref<16x128xf32, #tpu.memory_space<vmem>>, vector<16x128xf32>
    tpu.vector_store %arg8[%c0_6, %c0_7], %7 {strides = array<i32>} : memref<16x128xf32, #tpu.memory_space<vmem>>, vector<16x128xf32>,
    %c0_i32_8 = arith.constant 0 : i32
    %9 = arith.cmpi eq, %arg2, %c0_i32_8 : i32
    %10 = arith.extui %9 : i1 to i32
    %c0_i32_9 = arith.constant 0 : i32
    %11 = arith.cmpi ne, %10, %c0_i32_9 : i32
    scf.if %11 {
      %c0_10 = arith.constant 0 : index
      %c0_11 = arith.constant 0 : index
      %12 = vector.load %arg8[%c0_10, %c0_11] : memref<16x128xf32, #tpu.memory_space<vmem>>, vector<16x128xf32>
      %c0_12 = arith.constant 0 : index
      %c0_13 = arith.constant 0 : index
      %13 = vector.load %arg5[%c0_12, %c0_13] : memref<1x128xf32, #tpu.memory_space<vmem>>, vector<1x128xf32>
      %14 = vector.broadcast %13 : vector<1x128xf32> to vector<16x128xf32>
      %15 = arith.mulf %12, %14 : vector<16x128xf32>
      %c0_14 = arith.constant 0 : index
      %c0_15 = arith.constant 0 : index
      %16 = vector.load %arg6[%c0_14, %c0_15] : memref<1x128xf32, #tpu.memory_space<vmem>>, vector<1x128xf32>
      %17 = vector.broadcast %16 : vector<1x128xf32> to vector<16x128xf32>
      %18 = arith.addf %15, %17 : vector<16x128xf32>
      %cst_16 = arith.constant 0.000000e+00 : f32
      %19 = vector.broadcast %cst_16 : f32 to vector<16x128xf32>
      %20 = arith.maximumf %18, %19 : vector<16x128xf32>
      %21 = arith.truncf %20 : vector<16x128xf32> to vector<16x128xbf16>
      %c0_17 = arith.constant 0 : index
      %c0_18 = arith.constant 0 : index
      %22 = vector.load %arg7[%c0_17, %c0_18] : memref<16x128xbf16, #tpu.memory_space<vmem>>, vector<16x128xbf16>
      tpu.vector_store %arg7[%c0_17, %c0_18], %21 {strides = array<i32>} : memref<16x128xbf16, #tpu.memory_space<vmem>>, vector<16x128xbf16>,
    } else {
    }
    return
  }
  func.func @transform_0(%arg0: i32, %arg1: i32, %arg2: i32) -> (i32, i32) {
    %c0_i32 = arith.constant 0 : i32
    return %arg0, %arg2 : i32, i32
  }
  func.func @transform_1(%arg0: i32, %arg1: i32, %arg2: i32) -> (i32, i32) {
    %c0_i32 = arith.constant 0 : i32
    return %arg2, %arg1 : i32, i32
  }
  func.func @transform_2(%arg0: i32, %arg1: i32, %arg2: i32) -> (i32, i32) {
    %c0_i32 = arith.constant 0 : i32
    %c0_i32_0 = arith.constant 0 : i32
    return %c0_i32, %arg1 : i32, i32
  }
  func.func @transform_3(%arg0: i32, %arg1: i32, %arg2: i32) -> (i32, i32) {
    %c0_i32 = arith.constant 0 : i32
    %c0_i32_0 = arith.constant 0 : i32
    return %c0_i32, %arg1 : i32, i32
  }
  func.func @transform_4(%arg0: i32, %arg1: i32, %arg2: i32) -> (i32, i32) {
    %c0_i32 = arith.constant 0 : i32
    return %arg0, %arg1 : i32, i32
  }
}

module attributes {stable_mosaic.version = 11 : i64} {
  func.func @_mm_affine_kernel(%arg0: i32, %arg1: i32, %arg2: i32, %arg3: memref<256x512xbf16, #tpu.memory_space<vmem>>, %arg4: memref<512x128xbf16, #tpu.memory_space<vmem>>, %arg5: memref<1x128xf32, #tpu.memory_space<vmem>>, %arg6: memref<1x128xf32, #tpu.memory_space<vmem>>, %arg7: memref<256x128xf32, #tpu.memory_space<vmem>>, %arg8: memref<256x128xf32, #tpu.memory_space<vmem>>) attributes {dimension_semantics = [#tpu.dimension_semantics<parallel>, #tpu.dimension_semantics<parallel>, #tpu.dimension_semantics<arbitrary>], iteration_bounds = array<i64: 2, 1, 1>, scalar_prefetch = 0 : i64, scratch_operands = 1 : i64, tpu.core_type = #tpu.core_type<tc>, window_params = [{transform_indices = @transform_0, window_bounds = array<i64: 256, 512>}, {transform_indices = @transform_1, window_bounds = array<i64: 512, 128>}, {transform_indices = @transform_2, window_bounds = array<i64: 1, 128>}, {transform_indices = @transform_3, window_bounds = array<i64: 1, 128>}, {transform_indices = @transform_4, window_bounds = array<i64: 256, 128>}]} {
    %c0_i32 = arith.constant 0 : i32
    %0 = arith.cmpi eq, %arg2, %c0_i32 : i32
    %1 = arith.extui %0 : i1 to i32
    %c0_i32_0 = arith.constant 0 : i32
    %2 = arith.cmpi ne, %1, %c0_i32_0 : i32
    scf.if %2 {
      %cst_10 = arith.constant 0.000000e+00 : f32
      %12 = vector.broadcast %cst_10 : f32 to vector<256x128xf32>
      %c0_11 = arith.constant 0 : index
      %c0_12 = arith.constant 0 : index
      %13 = vector.load %arg8[%c0_11, %c0_12] : memref<256x128xf32, #tpu.memory_space<vmem>>, vector<256x128xf32>
      tpu.vector_store %arg8[%c0_11, %c0_12], %12 {strides = array<i32>} : memref<256x128xf32, #tpu.memory_space<vmem>>, vector<256x128xf32>,
    } else {
    }
    %c0 = arith.constant 0 : index
    %c0_1 = arith.constant 0 : index
    %3 = vector.load %arg8[%c0, %c0_1] : memref<256x128xf32, #tpu.memory_space<vmem>>, vector<256x128xf32>
    %c0_2 = arith.constant 0 : index
    %c0_3 = arith.constant 0 : index
    %4 = vector.load %arg3[%c0_2, %c0_3] : memref<256x512xbf16, #tpu.memory_space<vmem>>, vector<256x512xbf16>
    %c0_4 = arith.constant 0 : index
    %c0_5 = arith.constant 0 : index
    %5 = vector.load %arg4[%c0_4, %c0_5] : memref<512x128xbf16, #tpu.memory_space<vmem>>, vector<512x128xbf16>
    %cst = arith.constant dense<0.000000e+00> : vector<256x128xf32>
    %6 = tpu.matmul %4, %5, %cst {dimension_numbers = #tpu.dot_dimension_numbers<[1], [0], [0], [1], [0, 0, 1, 1], [], []>} : vector<256x512xbf16>, vector<512x128xbf16>, vector<256x128xf32> -> vector<256x128xf32>
    %7 = arith.addf %3, %6 : vector<256x128xf32>
    %c0_6 = arith.constant 0 : index
    %c0_7 = arith.constant 0 : index
    %8 = vector.load %arg8[%c0_6, %c0_7] : memref<256x128xf32, #tpu.memory_space<vmem>>, vector<256x128xf32>
    tpu.vector_store %arg8[%c0_6, %c0_7], %7 {strides = array<i32>} : memref<256x128xf32, #tpu.memory_space<vmem>>, vector<256x128xf32>,
    %c0_i32_8 = arith.constant 0 : i32
    %9 = arith.cmpi eq, %arg2, %c0_i32_8 : i32
    %10 = arith.extui %9 : i1 to i32
    %c0_i32_9 = arith.constant 0 : i32
    %11 = arith.cmpi ne, %10, %c0_i32_9 : i32
    scf.if %11 {
      %c0_10 = arith.constant 0 : index
      %c0_11 = arith.constant 0 : index
      %12 = vector.load %arg8[%c0_10, %c0_11] : memref<256x128xf32, #tpu.memory_space<vmem>>, vector<256x128xf32>
      %c0_12 = arith.constant 0 : index
      %c0_13 = arith.constant 0 : index
      %13 = vector.load %arg5[%c0_12, %c0_13] : memref<1x128xf32, #tpu.memory_space<vmem>>, vector<1x128xf32>
      %14 = vector.broadcast %13 : vector<1x128xf32> to vector<256x128xf32>
      %15 = arith.mulf %12, %14 : vector<256x128xf32>
      %c0_14 = arith.constant 0 : index
      %c0_15 = arith.constant 0 : index
      %16 = vector.load %arg6[%c0_14, %c0_15] : memref<1x128xf32, #tpu.memory_space<vmem>>, vector<1x128xf32>
      %17 = vector.broadcast %16 : vector<1x128xf32> to vector<256x128xf32>
      %18 = arith.addf %15, %17 : vector<256x128xf32>
      %c0_16 = arith.constant 0 : index
      %c0_17 = arith.constant 0 : index
      %19 = vector.load %arg7[%c0_16, %c0_17] : memref<256x128xf32, #tpu.memory_space<vmem>>, vector<256x128xf32>
      tpu.vector_store %arg7[%c0_16, %c0_17], %18 {strides = array<i32>} : memref<256x128xf32, #tpu.memory_space<vmem>>, vector<256x128xf32>,
    } else {
    }
    return
  }
  func.func @transform_0(%arg0: i32, %arg1: i32, %arg2: i32) -> (i32, i32) {
    %c0_i32 = arith.constant 0 : i32
    return %arg0, %arg2 : i32, i32
  }
  func.func @transform_1(%arg0: i32, %arg1: i32, %arg2: i32) -> (i32, i32) {
    %c0_i32 = arith.constant 0 : i32
    return %arg2, %arg1 : i32, i32
  }
  func.func @transform_2(%arg0: i32, %arg1: i32, %arg2: i32) -> (i32, i32) {
    %c0_i32 = arith.constant 0 : i32
    %c0_i32_0 = arith.constant 0 : i32
    return %c0_i32, %arg1 : i32, i32
  }
  func.func @transform_3(%arg0: i32, %arg1: i32, %arg2: i32) -> (i32, i32) {
    %c0_i32 = arith.constant 0 : i32
    %c0_i32_0 = arith.constant 0 : i32
    return %c0_i32, %arg1 : i32, i32
  }
  func.func @transform_4(%arg0: i32, %arg1: i32, %arg2: i32) -> (i32, i32) {
    %c0_i32 = arith.constant 0 : i32
    return %arg0, %arg1 : i32, i32
  }
}

</mosaic_0001>

<bundles_post_ra>
// kernel: _lambda_.21
= control target key start
LH: loop header
LB: loop body
LE: loop exit
PB: predicated region body
PF: predicated region fallthrough
CT: control target
= control target key end

     0   :  { %9 = vsyncpa [#allocation4], 0  ;;  %s1980_s0 = inlined_call_operand.vmem [shape: bf16[512,128], index: 0, kind: input, shape index: {}]   ;;  %s1981_s1 = inlined_call_operand.hbm [shape: bf16[128,128], index: 1, kind: input, shape index: {}]   ;;  %s1982_s2 = inlined_call_operand.hbm [shape: f32[1,128], index: 2, kind: input, shape index: {}]   ;;  %s1983_s3 = inlined_call_operand.hbm [shape: f32[1,128], index: 3, kind: input, shape index: {}]   ;;  %s1984_s4 = inlined_call_operand.vmem [shape: bf16[512,128], index: 4, kind: output, shape index: {}]  }
   0x1   :  { %10 = vsyncpa [#allocation6], 0  ;;  %s1733_s15 = smov 0   ;;  %s1735_s16 = smov 0  }
   0x2   :  { %s1737_s17 = smov 0  }
   0x3 LB: > { %s1703_s18 = smov [#allocation5]   ;;  %s1216_s20 = sadd.s32 4294967295, %s1701_s17   ;;  %s1701_s17 = sphi %s1737_s17, %s16_s17   ;;  %s1697_s16 = sphi %s1735_s16, %s1997_s16   ;;  %s1693_s15 = sphi %s1733_s15, %s1996_s15  }
   0x4   : > { %s208_s19 = sshll.u32 %s1703_s18, 4  ;;  %p1218_p0 = scmp.ge.s32.totalorder %s1701_s17, 1  ;;  %s209_s19 = int_to_ptr.vmem [resolvable:$true] %s208_s19 }
   0x5   : > { %p176_p1 = scmp.lt.s32.totalorder %s1701_s17, 3  ;;  %p1751_p2 = scmp.eq.s32.totalorder %s1216_s20, 0 }
   0x6   : > { %s35_s23 = sadd.s32 1, %s1697_s16  ;;  %s1704_s26 = smov [#allocation3]  }
   0x7   : > { %s1988_s21 = scalar_select %p1751_p2, 1, 0 }
   0x8   : > { %p1755_p3 = pnand %p1218_p0, %p176_p1  ;;  %p1768_p6 = scmp.ge.s32.totalorder %s35_s23, 2 }
   0x9   : > { %s192_s27 = sshll.u32 %s1704_s26, 4  ;;  %s1587_s30 = scalar_lea.hbm %s1982_s2, 16  ;;  %s1772_s27 = int_to_ptr.vmem [resolvable:$true] %s192_s27 }
   0xa   : > { %s1989_s22 = scalar_select %p1755_p3, 1, 0 }
   0xb   : > { %p1518_p4 = pneg %p1755_p3  ;;  %p1588_p7 = scmp.ne.s32.totalorder %s1982_s2, %s1587_s30 }
   0xc   : > { %s1991_s25 = scalar_select %p1768_p6, 1, 0 }
   0xd   : > { %p1764_p5 = pnand %p1751_p2, %p1518_p4  ;;  %p1594_p11 = scmp.lt.u32.totalorder %s1587_s30, %s1982_s2 }
   0xf   : > { %p1782_p8 = pneg %p1764_p5 }
  0x11   : > { %p1590_p9 = pnand %p1782_p8, %p1588_p7 }
  0x13   : > { %p1591_p10 = pneg %p1590_p9 }
  0x15   : > { %p1596_p12 = pnand %p1594_p11, %p1591_p10 }
  0x17   : > { %1599 = shalt.err (!%p1596_p12)
}
  0x18   : > { %s1600_s10 = scalar_lea.vmem %s209_s19, 16  ;;  %s1607_s11 = scalar_lea.vmem %s209_s19, 32 }
  0x19   : > { %p1601_p13 = scmp.ne.s32.totalorder %s209_s19, %s1600_s10  ;;  %p1608_p4 = scmp.lt.s32.totalorder %s209_s19, %s209_s19 }
  0x1a   : > { %p1609_p2 = scmp.lt.s32.totalorder %s1607_s11, %s1600_s10 }
  0x1b   : > { %p1603_p0 = pnand %p1601_p13, %p1782_p8 }
  0x1c   : > { %p1610_p3 = por %p1609_p2, %p1608_p4 }
  0x1d   : > { %p1604_p1 = pneg %p1603_p0 }
  0x1f   : > { %p1611_p6 = pnand %p1610_p3, %p1604_p1 }
  0x21   : > { %1614 = shalt.err (!%p1611_p6)
}
  0x22   : > { %1524 = dma.hbm_to_vmem [thread:$0]  (!%p1764_p5), %s1982_s2, 16, %s209_s19, [#allocation6]  }
  0x23   : > { %p1993_p7 = scmp.ne.s32.totalorder %s1991_s25, 0  ;;  %s1615_s20 = scalar_lea.hbm %s1981_s1, 1024 }
  0x24   : > { %p1616_p2 = scmp.ne.s32.totalorder %s1981_s1, %s1615_s20  ;;  %p1622_p9 = scmp.lt.u32.totalorder %s1615_s20, %s1981_s1 }
  0x25   : > { %s1999_s23 = smov (%p1993_p7, %s35_s23), 0 }
  0x26   : > { %p1618_p3 = pnand %p1616_p2, %p1782_p8 }
  0x28   : > { %p1619_p6 = pneg %p1618_p3 }
  0x2a   : > { %p1624_p10 = pnand %p1622_p9, %p1619_p6 }
  0x2c   : > { %1627 = shalt.err (!%p1624_p10)
}
  0x2d   : > { %s1628_s19 = scalar_lea.vmem %s1772_s27, 1024  ;;  %p1636_p0 = scmp.lt.s32.totalorder %s1772_s27, %s1772_s27 }
  0x2e   : > { %p1629_p11 = scmp.ne.s32.totalorder %s1772_s27, %s1628_s19  ;;  %p1637_p1 = scmp.lt.s32.totalorder %s1628_s19, %s1628_s19 }
  0x30   : > { %p1631_p12 = pnand %p1629_p11, %p1782_p8  ;;  %p1638_p4 = por %p1637_p1, %p1636_p0 }
  0x32   : > { %p1632_p13 = pneg %p1631_p12 }
  0x34   : > { %p1639_p7 = pnand %p1638_p4, %p1632_p13 }
  0x36   : > { %1642 = shalt.err (!%p1639_p7)
}
  0x37   : > { %s1705_s25 = smov 64   ;;  %s1706_s5 = smov 4  }
  0x38   : > { %1521 = dma.hbm_to_vmem [thread:$0]  (!%p1764_p5), %s1981_s1, 1024, %s1772_s27, [#allocation4], %s1705_s25, %s1705_s25, %s1706_s5  }
  0x39   : > { %s1707_s9 = smov [#allocation7]   ;;  %s1643_s13 = scalar_lea.hbm %s1983_s3, 16 }
  0x3a   : > { %s221_s10 = sshll.u32 %s1707_s9, 4  ;;  %p1644_p2 = scmp.ne.s32.totalorder %s1983_s3, %s1643_s13  ;;  %s222_s10 = int_to_ptr.vmem [resolvable:$true] %s221_s10 }
  0x3b   : > { %p1650_p9 = scmp.lt.u32.totalorder %s1643_s13, %s1983_s3 }
  0x3c   : > { %p1646_p3 = pnand %p1644_p2, %p1782_p8 }
  0x3e   : > { %p1647_p6 = pneg %p1646_p3 }
  0x40   : > { %p1652_p10 = pnand %p1650_p9, %p1647_p6 }
  0x42   : > { %1655 = shalt.err (!%p1652_p10)
}
  0x43   : > { %s1656_s27 = scalar_lea.vmem %s222_s10, 16  ;;  %s1663_s28 = scalar_lea.vmem %s222_s10, 32 }
  0x44   : > { %p1657_p11 = scmp.ne.s32.totalorder %s222_s10, %s1656_s27  ;;  %p1664_p0 = scmp.lt.s32.totalorder %s222_s10, %s222_s10 }
  0x45   : > { %p1665_p1 = scmp.lt.s32.totalorder %s1663_s28, %s1656_s27 }
  0x46   : > { %p1659_p12 = pnand %p1657_p11, %p1782_p8 }
  0x47   : > { %p1666_p4 = por %p1665_p1, %p1664_p0 }
  0x48   : > { %p1660_p13 = pneg %p1659_p12 }
  0x4a   : > { %p1667_p7 = pnand %p1666_p4, %p1660_p13 }
  0x4c   : > { %1670 = shalt.err (!%p1667_p7)
}
  0x4d   : > { %1527 = dma.hbm_to_vmem [thread:$0]  (!%p1764_p5), %s1983_s3, 16, %s222_s10, [#allocation6]  }
  0x4e   : > { %p1994_p2 = scmp.ne.s32.totalorder %s1989_s22, 0 }
  0x4f   : > { %p1995_p3 = scmp.ne.s32.totalorder (!%p1994_p2), %s1988_s21, 0 }
  0x50   : > { %246 = sbr.rel (%p1994_p2) target bundleno = 372 (0x174), region = 36 }
  0x57   : > { %1684 = dma.done.wait (%p1995_p3), [#allocation4], 1024  }
  0x58   : > { %1686 = vsyncadd (%p1995_p3), [#allocation4], 4294966272 }
  0x59   : > { %1688 = dma.done.wait (%p1995_p3), [#allocation6], 32  }
  0x5a   : > { %1690 = vsyncadd (%p1995_p3), [#allocation6], 4294967264  ;;  %s1227_s24 = sshll.u32 %s1693_s15, 5  ;;  %v1563_v0 = vld [vmem:[#allocation3] sm:$0xff]   ;;  %v1564_v1 = vld [vmem:[#allocation3 + $0x8] sm:$0xff]  }
  0x5b   : > { %p287_p8 = scmp.lt.s32.totalorder %s1227_s24, 63  ;;  %1442 = vmatprep.subr.bf16.mxu0 %v1563_v0  ;;  %1490 = vmatprep.subr.bf16.mxu1 %v1563_v0  ;;  %v1565_v2 = vld [vmem:[#allocation3 + $0x10] sm:$0xff]   ;;  %v1566_v3 = vld [vmem:[#allocation3 + $0x18] sm:$0xff]   ;;  %v1567_v6 = vld [vmem:[#allocation3 + $0x20] sm:$0xff]  }
  0x5c   : > { %1443 = vmatpush3.bf16.msra.mxu0 %v1563_v0  ;;  %1498 = vmatpush3.bf16.msra.mxu1 %v1563_v0  ;;  %v1568_v7 = vld [vmem:[#allocation3 + $0x28] sm:$0xff]   ;;  %v1569_v8 = vld [vmem:[#allocation3 + $0x30] sm:$0xff]   ;;  %v1570_v9 = vld [vmem:[#allocation3 + $0x38] sm:$0xff]  }
  0x5d   : > { %s2001_s24 = smov (!%p287_p8, %s1227_s24), 63  ;;  %1444 = vmatprep.subr.bf16.mxu0 %v1564_v1  ;;  %1491 = vmatprep.subr.bf16.mxu1 %v1564_v1  ;;  %v1880_v24 = vld [vmem:[#allocation5] ss:$0 sm:$0xff]  ;;  %v1882_v26 = vld [vmem:[#allocation7] ss:$0 sm:$0xff] }
  0x5e   : > { %s1228_s22 = sshll.u32 %s2001_s24, 2 }
  0x5f   : > { %s1862_s15 = scalar_lea.vmem %s1980_s0, %s1228_s22  ;;  %s1905_s5 = scalar_lea.vmem %s1984_s4, %s1228_s22 }
  0x60   : > { %1445 = vmatpush3.bf16.msra.mxu0 %v1564_v1  ;;  %1499 = vmatpush3.bf16.msra.mxu1 %v1564_v1  ;;  %v1571_v4 = vld [vmem:[%s1862_s15] sm:$0xff]   ;;  %v1573_v10 = vld [vmem:[%s1862_s15 + $0x8] sm:$0xff]   ;;  %v1575_v12 = vld [vmem:[%s1862_s15 + $0x10] sm:$0xff]  }
  0x61   : > { %1446 = vmatprep.subr.bf16.mxu0 %v1565_v2  ;;  %1492 = vmatprep.subr.bf16.mxu1 %v1565_v2  ;;  %v1572_v5 = vld [vmem:[%s1862_s15 + $0x40] sm:$0xff]   ;;  %v1574_v11 = vld [vmem:[%s1862_s15 + $0x48] sm:$0xff]   ;;  %v1576_v13 = vld [vmem:[%s1862_s15 + $0x50] sm:$0xff]  }
  0x62   : > { %1458 = vmatprep.mubr.bf16.mxu0 %v1571_v4  ;;  %1474 = vmatprep.mubr.bf16.mxu1 %v1572_v5  ;;  %v1577_v14 = vld [vmem:[%s1862_s15 + $0x18] sm:$0xff]   ;;  %v1579_v16 = vld [vmem:[%s1862_s15 + $0x20] sm:$0xff]   ;;  %v1581_v18 = vld [vmem:[%s1862_s15 + $0x28] sm:$0xff]  }
  0x63   : > { %v1578_v15 = vld [vmem:[%s1862_s15 + $0x58] sm:$0xff]   ;;  %v1580_v17 = vld [vmem:[%s1862_s15 + $0x60] sm:$0xff]   ;;  %v1582_v19 = vld [vmem:[%s1862_s15 + $0x68] sm:$0xff]  }
  0x64   : > { %1447 = vmatpush3.bf16.msra.mxu0 %v1565_v2  ;;  %1500 = vmatpush3.bf16.msra.mxu1 %v1565_v2  ;;  %v1583_v20 = vld [vmem:[%s1862_s15 + $0x30] sm:$0xff]   ;;  %v1585_v22 = vld [vmem:[%s1862_s15 + $0x38] sm:$0xff]  }
  0x65   : > { %1448 = vmatprep.subr.bf16.mxu0 %v1566_v3  ;;  %1493 = vmatprep.subr.bf16.mxu1 %v1566_v3  ;;  %v1584_v21 = vld [vmem:[%s1862_s15 + $0x70] sm:$0xff]   ;;  %v1586_v23 = vld [vmem:[%s1862_s15 + $0x78] sm:$0xff]  }
  0x68   : > { %1449 = vmatpush3.bf16.msra.mxu0 %v1566_v3  ;;  %1501 = vmatpush3.bf16.msra.mxu1 %v1566_v3 }
  0x69   : > { %1450 = vmatprep.subr.bf16.mxu0 %v1567_v6  ;;  %1494 = vmatprep.subr.bf16.mxu1 %v1567_v6 }
  0x6c   : > { %1451 = vmatpush3.bf16.msra.mxu0 %v1567_v6  ;;  %1502 = vmatpush3.bf16.msra.mxu1 %v1567_v6 }
  0x6d   : > { %1452 = vmatprep.subr.bf16.mxu0 %v1568_v7  ;;  %1495 = vmatprep.subr.bf16.mxu1 %v1568_v7 }
  0x70   : > { %1453 = vmatpush3.bf16.msra.mxu0 %v1568_v7  ;;  %1503 = vmatpush3.bf16.msra.mxu1 %v1568_v7 }
  0x71   : > { %1454 = vmatprep.subr.bf16.mxu0 %v1569_v8  ;;  %1496 = vmatprep.subr.bf16.mxu1 %v1569_v8 }
  0x74   : > { %1455 = vmatpush3.bf16.msra.mxu0 %v1569_v8  ;;  %1504 = vmatpush3.bf16.msra.mxu1 %v1569_v8 }
  0x75   : > { %1456 = vmatprep.subr.bf16.mxu0 %v1570_v9  ;;  %1497 = vmatprep.subr.bf16.mxu1 %v1570_v9 }
  0x78   : > { %1457 = vmatpush3.bf16.msra.mxu0 %v1570_v9  ;;  %1505 = vmatpush3.bf16.msra.mxu1 %v1570_v9 }
  0x7b   : > { %1459 = vmatmul.mubr.bf16.vlgmr.msra.gmra.mrb[0].mxu0 %v1573_v10  ;;  %1475 = vmatmul.mubr.bf16.vlgmr.msra.gmra.mrb[0].mxu1 %v1574_v11 }
  0x7c   : > { %1462 = vmatprep.mubr.bf16.mxu0 %v1575_v12  ;;  %1478 = vmatprep.mubr.bf16.mxu1 %v1576_v13 }
  0x83   : > { %1463 = vmatmul.mubr.bf16.gmra.mrb[4].mxu0 %v1577_v14  ;;  %1479 = vmatmul.mubr.bf16.gmra.mrb[4].mxu1 %v1578_v15 }
  0x84   : > { %1466 = vmatprep.mubr.bf16.mxu0 %v1579_v16  ;;  %1482 = vmatprep.mubr.bf16.mxu1 %v1580_v17 }
  0x8b   : > { %1467 = vmatmul.mubr.bf16.gmra.mrb[8].mxu0 %v1581_v18  ;;  %1483 = vmatmul.mubr.bf16.gmra.mrb[8].mxu1 %v1582_v19 }
  0x8c   : > { %1470 = vmatprep.mubr.bf16.mxu0 %v1583_v20  ;;  %1486 = vmatprep.mubr.bf16.mxu1 %v1584_v21 }
  0x93   : > { %1471 = vmatmul.mubr.bf16.gmra.mrb[12].mxu0 %v1585_v22  ;;  %1487 = vmatmul.mubr.bf16.gmra.mrb[12].mxu1 %v1586_v23 }
 0x14e   : > { %v1460_v25 = vpop.f32.mrb[0].mxu0  ;;  %v1476_v27 = vpop.f32.mrb[0].mxu1 }
 0x14f   : > { %v835_v28 = vmul.f32 %v1460_v25, %v1880_v24  ;;  %v851_v29 = vmul.f32 %v1476_v27, %v1880_v24  ;;  %v600_v30 = vpop.f32.mrb[1].mxu0  ;;  %v664_v31 = vpop.f32.mrb[1].mxu1 }
 0x150   : > { %v833_v32 = vmul.f32 %v1880_v24, %v600_v30  ;;  %v849_v33 = vmul.f32 %v1880_v24, %v664_v31  ;;  %v1461_v34 = vpop.f32.mrb[2].mxu0  ;;  %v1477_v35 = vpop.f32.mrb[2].mxu1 }
 0x151   : > { %v874_v36 = vadd.f32 %v1882_v26, %v835_v28  ;;  %v890_v37 = vadd.f32 %v1882_v26, %v851_v29  ;;  %v836_v38 = vmul.f32 %v1461_v34, %v1880_v24  ;;  %v852_v39 = vmul.f32 %v1477_v35, %v1880_v24  ;;  %v603_v40 = vpop.f32.mrb[3].mxu0  ;;  %v667_v41 = vpop.f32.mrb[3].mxu1 }
 0x152   : > { %v872_v42 = vadd.f32 %v1882_v26, %v833_v32  ;;  %v888_v43 = vadd.f32 %v1882_v26, %v849_v33  ;;  %v834_v44 = vmul.f32 %v1880_v24, %v603_v40  ;;  %v850_v45 = vmul.f32 %v1880_v24, %v667_v41 }
 0x153   : > { %v875_v46 = vadd.f32 %v1882_v26, %v836_v38  ;;  %v891_v47 = vadd.f32 %v1882_v26, %v852_v39  ;;  %v906_v50 = vmax.f32 %v874_v36, 0.0  ;;  %v922_v51 = vmax.f32 %v890_v37, 0.0 }
 0x154   : > { %v873_v48 = vadd.f32 %v1882_v26, %v834_v44  ;;  %v889_v49 = vadd.f32 %v1882_v26, %v850_v45  ;;  %v904_v54 = vmax.f32 %v872_v42, 0.0  ;;  %v920_v55 = vmax.f32 %v888_v43, 0.0 }
 0x155   : > { %v907_v52 = vmax.f32 %v875_v46, 0.0  ;;  %v923_v53 = vmax.f32 %v891_v47, 0.0 }
 0x156   : > { %v905_v56 = vmax.f32 %v873_v48, 0.0  ;;  %v921_v57 = vmax.f32 %v889_v49, 0.0  ;;  %v1464_v58 = vpop.f32.mrb[4].mxu0  ;;  %v1480_v59 = vpop.f32.mrb[4].mxu1 }
 0x157   : > { %v1331_v60 = vpack.c.bf16 %v907_v52, %v906_v50  ;;  %v1371_v61 = vpack.c.bf16 %v923_v53, %v922_v51  ;;  %v839_v62 = vmul.f32 %v1464_v58, %v1880_v24  ;;  %v855_v63 = vmul.f32 %v1480_v59, %v1880_v24  ;;  %v616_v0 = vpop.f32.mrb[5].mxu0  ;;  %v680_v1 = vpop.f32.mrb[5].mxu1 }
 0x158   : > { %v1326_v2 = vpack.c.bf16 %v905_v56, %v904_v54  ;;  %v1366_v3 = vpack.c.bf16 %v921_v57, %v920_v55  ;;  %v837_v4 = vmul.f32 %v1880_v24, %v616_v0  ;;  %v853_v5 = vmul.f32 %v1880_v24, %v680_v1  ;;  %v1465_v6 = vpop.f32.mrb[6].mxu0  ;;  %v1481_v7 = vpop.f32.mrb[6].mxu1 }
 0x159   : > { %1403 = vst [vmem:[%s1905_s5 + $0x8] sm:$0xff] %v1331_v60   ;;  %1411 = vst [vmem:[%s1905_s5 + $0x48] sm:$0xff] %v1371_v61   ;;  %v878_v8 = vadd.f32 %v1882_v26, %v839_v62  ;;  %v894_v9 = vadd.f32 %v1882_v26, %v855_v63  ;;  %v840_v10 = vmul.f32 %v1465_v6, %v1880_v24  ;;  %v619_v12 = vpop.f32.mrb[7].mxu0  ;;  %v683_v13 = vpop.f32.mrb[7].mxu1 }
 0x15a   : > { %v856_v11 = vmul.f32 %v1481_v7, %v1880_v24  ;;  %1327 = vst [vmem:[%s1905_s5] sm:$0xff] %v1326_v2   ;;  %1410 = vst [vmem:[%s1905_s5 + $0x40] sm:$0xff] %v1366_v3   ;;  %v876_v14 = vadd.f32 %v1882_v26, %v837_v4  ;;  %v892_v15 = vadd.f32 %v1882_v26, %v853_v5 }
 0x15b   : > { %v838_v16 = vmul.f32 %v1880_v24, %v619_v12  ;;  %v854_v17 = vmul.f32 %v1880_v24, %v683_v13  ;;  %v879_v18 = vadd.f32 %v1882_v26, %v840_v10  ;;  %v910_v22 = vmax.f32 %v878_v8, 0.0 }
 0x15c   : > { %v895_v19 = vadd.f32 %v1882_v26, %v856_v11  ;;  %v926_v23 = vmax.f32 %v894_v9, 0.0  ;;  %v908_v28 = vmax.f32 %v876_v14, 0.0  ;;  %v924_v29 = vmax.f32 %v892_v15, 0.0 }
 0x15d   : > { %v877_v20 = vadd.f32 %v1882_v26, %v838_v16  ;;  %v893_v21 = vadd.f32 %v1882_v26, %v854_v17  ;;  %v911_v25 = vmax.f32 %v879_v18, 0.0 }
 0x15e   : > { %v927_v27 = vmax.f32 %v895_v19, 0.0  ;;  %v1468_v32 = vpop.f32.mrb[8].mxu0  ;;  %v1484_v33 = vpop.f32.mrb[8].mxu1 }
 0x15f   : > { %v909_v30 = vmax.f32 %v877_v20, 0.0  ;;  %v925_v31 = vmax.f32 %v893_v21, 0.0  ;;  %v1341_v34 = vpack.c.bf16 %v911_v25, %v910_v22  ;;  %v843_v36 = vmul.f32 %v1468_v32, %v1880_v24  ;;  %v632_v38 = vpop.f32.mrb[9].mxu0  ;;  %v696_v39 = vpop.f32.mrb[9].mxu1 }
 0x160   : > { %v1381_v35 = vpack.c.bf16 %v927_v27, %v926_v23  ;;  %v859_v37 = vmul.f32 %v1484_v33, %v1880_v24  ;;  %v841_v42 = vmul.f32 %v1880_v24, %v632_v38  ;;  %v857_v43 = vmul.f32 %v1880_v24, %v696_v39  ;;  %v1469_v44 = vpop.f32.mrb[10].mxu0  ;;  %v1485_v45 = vpop.f32.mrb[10].mxu1 }
 0x161   : > { %v1336_v40 = vpack.c.bf16 %v909_v30, %v908_v28  ;;  %v1376_v41 = vpack.c.bf16 %v925_v31, %v924_v29  ;;  %1405 = vst [vmem:[%s1905_s5 + $0x18] sm:$0xff] %v1341_v34   ;;  %v882_v46 = vadd.f32 %v1882_v26, %v843_v36  ;;  %v844_v48 = vmul.f32 %v1469_v44, %v1880_v24  ;;  %v635_v50 = vpop.f32.mrb[11].mxu0  ;;  %v699_v51 = vpop.f32.mrb[11].mxu1 }
 0x162   : > { %1413 = vst [vmem:[%s1905_s5 + $0x58] sm:$0xff] %v1381_v35   ;;  %v898_v47 = vadd.f32 %v1882_v26, %v859_v37  ;;  %v860_v49 = vmul.f32 %v1485_v45, %v1880_v24  ;;  %v880_v52 = vadd.f32 %v1882_v26, %v841_v42  ;;  %v896_v53 = vadd.f32 %v1882_v26, %v857_v43 }
 0x163   : > { %1404 = vst [vmem:[%s1905_s5 + $0x10] sm:$0xff] %v1336_v40   ;;  %1412 = vst [vmem:[%s1905_s5 + $0x50] sm:$0xff] %v1376_v41   ;;  %v842_v54 = vmul.f32 %v1880_v24, %v635_v50  ;;  %v858_v55 = vmul.f32 %v1880_v24, %v699_v51  ;;  %v883_v56 = vadd.f32 %v1882_v26, %v844_v48  ;;  %v914_v60 = vmax.f32 %v882_v46, 0.0 }
 0x164   : > { %v899_v57 = vadd.f32 %v1882_v26, %v860_v49  ;;  %v930_v61 = vmax.f32 %v898_v47, 0.0  ;;  %v912_v0 = vmax.f32 %v880_v52, 0.0  ;;  %v928_v1 = vmax.f32 %v896_v53, 0.0 }
 0x165   : > { %v881_v58 = vadd.f32 %v1882_v26, %v842_v54  ;;  %v897_v59 = vadd.f32 %v1882_v26, %v858_v55  ;;  %v915_v62 = vmax.f32 %v883_v56, 0.0 }
 0x166   : > { %v931_v63 = vmax.f32 %v899_v57, 0.0  ;;  %v1472_v4 = vpop.f32.mrb[12].mxu0  ;;  %v1488_v5 = vpop.f32.mrb[12].mxu1 }
 0x167   : > { %v913_v2 = vmax.f32 %v881_v58, 0.0  ;;  %v929_v3 = vmax.f32 %v897_v59, 0.0  ;;  %v1351_v6 = vpack.c.bf16 %v915_v62, %v914_v60  ;;  %v847_v8 = vmul.f32 %v1472_v4, %v1880_v24  ;;  %v648_v10 = vpop.f32.mrb[13].mxu0  ;;  %v712_v11 = vpop.f32.mrb[13].mxu1 }
 0x168   : > { %v1391_v7 = vpack.c.bf16 %v931_v63, %v930_v61  ;;  %v863_v9 = vmul.f32 %v1488_v5, %v1880_v24  ;;  %v845_v14 = vmul.f32 %v1880_v24, %v648_v10  ;;  %v861_v15 = vmul.f32 %v1880_v24, %v712_v11  ;;  %v1473_v16 = vpop.f32.mrb[14].mxu0  ;;  %v1489_v17 = vpop.f32.mrb[14].mxu1 }
 0x169   : > { %v1346_v12 = vpack.c.bf16 %v913_v2, %v912_v0  ;;  %v1386_v13 = vpack.c.bf16 %v929_v3, %v928_v1  ;;  %1407 = vst [vmem:[%s1905_s5 + $0x28] sm:$0xff] %v1351_v6   ;;  %v886_v18 = vadd.f32 %v1882_v26, %v847_v8  ;;  %v848_v20 = vmul.f32 %v1473_v16, %v1880_v24  ;;  %v651_v22 = vpop.f32.mrb[15].mxu0  ;;  %v715_v23 = vpop.f32.mrb[15].mxu1 }
 0x16a   : > { %1415 = vst [vmem:[%s1905_s5 + $0x68] sm:$0xff] %v1391_v7   ;;  %v902_v19 = vadd.f32 %v1882_v26, %v863_v9  ;;  %v864_v21 = vmul.f32 %v1489_v17, %v1880_v24  ;;  %v884_v25 = vadd.f32 %v1882_v26, %v845_v14  ;;  %v900_v27 = vadd.f32 %v1882_v26, %v861_v15 }
 0x16b   : > { %1406 = vst [vmem:[%s1905_s5 + $0x20] sm:$0xff] %v1346_v12   ;;  %1414 = vst [vmem:[%s1905_s5 + $0x60] sm:$0xff] %v1386_v13   ;;  %v846_v28 = vmul.f32 %v1880_v24, %v651_v22  ;;  %v862_v29 = vmul.f32 %v1880_v24, %v715_v23  ;;  %v887_v30 = vadd.f32 %v1882_v26, %v848_v20  ;;  %v918_v34 = vmax.f32 %v886_v18, 0.0 }
 0x16c   : > { %v903_v31 = vadd.f32 %v1882_v26, %v864_v21  ;;  %v934_v35 = vmax.f32 %v902_v19, 0.0  ;;  %v916_v38 = vmax.f32 %v884_v25, 0.0  ;;  %v932_v39 = vmax.f32 %v900_v27, 0.0 }
 0x16d   : > { %v885_v32 = vadd.f32 %v1882_v26, %v846_v28  ;;  %v901_v33 = vadd.f32 %v1882_v26, %v862_v29  ;;  %v919_v36 = vmax.f32 %v887_v30, 0.0 }
 0x16e   : > { %v935_v37 = vmax.f32 %v903_v31, 0.0 }
 0x16f   : > { %v917_v40 = vmax.f32 %v885_v32, 0.0  ;;  %v933_v24 = vmax.f32 %v901_v33, 0.0  ;;  %v1361_v41 = vpack.c.bf16 %v919_v36, %v918_v34 }
 0x170   : > { %v1401_v42 = vpack.c.bf16 %v935_v37, %v934_v35 }
 0x171   : > { %v1356_v43 = vpack.c.bf16 %v917_v40, %v916_v38  ;;  %v1396_v44 = vpack.c.bf16 %v933_v24, %v932_v39  ;;  %1409 = vst [vmem:[%s1905_s5 + $0x38] sm:$0xff] %v1361_v41  }
 0x172   : > { %1417 = vst [vmem:[%s1905_s5 + $0x78] sm:$0xff] %v1401_v42  }
 0x173   : > { %1408 = vst [vmem:[%s1905_s5 + $0x30] sm:$0xff] %v1356_v43   ;;  %1416 = vst [vmem:[%s1905_s5 + $0x70] sm:$0xff] %v1396_v44  }
 0x174 PF: > { %s16_s17 = sadd.s32 1, %s1701_s17   ;;  %s1996_s15 = smov %s1697_s16 }
 0x175   : > { %p13_p5 = scmp.ge.s32.totalorder %s16_s17, 4   ;;  %s1997_s16 = smov %s1999_s23 }
 0x177   :  { %15 = sbr.rel (!%p13_p5) target bundleno = 3 (0x3), region = 90 }
 0x17e   :  { %1124 = vsyncpa [#allocation4], 1 }
 0x17f   :  { %1126 = vsyncpa [#allocation4 + $0x1], 1 }
 0x180   :  { %1127 = vsyncpa [#allocation6], 1 }

// kernel: _lambda_.22
= control target key start
LH: loop header
LB: loop body
LE: loop exit
PB: predicated region body
PF: predicated region fallthrough
CT: control target
= control target key end

     0   :  { %s914_s15 = smov 0   ;;  %s916_s16 = smov 0   ;;  %s990_s0 = inlined_call_operand.vmem [shape: bf16[128,128], index: 0, kind: input, shape index: {}]   ;;  %s991_s1 = inlined_call_operand.vmem [shape: bf16[128,128], index: 1, kind: input, shape index: {}]   ;;  %s992_s2 = inlined_call_operand.vmem [shape: f32[1,128], index: 2, kind: input, shape index: {}]   ;;  %s993_s3 = inlined_call_operand.vmem [shape: f32[1,128], index: 3, kind: input, shape index: {}]   ;;  %s994_s4 = inlined_call_operand.vmem [shape: bf16[128,128], index: 4, kind: output, shape index: {}]  }
   0x1   :  { %s918_s17 = smov 0  }
   0x2 LB: > { %s33_s18 = sadd.s32 1, %s883_s16  ;;  %p717_p0 = scmp.ge.s32.totalorder %s887_s17, 1  ;;  %s887_s17 = sphi %s918_s17, %s14_s17   ;;  %s883_s16 = sphi %s916_s16, %s996_s16   ;;  %s879_s15 = sphi %s914_s15, %s995_s15  }
   0x3   : > { %p35_p1 = scmp.ge.s32.totalorder %s33_s18, 2  ;;  %p221_p2 = scmp.lt.s32.totalorder %s887_s17, 3 }
   0x5   : > { %s998_s18 = smov (%p35_p1, %s33_s18), 0  ;;  %p222_p3 = pnand %p717_p0, %p221_p2 }
   0x6   : > { %v853_v0 = vld [vmem:[%s991_s1] sm:$0xff] (!%p222_p3)   ;;  %s718_s21 = sshll.u32 (!%p222_p3), %s879_s15, 3  ;;  %v854_v1 = vld [vmem:[%s991_s1 + $0x8] sm:$0xff] (!%p222_p3)   ;;  %v855_v2 = vld [vmem:[%s991_s1 + $0x10] sm:$0xff] (!%p222_p3)  }
   0x7   : > { %225 = sbr.rel (%p222_p3) target bundleno = 263 (0x107), region = 36  ;;  %p268_p4 = scmp.lt.s32.totalorder (!%p222_p3), %s718_s21, 15  ;;  %789 = vmatprep.subr.bf16.mxu0 (!%p222_p3), %v853_v0  ;;  %813 = vmatprep.subr.bf16.mxu1 (!%p222_p3), %v853_v0  ;;  %v856_v3 = vld [vmem:[%s991_s1 + $0x18] sm:$0xff] (!%p222_p3)   ;;  %v857_v6 = vld [vmem:[%s991_s1 + $0x20] sm:$0xff] (!%p222_p3)   ;;  %v858_v7 = vld [vmem:[%s991_s1 + $0x28] sm:$0xff] (!%p222_p3)  }
   0x8   : > { %790 = vmatpush3.bf16.msra.mxu0 (!%p222_p3), %v853_v0  ;;  %821 = vmatpush3.bf16.msra.mxu1 (!%p222_p3), %v853_v0  ;;  %v859_v8 = vld [vmem:[%s991_s1 + $0x30] sm:$0xff] (!%p222_p3)   ;;  %v860_v9 = vld [vmem:[%s991_s1 + $0x38] sm:$0xff] (!%p222_p3)   ;;  %v734_v12 = vld [vmem:[%s992_s2] ss:$0 sm:$0xff] (!%p222_p3) }
   0x9   : > { %791 = vmatprep.subr.bf16.mxu0 (!%p222_p3), %v854_v1  ;;  %814 = vmatprep.subr.bf16.mxu1 (!%p222_p3), %v854_v1  ;;  %v735_v14 = vld [vmem:[%s993_s3] ss:$0 sm:$0xff] (!%p222_p3) }
   0xc   : > { %792 = vmatpush3.bf16.msra.mxu0 (!%p222_p3), %v854_v1  ;;  %822 = vmatpush3.bf16.msra.mxu1 (!%p222_p3), %v854_v1 }
   0xd   : > { %793 = vmatprep.subr.bf16.mxu0 (!%p222_p3), %v855_v2  ;;  %815 = vmatprep.subr.bf16.mxu1 (!%p222_p3), %v855_v2 }
   0xe   : > { %s1000_s21 = smov (!%p268_p4, %s718_s21), 15 }
   0xf   : > { %s719_s26 = sshll.u32 %s1000_s21, 2 }
  0x10   : > { %s949_s29 = scalar_lea.vmem %s990_s0, %s719_s26  ;;  %794 = vmatpush3.bf16.msra.mxu0 %v855_v2  ;;  %823 = vmatpush3.bf16.msra.mxu1 %v855_v2  ;;  %s298_s24 = scalar_lea.vmem %s994_s4, %s719_s26 }
  0x11   : > { %v861_v4 = vld [vmem:[%s949_s29] sm:$0xff]   ;;  %v862_v5 = vld [vmem:[%s949_s29 + $0x10] sm:$0xff]   ;;  %795 = vmatprep.subr.bf16.mxu0 %v856_v3  ;;  %816 = vmatprep.subr.bf16.mxu1 %v856_v3  ;;  %v863_v10 = vld [vmem:[%s949_s29 + $0x8] sm:$0xff]  }
  0x12   : > { %805 = vmatprep.mubr.bf16.mxu0 %v861_v4  ;;  %809 = vmatprep.mubr.bf16.mxu1 %v862_v5  ;;  %v864_v11 = vld [vmem:[%s949_s29 + $0x18] sm:$0xff]  }
  0x14   : > { %796 = vmatpush3.bf16.msra.mxu0 %v856_v3  ;;  %824 = vmatpush3.bf16.msra.mxu1 %v856_v3 }
  0x15   : > { %797 = vmatprep.subr.bf16.mxu0 %v857_v6  ;;  %817 = vmatprep.subr.bf16.mxu1 %v857_v6 }
  0x18   : > { %798 = vmatpush3.bf16.msra.mxu0 %v857_v6  ;;  %825 = vmatpush3.bf16.msra.mxu1 %v857_v6 }
  0x19   : > { %799 = vmatprep.subr.bf16.mxu0 %v858_v7  ;;  %818 = vmatprep.subr.bf16.mxu1 %v858_v7 }
  0x1c   : > { %800 = vmatpush3.bf16.msra.mxu0 %v858_v7  ;;  %826 = vmatpush3.bf16.msra.mxu1 %v858_v7 }
  0x1d   : > { %801 = vmatprep.subr.bf16.mxu0 %v859_v8  ;;  %819 = vmatprep.subr.bf16.mxu1 %v859_v8 }
  0x20   : > { %802 = vmatpush3.bf16.msra.mxu0 %v859_v8  ;;  %827 = vmatpush3.bf16.msra.mxu1 %v859_v8 }
  0x21   : > { %803 = vmatprep.subr.bf16.mxu0 %v860_v9  ;;  %820 = vmatprep.subr.bf16.mxu1 %v860_v9 }
  0x24   : > { %804 = vmatpush3.bf16.msra.mxu0 %v860_v9  ;;  %828 = vmatpush3.bf16.msra.mxu1 %v860_v9 }
  0x27   : > { %806 = vmatmul.mubr.bf16.vlgmr.msra.gmra.mrb[0].mxu0 %v863_v10  ;;  %810 = vmatmul.mubr.bf16.vlgmr.msra.gmra.mrb[0].mxu1 %v864_v11 }
  0xfa   : > { %v807_v13 = vpop.f32.mrb[0].mxu0  ;;  %v811_v15 = vpop.f32.mrb[0].mxu1 }
  0xfb   : > { %v518_v16 = vmul.f32 %v807_v13, %v734_v12  ;;  %v522_v17 = vmul.f32 %v811_v15, %v734_v12  ;;  %v451_v18 = vpop.f32.mrb[1].mxu0  ;;  %v467_v19 = vpop.f32.mrb[1].mxu1 }
  0xfc   : > { %v516_v20 = vmul.f32 %v734_v12, %v451_v18  ;;  %v520_v21 = vmul.f32 %v734_v12, %v467_v19  ;;  %v808_v22 = vpop.f32.mrb[2].mxu0  ;;  %v812_v23 = vpop.f32.mrb[2].mxu1 }
  0xfd   : > { %v533_v24 = vadd.f32 %v735_v14, %v518_v16  ;;  %v537_v25 = vadd.f32 %v735_v14, %v522_v17  ;;  %v519_v26 = vmul.f32 %v808_v22, %v734_v12  ;;  %v523_v27 = vmul.f32 %v812_v23, %v734_v12  ;;  %v454_v28 = vpop.f32.mrb[3].mxu0  ;;  %v470_v29 = vpop.f32.mrb[3].mxu1 }
  0xfe   : > { %v531_v30 = vadd.f32 %v735_v14, %v516_v20  ;;  %v535_v31 = vadd.f32 %v735_v14, %v520_v21  ;;  %v517_v32 = vmul.f32 %v734_v12, %v454_v28  ;;  %v521_v33 = vmul.f32 %v734_v12, %v470_v29 }
  0xff   : > { %v534_v34 = vadd.f32 %v735_v14, %v519_v26  ;;  %v538_v35 = vadd.f32 %v735_v14, %v523_v27  ;;  %v541_v38 = vmax.f32 %v533_v24, 0.0  ;;  %v545_v39 = vmax.f32 %v537_v25, 0.0 }
 0x100   : > { %v532_v36 = vadd.f32 %v735_v14, %v517_v32  ;;  %v536_v37 = vadd.f32 %v735_v14, %v521_v33  ;;  %v539_v42 = vmax.f32 %v531_v30, 0.0  ;;  %v543_v43 = vmax.f32 %v535_v31, 0.0 }
 0x101   : > { %v542_v40 = vmax.f32 %v534_v34, 0.0  ;;  %v546_v41 = vmax.f32 %v538_v35, 0.0 }
 0x102   : > { %v540_v44 = vmax.f32 %v532_v36, 0.0  ;;  %v544_v45 = vmax.f32 %v536_v37, 0.0 }
 0x103   : > { %v762_v46 = vpack.c.bf16 %v542_v40, %v541_v38  ;;  %v772_v47 = vpack.c.bf16 %v546_v41, %v545_v39 }
 0x104   : > { %v757_v48 = vpack.c.bf16 %v540_v44, %v539_v42  ;;  %v767_v49 = vpack.c.bf16 %v544_v45, %v543_v43 }
 0x105   : > { %774 = vst [vmem:[%s298_s24 + $0x8] sm:$0xff] %v762_v46   ;;  %776 = vst [vmem:[%s298_s24 + $0x18] sm:$0xff] %v772_v47  }
 0x106   : > { %758 = vst [vmem:[%s298_s24] sm:$0xff] %v757_v48   ;;  %775 = vst [vmem:[%s298_s24 + $0x10] sm:$0xff] %v767_v49  }
 0x107 PF: > { %s14_s17 = sadd.s32 1, %s887_s17   ;;  %s995_s15 = smov %s883_s16 }
 0x108   : > { %p11_p5 = scmp.ge.s32.totalorder %s14_s17, 4   ;;  %s996_s16 = smov %s998_s18 }
 0x10a   :  { %13 = sbr.rel (!%p11_p5) target bundleno = 2 (0x2), region = 83 }

// kernel: _lambda_.23
= control target key start
LH: loop header
LB: loop body
LE: loop exit
PB: predicated region body
PF: predicated region fallthrough
CT: control target
= control target key end

     0   :  { %s822_s15 = smov 0   ;;  %s824_s16 = smov 0   ;;  %s913_s0 = inlined_call_operand.vmem [shape: bf16[32,256], index: 0, kind: input, shape index: {}]   ;;  %s914_s1 = inlined_call_operand.vmem [shape: bf16[256,128], index: 1, kind: input, shape index: {}]   ;;  %s915_s2 = inlined_call_operand.vmem [shape: f32[1,128], index: 2, kind: input, shape index: {}]   ;;  %s916_s3 = inlined_call_operand.vmem [shape: f32[1,128], index: 3, kind: input, shape index: {}]   ;;  %s917_s4 = inlined_call_operand.vmem [shape: bf16[32,128], index: 4, kind: output, shape index: {}]  }
   0x1   :  { %s826_s17 = smov 0  }
   0x2 LB: > { %s33_s18 = sadd.s32 1, %s791_s16  ;;  %p670_p0 = scmp.ge.s32.totalorder %s795_s17, 1  ;;  %s795_s17 = sphi %s826_s17, %s14_s17   ;;  %s791_s16 = sphi %s824_s16, %s919_s16   ;;  %s787_s15 = sphi %s822_s15, %s918_s15  }
   0x3   : > { %p35_p1 = scmp.ge.s32.totalorder %s33_s18, 2  ;;  %p224_p2 = scmp.lt.s32.totalorder %s795_s17, 3 }
   0x5   : > { %s921_s18 = smov (%p35_p1, %s33_s18), 0  ;;  %p225_p3 = pnand %p670_p0, %p224_p2 }
   0x6   : > { %v754_v0 = vld [vmem:[%s914_s1 + $0x40] sm:$0xff] (!%p225_p3)   ;;  %s671_s21 = sshll.u32 (!%p225_p3), %s787_s15, 1  ;;  %v756_v2 = vld [vmem:[%s914_s1 + $0x48] sm:$0xff] (!%p225_p3)   ;;  %v758_v4 = vld [vmem:[%s914_s1 + $0x50] sm:$0xff] (!%p225_p3)  }
   0x7   : > { %228 = sbr.rel (%p225_p3) target bundleno = 265 (0x109), region = 36  ;;  %v755_v1 = vld [vmem:[%s914_s1] sm:$0xff] (!%p225_p3)   ;;  %708 = vmatprep.subr.bf16.mxu0 (!%p225_p3), %v754_v0  ;;  %v757_v3 = vld [vmem:[%s914_s1 + $0x8] sm:$0xff] (!%p225_p3)   ;;  %p274_p4 = scmp.lt.s32.totalorder (!%p225_p3), %s671_s21, 3  ;;  %v759_v5 = vld [vmem:[%s914_s1 + $0x10] sm:$0xff] (!%p225_p3)  }
   0x8   : > { %709 = vmatpush3.bf16.msra.mxu0 (!%p225_p3), %v755_v1  ;;  %v760_v6 = vld [vmem:[%s914_s1 + $0x58] sm:$0xff] (!%p225_p3)   ;;  %v762_v8 = vld [vmem:[%s914_s1 + $0x60] sm:$0xff] (!%p225_p3)   ;;  %v764_v10 = vld [vmem:[%s914_s1 + $0x68] sm:$0xff] (!%p225_p3)  }
   0x9   : > { %710 = vmatprep.subr.bf16.mxu0 (!%p225_p3), %v756_v2  ;;  %v761_v7 = vld [vmem:[%s914_s1 + $0x18] sm:$0xff] (!%p225_p3)   ;;  %v763_v9 = vld [vmem:[%s914_s1 + $0x20] sm:$0xff] (!%p225_p3)   ;;  %v765_v12 = vld [vmem:[%s914_s1 + $0x28] sm:$0xff] (!%p225_p3)  }
   0xa   : > { %v766_v13 = vld [vmem:[%s914_s1 + $0x70] sm:$0xff] (!%p225_p3)   ;;  %v768_v15 = vld [vmem:[%s914_s1 + $0x78] sm:$0xff] (!%p225_p3)   ;;  %v694_v20 = vld [vmem:[%s915_s2] ss:$0 sm:$0xff] (!%p225_p3) }
   0xb   : > { %v767_v14 = vld [vmem:[%s914_s1 + $0x30] sm:$0xff] (!%p225_p3)   ;;  %v769_v16 = vld [vmem:[%s914_s1 + $0x38] sm:$0xff] (!%p225_p3)   ;;  %v695_v23 = vld [vmem:[%s916_s3] ss:$0 sm:$0xff] (!%p225_p3) }
   0xc   : > { %711 = vmatpush3.bf16.msra.mxu0 (!%p225_p3), %v757_v3 }
   0xd   : > { %712 = vmatprep.subr.bf16.mxu0 (!%p225_p3), %v758_v4 }
   0xe   : > { %s923_s21 = smov (!%p274_p4, %s671_s21), 3 }
   0xf   : > { %s700_s10 = sshll.u32 %s923_s21, 3  ;;  %s675_s12 = sshll.u32 %s923_s21, 2 }
  0x10   : > { %713 = vmatpush3.bf16.msra.mxu0 %v759_v5  ;;  %s281_s15 = scalar_lea.vmem %s913_s0, %s700_s10 }
  0x11   : > { %714 = vmatprep.subr.bf16.mxu0 %v760_v6  ;;  %v772_v11 = vld [vmem:[%s281_s15 + $0x4] ss:$8 sps:$4 sm:$0xff]   ;;  %v770_v17 = vld [vmem:[%s281_s15] ss:$8 sps:$4 sm:$0xff]   ;;  %s306_s15 = scalar_lea.vmem %s917_s4, %s675_s12 }
  0x12   : > { %489 = vmatprep.mubr.bf16.mxu0 %v772_v11 }
  0x14   : > { %715 = vmatpush3.bf16.msra.mxu0 %v761_v7 }
  0x15   : > { %716 = vmatprep.subr.bf16.mxu0 %v762_v8 }
  0x18   : > { %717 = vmatpush3.bf16.msra.mxu0 %v763_v9 }
  0x19   : > { %718 = vmatprep.subr.bf16.mxu0 %v764_v10 }
  0x1c   : > { %719 = vmatpush3.bf16.msra.mxu0 %v765_v12 }
  0x1d   : > { %720 = vmatprep.subr.bf16.mxu0 %v766_v13 }
  0x20   : > { %721 = vmatpush3.bf16.msra.mxu0 %v767_v14 }
  0x21   : > { %722 = vmatprep.subr.bf16.mxu0 %v768_v15 }
  0x24   : > { %723 = vmatpush3.bf16.msra.mxu0 %v769_v16 }
  0x27   : > { %490 = vmatmul.mubr.bf16.vlgmr.msra.gmra.mrb[0].mxu0 %v770_v17 }
  0xfa   : > { %v724_v18 = vpop.f32.mrb[0].mxu0 }
  0xfb   : > { %v725_v19 = vpop.f32.mrb[1].mxu0 }
  0xfc   : > { %v726_v21 = vadd.f32 %v725_v19, %v724_v18  ;;  %v727_v22 = vpop.f32.mrb[2].mxu0 }
  0xfd   : > { %v728_v24 = vpop.f32.mrb[3].mxu0 }
  0xfe   : > { %v514_v25 = vmul.f32 %v726_v21, %v694_v20  ;;  %v729_v26 = vadd.f32 %v728_v24, %v727_v22 }
 0x100   : > { %v523_v27 = vadd.f32 %v695_v23, %v514_v25  ;;  %v515_v28 = vmul.f32 %v729_v26, %v694_v20 }
 0x102   : > { %v524_v29 = vadd.f32 %v695_v23, %v515_v28  ;;  %v525_v30 = vmax.f32 %v523_v27, 0.0 }
 0x104   : > { %v526_v31 = vmax.f32 %v524_v29, 0.0 }
 0x106   : > { %v706_v32 = vpack.c.bf16 %v526_v31, %v525_v30 }
 0x108   : > { %707 = vst [vmem:[%s306_s15] sm:$0xff] %v706_v32  }
 0x109 PF: > { %s14_s17 = sadd.s32 1, %s795_s17   ;;  %s918_s15 = smov %s791_s16 }
 0x10a   : > { %p11_p5 = scmp.ge.s32.totalorder %s14_s17, 4   ;;  %s919_s16 = smov %s921_s18 }
 0x10c   :  { %13 = sbr.rel (!%p11_p5) target bundleno = 2 (0x2), region = 83 }

// kernel: _lambda_.24
= control target key start
LH: loop header
LB: loop body
LE: loop exit
PB: predicated region body
PF: predicated region fallthrough
CT: control target
= control target key end

     0   :  { %s1060_s15 = smov 0   ;;  %s1062_s16 = smov 0   ;;  %s1192_s0 = inlined_call_operand.vmem [shape: bf16[24,128], index: 0, kind: input, shape index: {}]   ;;  %s1193_s1 = inlined_call_operand.vmem [shape: bf16[128,128], index: 1, kind: input, shape index: {}]   ;;  %s1194_s2 = inlined_call_operand.vmem [shape: f32[1,128], index: 2, kind: input, shape index: {}]   ;;  %s1195_s3 = inlined_call_operand.vmem [shape: f32[1,128], index: 3, kind: input, shape index: {}]   ;;  %s1196_s4 = inlined_call_operand.vmem [shape: f32[24,128], index: 4, kind: output, shape index: {}]  }
   0x1   :  { %s1064_s17 = smov 0   ;;  %s1066_s18 = smov 0  }
   0x2   :  { %s1068_s19 = smov 0  }
   0x3 LB: > { %s743_s20 = sadd.s32 4294967295, %s999_s19   ;;  %s33_s21 = sadd.s32 1, %s995_s18  ;;  %s999_s19 = sphi %s1068_s19, %s14_s19   ;;  %s995_s18 = sphi %s1066_s18, %s1201_s18   ;;  %s991_s17 = sphi %s1064_s17, %s1200_s17   ;;  %s987_s16 = sphi %s1062_s16, %s1199_s16   ;;  %s983_s15 = sphi %s1060_s15, %s1198_s15  }
   0x4   : > { %p35_p0 = scmp.ge.s32.totalorder %s33_s21, 2  ;;  %s150_s22 = sadd.s32 1, %s987_s16 }
   0x5   : > { %p160_p1 = scmp.ne.s32.totalorder %s987_s16, %s983_s15  ;;  %p161_p2 = scmp.eq.s32.totalorder %s743_s20, 1 }
   0x6   : > { %s1203_s21 = smov (%p35_p0, %s33_s21), 0  ;;  %p750_p4 = scmp.ge.s32.totalorder %s999_s19, 1 }
   0x7   : > { %p1092_p3 = por %p161_p2, %p160_p1  ;;  %s145_s24 = ssub.s32 %s995_s18, %s1203_s21 }
   0x8   : > { %p229_p5 = scmp.lt.s32.totalorder %s999_s19, 3  ;;  %p148_p6 = scmp.eq.s32.totalorder %s145_s24, 0 }
   0xa   : > { %p230_p7 = pnand %p750_p4, %p229_p5 }
   0xb   : > { %s1101_s25 = scalar_select %p148_p6, %s987_s16, %s150_s22  }
   0xc   : > { %233 = sbr.rel (%p230_p7) target bundleno = 315 (0x13b), region = 36  ;;  %v920_v0 = vld [vmem:[%s1193_s1] sm:$0xff] (!%p230_p7)   ;;  %v1033_v1 = vmov (!%p230_p7), 0.0   ;;  %v921_v2 = vld [vmem:[%s1193_s1 + $0x8] sm:$0xff] (!%p230_p7)   ;;  %vm1034_vm0 = vmmov (!%p230_p7), 0   ;;  %s1110_s30 = sshll.u32 (!%p230_p7), %s991_s17, 1 }
   0xd   : > { %794 = vmatprep.subr.bf16.mxu0 (!%p230_p7), %v1033_v1  ;;  %810 = vmatprep.mubr.msk.bf16.mxu0 (!%p230_p7), %vm1034_vm0, %v1033_v1  ;;  %p280_p8 = scmp.lt.s32.totalorder (!%p230_p7), %s1110_s30, 2  ;;  %v922_v3 = vld [vmem:[%s1193_s1 + $0x10] sm:$0xff] (!%p230_p7)   ;;  %v923_v4 = vld [vmem:[%s1193_s1 + $0x18] sm:$0xff] (!%p230_p7)   ;;  %v924_v5 = vld [vmem:[%s1193_s1 + $0x20] sm:$0xff] (!%p230_p7)  }
   0xe   : > { %795 = vmatpush3.bf16.msra.mxu0 (!%p230_p7), %v920_v0  ;;  %v925_v6 = vld [vmem:[%s1193_s1 + $0x28] sm:$0xff] (!%p230_p7)   ;;  %v926_v7 = vld [vmem:[%s1193_s1 + $0x30] sm:$0xff] (!%p230_p7)   ;;  %v927_v8 = vld [vmem:[%s1193_s1 + $0x38] sm:$0xff] (!%p230_p7)  }
   0xf   : > { %796 = vmatprep.subr.bf16.mxu0 (!%p230_p7), %v1033_v1  ;;  %v763_v10 = vld [vmem:[%s1194_s2] ss:$0 sm:$0xff] (!%p230_p7) }
  0x10   : > { %v764_v12 = vld [vmem:[%s1195_s3] ss:$0 sm:$0xff] (!%p230_p7) }
  0x12   : > { %797 = vmatpush3.bf16.msra.mxu0 (!%p230_p7), %v921_v2 }
  0x13   : > { %s281_s5 = scalar_select %p280_p8, %s1110_s30, 2  ;;  %798 = vmatprep.subr.bf16.mxu0 %v1033_v1 }
  0x14   : > { %s782_s12 = sshll.u32 (%p1092_p3), %s991_s17, 4 }
  0x15   : > { %s753_s8 = sshll.u32 %s281_s5, 2  ;;  %s272_s5 = sand.u32 1, %s983_s15  }
  0x16   : > { %s286_s11 = scalar_lea.vmem %s1192_s0, %s753_s8  ;;  %799 = vmatpush3.bf16.msra.mxu0 %v922_v3  ;;  %s751_s10 = sshll.u32 %s272_s5, 4 }
  0x17   : > { %800 = vmatprep.subr.bf16.mxu0 %v1033_v1  ;;  %v928_v9 = vld [vmem:[%s286_s11] sm:$0xff]   ;;  %s1142_s11 = scalar_lea.vmem [#allocation3], %s751_s10   ;;  %s473_s15 = ssub.s32 (%p1092_p3), 3, %s1110_s30 }
  0x18   : > { %p474_p9 = scmp.lt.s32.totalorder (%p1092_p3), %s473_s15, 2  ;;  %s1153_s20 = scalar_lea.vmem (%p1092_p3), %s1196_s4, %s782_s12  }
  0x1a   : > { %801 = vmatpush3.bf16.msra.mxu0 %v923_v4 }
  0x1b   : > { %802 = vmatprep.subr.bf16.mxu0 %v1033_v1 }
  0x1e   : > { %803 = vmatpush3.bf16.msra.mxu0 %v924_v5 }
  0x1f   : > { %804 = vmatprep.subr.bf16.mxu0 %v1033_v1 }
  0x22   : > { %805 = vmatpush3.bf16.msra.mxu0 %v925_v6 }
  0x23   : > { %806 = vmatprep.subr.bf16.mxu0 %v1033_v1 }
  0x26   : > { %807 = vmatpush3.bf16.msra.mxu0 %v926_v7 }
  0x27   : > { %808 = vmatprep.subr.bf16.mxu0 %v1033_v1 }
  0x2a   : > { %809 = vmatpush3.bf16.msra.mxu0 %v927_v8 }
  0x2d   : > { %811 = vmatmul.mubr.bf16.vlgmr.msra.gmra.mrb[0].mxu0 %v928_v9 }
 0x100   : > { %v427_v11 = vpop.f32.mrb[0].mxu0 }
 0x101   : > { %v450_v13 = vmul.f32 %v763_v10, %v427_v11  ;;  %v812_v14 = vpop.f32.mrb[1].mxu0 }
 0x102   : > { %v430_v15 = vpop.f32.mrb[2].mxu0 }
 0x103   : > { %v459_v16 = vadd.f32 %v764_v12, %v450_v13  ;;  %v451_v17 = vmul.f32 %v763_v10, %v430_v15  ;;  %v813_v18 = vpop.f32.mrb[3].mxu0  ;;  %471 = sbr.rel (!%p1092_p3) target bundleno = 315 (0x13b), region = 48 }
 0x105   : > { %v461_v19 = vmax.f32 %v459_v16, 0.0  ;;  %v460_v20 = vadd.f32 %v764_v12, %v451_v17 }
 0x107   : > { %463 = vst [vmem:[%s1142_s11] sm:$0xff] %v461_v19  ;;  %v462_v21 = vmax.f32 %v460_v20, 0.0 }
 0x109   : > { %464 = vst [vmem:[%s1142_s11 + $0x8] sm:$0xff] %v462_v21 }
 0x10a   : > { %s1205_s15 = smov (!%p474_p9, %s473_s15), 2 }
 0x10b   : > { %s767_s22 = sshll.u32 %s1205_s15, 7 }
 0x10c   : > { %p770_p10 = scmp.eq.s32.totalorder %s767_s22, 0 }
 0x10d   : > { %s1159_s24 = sshrl.u32 (!%p770_p10), %s1205_s15, 1 }
 0x10e   : > { %483 = sbr.rel (%p770_p10) target bundleno = 315 (0x13b), region = 52  ;;  %p771_p11 = scmp.le.s32.totalorder (!%p770_p10), %s1159_s24, 0 }
 0x115   : > { %661 = sbr.rel (%p771_p11) target bundleno = 294 (0x126), region = 137  ;;  %s1001_s17 = smov (!%p771_p11), %s1153_s20  }
 0x116   : > { %s1005_s23 = smov (!%p771_p11), %s1142_s11   ;;  %s1009_s30 = smov (!%p771_p11), 0  }
 0x117   : > { %s1013_s26 = smov (!%p771_p11), 0  }
 0x11c LB: >> { %v547_v22 = vld [vmem:[%s1007_s23] sm:$0xff]  ;;  %v549_v23 = vld [vmem:[%s1007_s23 + $0x8] sm:$0xff]  ;;  %s551_s27 = sadd.s32 1, %s1011_s30  ;;  %s541_s26 = sadd.s32 1, %s1015_s26   ;;  %s1015_s26 = sphi %s1013_s26, %s541_s26   ;;  %s1011_s30 = sphi %s1009_s30, %s1010_s30   ;;  %s1007_s23 = sphi %s1005_s23, %s556_s23   ;;  %s1003_s17 = sphi %s1001_s17, %s557_s17  }
 0x11d   : >> { %548 = vst [vmem:[%s1003_s17] sm:$0xff] %v547_v22  ;;  %550 = vst [vmem:[%s1003_s17 + $0x8] sm:$0xff] %v549_v23  ;;  %p552_p12 = scmp.ge.s32.totalorder %s551_s27, %s1159_s24  ;;  %p540_p13 = scmp.ge.s32.totalorder %s541_s26, %s1159_s24 }
 0x11f   : >> { %s1207_s27 = smov (%p552_p12, %s551_s27), 0  ;;  %543 = sbr.rel (!%p540_p13) target bundleno = 284 (0x11c), region = 143 }
 0x120   : >> { %s772_s28 = sshll.u32 %s1207_s27, 4  ;;  %s1010_s30 = smov %s1207_s27  }
 0x121   : >> { %s556_s23 = scalar_lea.vmem %s1142_s11, %s772_s28 [#allocation3]   ;;  %s557_s17 = scalar_lea.vmem %s1153_s20, %s772_s28  }
 0x126 PF: > { %s1169_s29 = sand.u32 1, %s1205_s15   ;;  %s783_s5 = sshll.u32 %s1159_s24, 4 }
 0x127   : > { %s562_s6 = scalar_lea.vmem %s1142_s11, %s783_s5 [#allocation3]   ;;  %s564_s7 = scalar_lea.vmem %s1153_s20, %s783_s5  }
 0x128   : > { %p777_p0 = scmp.le.s32.totalorder %s1169_s29, 0 }
 0x129   : > { %s1017_s8 = smov (!%p777_p0), %s564_s7   ;;  %s1021_s9 = smov (!%p777_p0), %s562_s6  }
 0x12a   : > { %675 = sbr.rel (%p777_p0) target bundleno = 315 (0x13b), region = 148  ;;  %s1025_s10 = smov (!%p777_p0), 0  }
 0x12b   : > { %s1029_s12 = smov (!%p777_p0), 0  }
 0x131 LB: >> { %v574_v24 = vld [vmem:[%s1023_s9] sm:$0xff]  ;;  %s576_s15 = sadd.s32 1, %s1027_s10  ;;  %s568_s12 = sadd.s32 1, %s1031_s12   ;;  %s1031_s12 = sphi %s1029_s12, %s568_s12   ;;  %s1027_s10 = sphi %s1025_s10, %s1026_s10   ;;  %s1023_s9 = sphi %s1021_s9, %s581_s9   ;;  %s1019_s8 = sphi %s1017_s8, %s582_s8  }
 0x132   : >> { %575 = vst [vmem:[%s1019_s8] sm:$0xff] %v574_v24  ;;  %p577_p1 = scmp.ge.s32.totalorder %s576_s15, %s1169_s29  ;;  %p567_p2 = scmp.ge.s32.totalorder %s568_s12, %s1169_s29 }
 0x134   : >> { %s1209_s15 = smov (%p577_p1, %s576_s15), 0  ;;  %570 = sbr.rel (!%p567_p2) target bundleno = 305 (0x131), region = 154 }
 0x135   : >> { %s778_s11 = sshll.u32 %s1209_s15, 3  ;;  %s1026_s10 = smov %s1209_s15  }
 0x136   : >> { %s581_s9 = scalar_lea.vmem %s562_s6, %s778_s11 [#allocation3]   ;;  %s582_s8 = scalar_lea.vmem %s564_s7, %s778_s11  }
 0x13b PF: > { %s14_s19 = sadd.s32 1, %s999_s19   ;;  %s1198_s15 = smov %s987_s16 }
 0x13c   : > { %p11_p3 = scmp.ge.s32.totalorder %s14_s19, 4   ;;  %s1199_s16 = smov %s1101_s25 }
 0x13d   : > { %s1200_s17 = smov %s995_s18  ;;  %s1201_s18 = smov %s1203_s21 }
 0x13e   :  { %13 = sbr.rel (!%p11_p3) target bundleno = 3 (0x3), region = 165 }

// kernel: _lambda_.26
= control target key start
LH: loop header
LB: loop body
LE: loop exit
PB: predicated region body
PF: predicated region fallthrough
CT: control target
= control target key end

     0   :  { %9 = vsyncpa [#allocation4], 0  ;;  %s1275_s0 = inlined_call_operand.vmem [shape: bf16[32,384], index: 0, kind: input, shape index: {}]   ;;  %s1276_s1 = inlined_call_operand.vmem [shape: bf16[384,128], index: 1, kind: input, shape index: {}]   ;;  %s1277_s2 = inlined_call_operand.hbm [shape: f32[1,128], index: 2, kind: input, shape index: {}]   ;;  %s1278_s3 = inlined_call_operand.hbm [shape: f32[1,128], index: 3, kind: input, shape index: {}]   ;;  %s1279_s4 = inlined_call_operand.vmem [shape: bf16[32,128], index: 4, kind: output, shape index: {}]  }
   0x1   :  { %10 = vsyncpa [#allocation6], 0  ;;  %s1086_s15 = smov 0   ;;  %s1088_s16 = smov 0  }
   0x2   :  { %s1090_s17 = smov 0  }
   0x3 LB: > { %s788_s18 = sadd.s32 4294967295, %s1055_s17   ;;  %s35_s19 = sadd.s32 1, %s1051_s16  ;;  %s1055_s17 = sphi %s1090_s17, %s16_s17   ;;  %s1051_s16 = sphi %s1088_s16, %s1289_s16   ;;  %s1047_s15 = sphi %s1086_s15, %s1288_s15  }
   0x4   : > { %p37_p0 = scmp.ge.s32.totalorder %s35_s19, 2  ;;  %p790_p1 = scmp.ge.s32.totalorder %s1055_s17, 1 }
   0x5   : > { %p176_p2 = scmp.lt.s32.totalorder %s1055_s17, 3  ;;  %p1111_p4 = scmp.eq.s32.totalorder %s788_s18, 0 }
   0x6   : > { %s1291_s19 = smov (%p37_p0, %s35_s19), 0  ;;  %s1057_s22 = smov [#allocation3]  }
   0x7   : > { %p1107_p3 = pnand %p790_p1, %p176_p2  ;;  %s203_s23 = sshll.u32 %s1057_s22, 4  ;;  %s204_s23 = int_to_ptr.vmem [resolvable:$true] %s203_s23 }
   0x8   : > { %s1284_s21 = scalar_select %p1111_p4, 1, 0 }
   0x9   : > { %s1283_s20 = scalar_select %p1107_p3, 1, 0 }
   0xa   : > { %p902_p5 = pneg %p1107_p3  ;;  %s1058_s24 = smov [#allocation5]  }
   0xb   : > { %s216_s25 = sshll.u32 %s1058_s24, 4  ;;  %s969_s29 = scalar_lea.hbm %s1277_s2, 16  ;;  %s1123_s25 = int_to_ptr.vmem [resolvable:$true] %s216_s25 }
   0xc   : > { %p1119_p6 = pnand %p1111_p4, %p902_p5  ;;  %p970_p7 = scmp.ne.s32.totalorder %s1277_s2, %s969_s29 }
   0xd   : > { %p976_p11 = scmp.lt.u32.totalorder %s969_s29, %s1277_s2 }
   0xe   : > { %p971_p8 = pneg %p1119_p6 }
  0x10   : > { %p972_p9 = pnand %p971_p8, %p970_p7 }
  0x12   : > { %p973_p10 = pneg %p972_p9 }
  0x14   : > { %p978_p12 = pnand %p976_p11, %p973_p10 }
  0x16   : > { %981 = shalt.err (!%p978_p12)
}
  0x17   : > { %s982_s8 = scalar_lea.vmem %s204_s23, 16  ;;  %s989_s9 = scalar_lea.vmem %s204_s23, 32 }
  0x18   : > { %p983_p13 = scmp.ne.s32.totalorder %s204_s23, %s982_s8  ;;  %p990_p2 = scmp.lt.s32.totalorder %s204_s23, %s204_s23 }
  0x19   : > { %p991_p5 = scmp.lt.s32.totalorder %s989_s9, %s982_s8 }
  0x1a   : > { %p985_p0 = pnand %p983_p13, %p971_p8 }
  0x1b   : > { %p992_p4 = por %p991_p5, %p990_p2 }
  0x1c   : > { %p986_p1 = pneg %p985_p0 }
  0x1e   : > { %p993_p3 = pnand %p992_p4, %p986_p1 }
  0x20   : > { %996 = shalt.err (!%p993_p3)
}
  0x21   : > { %905 = dma.hbm_to_vmem [thread:$0]  (!%p1119_p6), %s1277_s2, 16, %s204_s23, [#allocation4]  }
  0x22   : > { %s997_s14 = scalar_lea.hbm %s1278_s3, 16 }
  0x23   : > { %p998_p7 = scmp.ne.s32.totalorder %s1278_s3, %s997_s14  ;;  %p1004_p3 = scmp.lt.u32.totalorder %s997_s14, %s1278_s3 }
  0x25   : > { %p1000_p9 = pnand %p998_p7, %p971_p8 }
  0x27   : > { %p1001_p4 = pneg %p1000_p9 }
  0x29   : > { %p1006_p10 = pnand %p1004_p3, %p1001_p4 }
  0x2b   : > { %1009 = shalt.err (!%p1006_p10)
}
  0x2c   : > { %s1010_s23 = scalar_lea.vmem %s1123_s25, 16  ;;  %s1017_s28 = scalar_lea.vmem %s1123_s25, 32 }
  0x2d   : > { %p1011_p11 = scmp.ne.s32.totalorder %s1123_s25, %s1010_s23  ;;  %p1018_p0 = scmp.lt.s32.totalorder %s1123_s25, %s1123_s25 }
  0x2e   : > { %p1019_p1 = scmp.lt.s32.totalorder %s1017_s28, %s1010_s23 }
  0x2f   : > { %p1013_p12 = pnand %p1011_p11, %p971_p8 }
  0x30   : > { %p1020_p2 = por %p1019_p1, %p1018_p0 }
  0x31   : > { %p1014_p13 = pneg %p1013_p12 }
  0x33   : > { %p1021_p5 = pnand %p1020_p2, %p1014_p13 }
  0x35   : > { %1024 = shalt.err (!%p1021_p5)
}
  0x36   : > { %908 = dma.hbm_to_vmem [thread:$0]  (!%p1119_p6), %s1278_s3, 16, %s1123_s25, [#allocation6]  }
  0x37   : > { %p1286_p7 = scmp.ne.s32.totalorder %s1283_s20, 0 }
  0x38   : > { %p1287_p8 = scmp.ne.s32.totalorder (!%p1286_p7), %s1284_s21, 0 }
  0x39   : > { %244 = sbr.rel (%p1286_p7) target bundleno = 327 (0x147), region = 36 }
  0x40   : > { %1038 = dma.done.wait (%p1287_p8), [#allocation4], 16  }
  0x41   : > { %1040 = vsyncadd (%p1287_p8), [#allocation4], 4294967280 }
  0x42   : > { %1042 = dma.done.wait (%p1287_p8), [#allocation6], 16  }
  0x43   : > { %1044 = vsyncadd (%p1287_p8), [#allocation6], 4294967280  ;;  %v1059_v0 = vmov 0.0   ;;  %vm1060_vm0 = vmmov 0   ;;  %v941_v1 = vld [vmem:[%s1276_s1 + $0x40] sm:$0xff]   ;;  %v944_v4 = vld [vmem:[%s1276_s1 + $0x48] sm:$0xff]  }
  0x44   : > { %873 = vmatprep.subr.bf16.mxu1 %v1059_v0  ;;  %889 = vmatprep.mubr.msk.bf16.mxu1 %vm1060_vm0, %v1059_v0  ;;  %v942_v2 = vld [vmem:[%s1276_s1] sm:$0xff]   ;;  %v945_v5 = vld [vmem:[%s1276_s1 + $0x8] sm:$0xff]   ;;  %v947_v7 = vld [vmem:[%s1276_s1 + $0x50] sm:$0xff]   ;;  %s798_s24 = sshll.u32 %s1047_s15, 1 }
  0x45   : > { %842 = vmatprep.subr.bf16.mxu0 %v941_v1  ;;  %v943_v3 = vld [vmem:[%s1276_s1 + $0x80] sm:$0xff]   ;;  %v946_v6 = vld [vmem:[%s1276_s1 + $0x88] sm:$0xff]   ;;  %v948_v8 = vld [vmem:[%s1276_s1 + $0x10] sm:$0xff]   ;;  %p292_p6 = scmp.lt.s32.totalorder %s798_s24, 3 }
  0x46   : > { %843 = vmatpush3.bf16.msra.mxu0 %v942_v2  ;;  %874 = vmatpush3.bf16.msra.mxu1 %v943_v3  ;;  %v949_v9 = vld [vmem:[%s1276_s1 + $0x90] sm:$0xff]   ;;  %v950_v10 = vld [vmem:[%s1276_s1 + $0x58] sm:$0xff]   ;;  %v953_v13 = vld [vmem:[%s1276_s1 + $0x60] sm:$0xff]  }
  0x47   : > { %844 = vmatprep.subr.bf16.mxu0 %v944_v4  ;;  %875 = vmatprep.subr.bf16.mxu1 %v1059_v0  ;;  %v951_v11 = vld [vmem:[%s1276_s1 + $0x18] sm:$0xff]   ;;  %v954_v14 = vld [vmem:[%s1276_s1 + $0x20] sm:$0xff]   ;;  %s1293_s24 = smov (!%p292_p6, %s798_s24), 3  ;;  %v956_v16 = vld [vmem:[%s1276_s1 + $0x68] sm:$0xff]  }
  0x48   : > { %v952_v12 = vld [vmem:[%s1276_s1 + $0x98] sm:$0xff]   ;;  %v955_v15 = vld [vmem:[%s1276_s1 + $0xa0] sm:$0xff]   ;;  %v957_v17 = vld [vmem:[%s1276_s1 + $0x28] sm:$0xff]   ;;  %s893_s13 = smul.u32 12, %s1293_s24  ;;  %s801_s9 = sshll.u32 %s1293_s24, 2 }
  0x49   : > { %v958_v18 = vld [vmem:[%s1276_s1 + $0xa8] sm:$0xff]   ;;  %v959_v19 = vld [vmem:[%s1276_s1 + $0x70] sm:$0xff]   ;;  %v962_v22 = vld [vmem:[%s1276_s1 + $0x78] sm:$0xff]   ;;  %s318_s12 = scalar_lea.vmem %s1279_s4, %s801_s9 }
  0x4a   : > { %845 = vmatpush3.bf16.msra.mxu0 %v945_v5  ;;  %876 = vmatpush3.bf16.msra.mxu1 %v946_v6  ;;  %v960_v20 = vld [vmem:[%s1276_s1 + $0x30] sm:$0xff]   ;;  %s299_s25 = scalar_lea.vmem %s1275_s0, %s893_s13  ;;  %v963_v24 = vld [vmem:[%s1276_s1 + $0x38] sm:$0xff]   ;;  %v829_v34 = vld [vmem:[#allocation3] ss:$0 sm:$0xff] }
  0x4b   : > { %846 = vmatprep.subr.bf16.mxu0 %v947_v7  ;;  %877 = vmatprep.subr.bf16.mxu1 %v1059_v0  ;;  %v961_v21 = vld [vmem:[%s1276_s1 + $0xb0] sm:$0xff]   ;;  %v964_v25 = vld [vmem:[%s1276_s1 + $0xb8] sm:$0xff]   ;;  %v965_v26 = vld [vmem:[%s299_s25] ss:$12 sps:$4 sm:$0xff]  }
  0x4c   : > { %v967_v23 = vld [vmem:[%s299_s25 + $0x4] ss:$12 sps:$4 sm:$0xff]   ;;  %v968_v27 = vld [vmem:[%s299_s25 + $0x8] ss:$12 sps:$4 sm:$0xff]   ;;  %v830_v42 = vld [vmem:[#allocation5] ss:$0 sm:$0xff] }
  0x4d   : > { %573 = vmatprep.mubr.bf16.mxu0 %v967_v23 }
  0x4e   : > { %847 = vmatpush3.bf16.msra.mxu0 %v948_v8  ;;  %878 = vmatpush3.bf16.msra.mxu1 %v949_v9 }
  0x4f   : > { %848 = vmatprep.subr.bf16.mxu0 %v950_v10  ;;  %879 = vmatprep.subr.bf16.mxu1 %v1059_v0 }
  0x52   : > { %849 = vmatpush3.bf16.msra.mxu0 %v951_v11  ;;  %880 = vmatpush3.bf16.msra.mxu1 %v952_v12 }
  0x53   : > { %850 = vmatprep.subr.bf16.mxu0 %v953_v13  ;;  %881 = vmatprep.subr.bf16.mxu1 %v1059_v0 }
  0x56   : > { %851 = vmatpush3.bf16.msra.mxu0 %v954_v14  ;;  %882 = vmatpush3.bf16.msra.mxu1 %v955_v15 }
  0x57   : > { %852 = vmatprep.subr.bf16.mxu0 %v956_v16  ;;  %883 = vmatprep.subr.bf16.mxu1 %v1059_v0 }
  0x5a   : > { %853 = vmatpush3.bf16.msra.mxu0 %v957_v17  ;;  %884 = vmatpush3.bf16.msra.mxu1 %v958_v18 }
  0x5b   : > { %854 = vmatprep.subr.bf16.mxu0 %v959_v19  ;;  %885 = vmatprep.subr.bf16.mxu1 %v1059_v0 }
  0x5e   : > { %855 = vmatpush3.bf16.msra.mxu0 %v960_v20  ;;  %886 = vmatpush3.bf16.msra.mxu1 %v961_v21 }
  0x5f   : > { %856 = vmatprep.subr.bf16.mxu0 %v962_v22  ;;  %887 = vmatprep.subr.bf16.mxu1 %v1059_v0 }
  0x62   : > { %857 = vmatpush3.bf16.msra.mxu0 %v963_v24  ;;  %888 = vmatpush3.bf16.msra.mxu1 %v964_v25 }
  0x65   : > { %574 = vmatmul.mubr.bf16.vlgmr.msra.gmra.mrb[0].mxu0 %v965_v26  ;;  %890 = vmatmul.mubr.bf16.vlgmr.msra.gmra.mrb[0].mxu1 %v968_v27 }
 0x138   : > { %v858_v28 = vpop.f32.mrb[0].mxu0  ;;  %v616_v29 = vpop.f32.mrb[0].mxu1 }
 0x139   : > { %v859_v30 = vpop.f32.mrb[1].mxu0  ;;  %v891_v32 = vpop.f32.mrb[1].mxu1 }
 0x13a   : > { %v860_v31 = vadd.f32 %v859_v30, %v858_v28  ;;  %v861_v33 = vpop.f32.mrb[2].mxu0  ;;  %v619_v35 = vpop.f32.mrb[2].mxu1 }
 0x13b   : > { %v862_v36 = vpop.f32.mrb[3].mxu0  ;;  %v892_v39 = vpop.f32.mrb[3].mxu1 }
 0x13c   : > { %v617_v37 = vadd.f32 %v860_v31, %v616_v29  ;;  %v863_v38 = vadd.f32 %v862_v36, %v861_v33 }
 0x13e   : > { %v639_v40 = vmul.f32 %v829_v34, %v617_v37  ;;  %v620_v41 = vadd.f32 %v863_v38, %v619_v35 }
 0x140   : > { %v640_v43 = vmul.f32 %v829_v34, %v620_v41  ;;  %v648_v44 = vadd.f32 %v830_v42, %v639_v40 }
 0x142   : > { %v649_v45 = vadd.f32 %v830_v42, %v640_v43 }
 0x144   : > { %v840_v46 = vpack.c.bf16 %v649_v45, %v648_v44 }
 0x146   : > { %841 = vst [vmem:[%s318_s12] sm:$0xff] %v840_v46  }
 0x147 PF: > { %s16_s17 = sadd.s32 1, %s1055_s17   ;;  %s1288_s15 = smov %s1051_s16 }
 0x148   : > { %p13_p9 = scmp.ge.s32.totalorder %s16_s17, 4   ;;  %s1289_s16 = smov %s1291_s19 }
 0x14a   :  { %15 = sbr.rel (!%p13_p9) target bundleno = 3 (0x3), region = 88 }
 0x151   :  { %688 = vsyncpa [#allocation4], 1 }
 0x152   :  { %690 = vsyncpa [#allocation4 + $0x1], 1 }
 0x153   :  { %691 = vsyncpa [#allocation6], 1 }

// kernel: _lambda_.25
= control target key start
LH: loop header
LB: loop body
LE: loop exit
PB: predicated region body
PF: predicated region fallthrough
CT: control target
= control target key end

     0   :  { %s1071_s18 = smov 0   ;;  %s1073_s19 = smov 0   ;;  %s1193_s0 = inlined_call_operand.vmem [shape: bf16[32,384], index: 0, kind: input, shape index: {}]   ;;  %s1194_s1 = inlined_call_operand.vmem [shape: bf16[384,128], index: 1, kind: input, shape index: {}]   ;;  %s1195_s2 = inlined_call_operand.vmem [shape: f32[1,128], index: 2, kind: input, shape index: {}]   ;;  %s1196_s3 = inlined_call_operand.vmem [shape: f32[1,128], index: 3, kind: input, shape index: {}]   ;;  %s1197_s4 = inlined_call_operand.vmem [shape: f32[32,128], index: 4, kind: input, shape index: {}]   ;;  %s1198_s5 = inlined_call_operand.vmem [shape: bf16[32,128], index: 5, kind: output, shape index: {}]  }
   0x1   :  { %s1075_s20 = smov 0  }
   0x2 LB: > { %s34_s21 = sadd.s32 1, %s1033_s19  ;;  %p862_p0 = scmp.ge.s32.totalorder %s1037_s20, 1  ;;  %s1037_s20 = sphi %s1075_s20, %s15_s20   ;;  %s1033_s19 = sphi %s1073_s19, %s1200_s19   ;;  %s1029_s18 = sphi %s1071_s18, %s1199_s18  }
   0x3   : > { %p36_p1 = scmp.ge.s32.totalorder %s34_s21, 2  ;;  %p265_p2 = scmp.lt.s32.totalorder %s1037_s20, 3 }
   0x5   : > { %s1202_s21 = smov (%p36_p1, %s34_s21), 0  ;;  %p266_p3 = pnand %p862_p0, %p265_p2 }
   0x6   : > { %v987_v0 = vld [vmem:[%s1194_s1 + $0x40] sm:$0xff] (!%p266_p3)   ;;  %v1039_v1 = vmov (!%p266_p3), 0.0   ;;  %v990_v4 = vld [vmem:[%s1194_s1 + $0x48] sm:$0xff] (!%p266_p3)   ;;  %vm1040_vm0 = vmmov (!%p266_p3), 0   ;;  %v993_v7 = vld [vmem:[%s1194_s1 + $0x50] sm:$0xff] (!%p266_p3)   ;;  %s863_s13 = sshll.u32 (!%p266_p3), %s1029_s18, 1 }
   0x7   : > { %269 = sbr.rel (%p266_p3) target bundleno = 269 (0x10d), region = 40  ;;  %940 = vmatprep.subr.bf16.mxu1 (!%p266_p3), %v1039_v1  ;;  %v988_v2 = vld [vmem:[%s1194_s1] sm:$0xff] (!%p266_p3)   ;;  %909 = vmatprep.subr.bf16.mxu0 (!%p266_p3), %v987_v0  ;;  %v991_v5 = vld [vmem:[%s1194_s1 + $0x8] sm:$0xff] (!%p266_p3)   ;;  %v994_v8 = vld [vmem:[%s1194_s1 + $0x10] sm:$0xff] (!%p266_p3)   ;;  %p325_p4 = scmp.lt.s32.totalorder (!%p266_p3), %s863_s13, 3 }
   0x8   : > { %v989_v3 = vld [vmem:[%s1194_s1 + $0x80] sm:$0xff] (!%p266_p3)   ;;  %910 = vmatpush3.bf16.msra.mxu0 (!%p266_p3), %v988_v2  ;;  %956 = vmatprep.mubr.msk.bf16.mxu1 (!%p266_p3), %vm1040_vm0, %v1039_v1  ;;  %v992_v6 = vld [vmem:[%s1194_s1 + $0x88] sm:$0xff] (!%p266_p3)   ;;  %v995_v9 = vld [vmem:[%s1194_s1 + $0x90] sm:$0xff] (!%p266_p3)  }
   0x9   : > { %941 = vmatpush3.bf16.msra.mxu1 (!%p266_p3), %v989_v3  ;;  %911 = vmatprep.subr.bf16.mxu0 (!%p266_p3), %v990_v4  ;;  %v996_v10 = vld [vmem:[%s1194_s1 + $0x58] sm:$0xff] (!%p266_p3)   ;;  %v999_v13 = vld [vmem:[%s1194_s1 + $0x60] sm:$0xff] (!%p266_p3)   ;;  %v1002_v16 = vld [vmem:[%s1194_s1 + $0x68] sm:$0xff] (!%p266_p3)  }
   0xa   : > { %942 = vmatprep.subr.bf16.mxu1 (!%p266_p3), %v1039_v1  ;;  %v997_v11 = vld [vmem:[%s1194_s1 + $0x18] sm:$0xff] (!%p266_p3)   ;;  %v1000_v14 = vld [vmem:[%s1194_s1 + $0x20] sm:$0xff] (!%p266_p3)   ;;  %v1003_v17 = vld [vmem:[%s1194_s1 + $0x28] sm:$0xff] (!%p266_p3)  }
   0xb   : > { %v998_v12 = vld [vmem:[%s1194_s1 + $0x98] sm:$0xff] (!%p266_p3)   ;;  %v1001_v15 = vld [vmem:[%s1194_s1 + $0xa0] sm:$0xff] (!%p266_p3)   ;;  %v1004_v18 = vld [vmem:[%s1194_s1 + $0xa8] sm:$0xff] (!%p266_p3)  }
   0xc   : > { %912 = vmatpush3.bf16.msra.mxu0 (!%p266_p3), %v991_v5  ;;  %v1005_v19 = vld [vmem:[%s1194_s1 + $0x70] sm:$0xff] (!%p266_p3)   ;;  %v1008_v22 = vld [vmem:[%s1194_s1 + $0x78] sm:$0xff] (!%p266_p3)   ;;  %v896_v34 = vld [vmem:[%s1195_s2] ss:$0 sm:$0xff] (!%p266_p3) }
   0xd   : > { %943 = vmatpush3.bf16.msra.mxu1 (!%p266_p3), %v992_v6  ;;  %913 = vmatprep.subr.bf16.mxu0 (!%p266_p3), %v993_v7  ;;  %v1006_v20 = vld [vmem:[%s1194_s1 + $0x30] sm:$0xff] (!%p266_p3)   ;;  %v1009_v24 = vld [vmem:[%s1194_s1 + $0x38] sm:$0xff] (!%p266_p3)   ;;  %v897_v40 = vld [vmem:[%s1196_s3] ss:$0 sm:$0xff] (!%p266_p3) }
   0xe   : > { %944 = vmatprep.subr.bf16.mxu1 %v1039_v1  ;;  %s1204_s13 = smov (!%p325_p4, %s863_s13), 3  ;;  %v1007_v21 = vld [vmem:[%s1194_s1 + $0xb0] sm:$0xff]   ;;  %v1010_v25 = vld [vmem:[%s1194_s1 + $0xb8] sm:$0xff]  }
   0xf   : > { %s960_s10 = smul.u32 12, %s1204_s13  ;;  %s866_s7 = sshll.u32 %s1204_s13, 3 }
  0x10   : > { %914 = vmatpush3.bf16.msra.mxu0 %v994_v8  ;;  %s357_s12 = scalar_lea.vmem %s1197_s4, %s866_s7  ;;  %s868_s16 = sshll.u32 %s1204_s13, 2 }
  0x11   : > { %945 = vmatpush3.bf16.msra.mxu1 %v995_v9  ;;  %915 = vmatprep.subr.bf16.mxu0 %v996_v10  ;;  %s332_s24 = scalar_lea.vmem %s1193_s0, %s960_s10  ;;  %v698_v43 = vld [vmem:[%s357_s12] sm:$0xff]  ;;  %v699_v46 = vld [vmem:[%s357_s12 + $0x8] sm:$0xff]  ;;  %s366_s23 = scalar_lea.vmem %s1198_s5, %s868_s16 }
  0x12   : > { %946 = vmatprep.subr.bf16.mxu1 %v1039_v1  ;;  %v1013_v23 = vld [vmem:[%s332_s24 + $0x4] ss:$12 sps:$4 sm:$0xff]   ;;  %v1011_v26 = vld [vmem:[%s332_s24] ss:$12 sps:$4 sm:$0xff]   ;;  %v1014_v27 = vld [vmem:[%s332_s24 + $0x8] ss:$12 sps:$4 sm:$0xff]  }
  0x13   : > { %621 = vmatprep.mubr.bf16.mxu0 %v1013_v23 }
  0x14   : > { %916 = vmatpush3.bf16.msra.mxu0 %v997_v11 }
  0x15   : > { %947 = vmatpush3.bf16.msra.mxu1 %v998_v12  ;;  %917 = vmatprep.subr.bf16.mxu0 %v999_v13 }
  0x16   : > { %948 = vmatprep.subr.bf16.mxu1 %v1039_v1 }
  0x18   : > { %918 = vmatpush3.bf16.msra.mxu0 %v1000_v14 }
  0x19   : > { %949 = vmatpush3.bf16.msra.mxu1 %v1001_v15  ;;  %919 = vmatprep.subr.bf16.mxu0 %v1002_v16 }
  0x1a   : > { %950 = vmatprep.subr.bf16.mxu1 %v1039_v1 }
  0x1c   : > { %920 = vmatpush3.bf16.msra.mxu0 %v1003_v17 }
  0x1d   : > { %951 = vmatpush3.bf16.msra.mxu1 %v1004_v18  ;;  %921 = vmatprep.subr.bf16.mxu0 %v1005_v19 }
  0x1e   : > { %952 = vmatprep.subr.bf16.mxu1 %v1039_v1 }
  0x20   : > { %922 = vmatpush3.bf16.msra.mxu0 %v1006_v20 }
  0x21   : > { %953 = vmatpush3.bf16.msra.mxu1 %v1007_v21  ;;  %923 = vmatprep.subr.bf16.mxu0 %v1008_v22 }
  0x22   : > { %954 = vmatprep.subr.bf16.mxu1 %v1039_v1 }
  0x24   : > { %924 = vmatpush3.bf16.msra.mxu0 %v1009_v24 }
  0x25   : > { %955 = vmatpush3.bf16.msra.mxu1 %v1010_v25 }
  0x27   : > { %622 = vmatmul.mubr.bf16.vlgmr.msra.gmra.mrb[0].mxu0 %v1011_v26 }
  0x28   : > { %957 = vmatmul.mubr.bf16.vlgmr.msra.gmra.mrb[0].mxu1 %v1014_v27 }
  0xfa   : > { %v925_v28 = vpop.f32.mrb[0].mxu0 }
  0xfb   : > { %v664_v29 = vpop.f32.mrb[0].mxu1  ;;  %v926_v30 = vpop.f32.mrb[1].mxu0 }
  0xfc   : > { %v927_v31 = vadd.f32 %v926_v30, %v925_v28  ;;  %v958_v32 = vpop.f32.mrb[1].mxu1  ;;  %v928_v33 = vpop.f32.mrb[2].mxu0 }
  0xfd   : > { %v667_v35 = vpop.f32.mrb[2].mxu1  ;;  %v929_v36 = vpop.f32.mrb[3].mxu0 }
  0xfe   : > { %v665_v37 = vadd.f32 %v927_v31, %v664_v29  ;;  %v930_v38 = vadd.f32 %v929_v36, %v928_v33  ;;  %v959_v39 = vpop.f32.mrb[3].mxu1 }
 0x100   : > { %v687_v41 = vmul.f32 %v896_v34, %v665_v37  ;;  %v668_v42 = vadd.f32 %v930_v38, %v667_v35 }
 0x102   : > { %v696_v44 = vadd.f32 %v897_v40, %v687_v41  ;;  %v688_v45 = vmul.f32 %v896_v34, %v668_v42 }
 0x104   : > { %v700_v47 = vadd.f32 %v698_v43, %v696_v44  ;;  %v697_v48 = vadd.f32 %v897_v40, %v688_v45 }
 0x106   : > { %v701_v49 = vadd.f32 %v699_v46, %v697_v48  ;;  %v702_v50 = vmax.f32 %v700_v47, 0.0 }
 0x108   : > { %v703_v51 = vmax.f32 %v701_v49, 0.0 }
 0x10a   : > { %v907_v52 = vpack.c.bf16 %v703_v51, %v702_v50 }
 0x10c   : > { %908 = vst [vmem:[%s366_s23] sm:$0xff] %v907_v52  }
 0x10d PF: > { %s15_s20 = sadd.s32 1, %s1037_s20   ;;  %s1199_s18 = smov %s1033_s19 }
 0x10e   : > { %p12_p5 = scmp.ge.s32.totalorder %s15_s20, 4   ;;  %s1200_s19 = smov %s1202_s21 }
 0x110   :  { %14 = sbr.rel (!%p12_p5) target bundleno = 2 (0x2), region = 90 }

// kernel: _lambda_.27
= control target key start
LH: loop header
LB: loop body
LE: loop exit
PB: predicated region body
PF: predicated region fallthrough
CT: control target
= control target key end

     0   :  { %9 = vsyncpa [#allocation4], 0  ;;  %s1365_s0 = inlined_call_operand.vmem [shape: bf16[24,128], index: 0, kind: input, shape index: {}]   ;;  %s1366_s1 = inlined_call_operand.vmem [shape: bf16[128,128], index: 1, kind: input, shape index: {}]   ;;  %s1367_s2 = inlined_call_operand.hbm [shape: f32[1,128], index: 2, kind: input, shape index: {}]   ;;  %s1368_s3 = inlined_call_operand.hbm [shape: f32[1,128], index: 3, kind: input, shape index: {}]   ;;  %s1369_s4 = inlined_call_operand.vmem [shape: f32[24,128], index: 4, kind: output, shape index: {}]  }
   0x1   :  { %10 = vsyncpa [#allocation6], 0  ;;  %s1163_s15 = smov 0   ;;  %s1165_s16 = smov 0  }
   0x2   :  { %s1167_s17 = smov 0   ;;  %s1169_s18 = smov 0  }
   0x3   :  { %s1171_s19 = smov 0  }
   0x4 LB: > { %s757_s20 = sadd.s32 4294967295, %s1100_s19   ;;  %s35_s21 = sadd.s32 1, %s1096_s18  ;;  %s1100_s19 = sphi %s1171_s19, %s16_s19   ;;  %s1096_s18 = sphi %s1169_s18, %s1383_s18   ;;  %s1092_s17 = sphi %s1167_s17, %s1382_s17   ;;  %s1088_s16 = sphi %s1165_s16, %s1381_s16   ;;  %s1084_s15 = sphi %s1163_s15, %s1380_s15  }
   0x5   : > { %p37_p0 = scmp.ge.s32.totalorder %s35_s21, 2  ;;  %s152_s22 = sadd.s32 1, %s1088_s16 }
   0x6   : > { %p162_p1 = scmp.ne.s32.totalorder %s1088_s16, %s1084_s15  ;;  %p163_p2 = scmp.eq.s32.totalorder %s757_s20, 1 }
   0x7   : > { %s1385_s21 = smov (%p37_p0, %s35_s21), 0  ;;  %p759_p4 = scmp.ge.s32.totalorder %s1100_s19, 1 }
   0x8   : > { %p1195_p3 = por %p163_p2, %p162_p1  ;;  %s147_s24 = ssub.s32 %s1096_s18, %s1385_s21 }
   0x9   : > { %p176_p5 = scmp.lt.s32.totalorder %s1100_s19, 3  ;;  %p150_p6 = scmp.eq.s32.totalorder %s147_s24, 0 }
   0xa   : > { %s1373_s23 = scalar_select %p1195_p3, 1, 0 }
   0xb   : > { %p1203_p7 = pnand %p759_p4, %p176_p5  ;;  %p1207_p8 = scmp.eq.s32.totalorder %s757_s20, 0 }
   0xc   : > { %s1212_s27 = scalar_select %p150_p6, %s1088_s16, %s152_s22  }
   0xd   : > { %s1374_s25 = scalar_select %p1203_p7, 1, 0 }
   0xe   : > { %s1375_s26 = scalar_select %p1207_p8, 1, 0 }
   0xf   : > { %p838_p9 = pneg %p1203_p7  ;;  %s1134_s28 = smov [#allocation3]  }
  0x10   : > { %s203_s29 = sshll.u32 %s1134_s28, 4  ;;  %s1135_s5 = smov [#allocation5]   ;;  %s204_s29 = int_to_ptr.vmem [resolvable:$true] %s203_s29 }
  0x11   : > { %p1218_p10 = pnand %p1207_p8, %p838_p9  ;;  %s216_s6 = sshll.u32 %s1135_s5, 4  ;;  %s1222_s6 = int_to_ptr.vmem [resolvable:$true] %s216_s6 }
  0x12   : > { %s966_s9 = scalar_lea.hbm %s1367_s2, 16 }
  0x13   : > { %p967_p11 = scmp.ne.s32.totalorder %s1367_s2, %s966_s9  ;;  %p968_p12 = pneg %p1218_p10 }
  0x14   : > { %p973_p1 = scmp.lt.u32.totalorder %s966_s9, %s1367_s2 }
  0x15   : > { %p969_p13 = pnand %p968_p12, %p967_p11 }
  0x17   : > { %p970_p0 = pneg %p969_p13 }
  0x19   : > { %p975_p2 = pnand %p973_p1, %p970_p0 }
  0x1b   : > { %978 = shalt.err (!%p975_p2)
}
  0x1c   : > { %s979_s14 = scalar_lea.vmem %s204_s29, 16  ;;  %s986_s20 = scalar_lea.vmem %s204_s29, 32 }
  0x1d   : > { %p980_p4 = scmp.ne.s32.totalorder %s204_s29, %s979_s14  ;;  %p987_p9 = scmp.lt.s32.totalorder %s204_s29, %s204_s29 }
  0x1e   : > { %p988_p3 = scmp.lt.s32.totalorder %s986_s20, %s979_s14 }
  0x1f   : > { %p982_p5 = pnand %p980_p4, %p968_p12 }
  0x20   : > { %p989_p8 = por %p988_p3, %p987_p9 }
  0x21   : > { %p983_p6 = pneg %p982_p5 }
  0x23   : > { %p990_p7 = pnand %p989_p8, %p983_p6 }
  0x25   : > { %993 = shalt.err (!%p990_p7)
}
  0x26   : > { %841 = dma.hbm_to_vmem [thread:$0]  (!%p1218_p10), %s1367_s2, 16, %s204_s29, [#allocation4]  }
  0x27   : > { %s994_s7 = scalar_lea.hbm %s1368_s3, 16 }
  0x28   : > { %p995_p11 = scmp.ne.s32.totalorder %s1368_s3, %s994_s7  ;;  %p1001_p7 = scmp.lt.u32.totalorder %s994_s7, %s1368_s3 }
  0x2a   : > { %p997_p3 = pnand %p995_p11, %p968_p12 }
  0x2c   : > { %p998_p8 = pneg %p997_p3 }
  0x2e   : > { %p1003_p13 = pnand %p1001_p7, %p998_p8 }
  0x30   : > { %1006 = shalt.err (!%p1003_p13)
}
  0x31   : > { %s1007_s29 = scalar_lea.vmem %s1222_s6, 16  ;;  %s1014_s12 = scalar_lea.vmem %s1222_s6, 32 }
  0x32   : > { %p1008_p0 = scmp.ne.s32.totalorder %s1222_s6, %s1007_s29  ;;  %p1015_p4 = scmp.lt.s32.totalorder %s1222_s6, %s1222_s6 }
  0x33   : > { %p1016_p5 = scmp.lt.s32.totalorder %s1014_s12, %s1007_s29 }
  0x34   : > { %p1010_p1 = pnand %p1008_p0, %p968_p12 }
  0x35   : > { %p1017_p6 = por %p1016_p5, %p1015_p4 }
  0x36   : > { %p1011_p2 = pneg %p1010_p1 }
  0x38   : > { %p1018_p9 = pnand %p1017_p6, %p1011_p2 }
  0x3a   : > { %1021 = shalt.err (!%p1018_p9)
}
  0x3b   : > { %844 = dma.hbm_to_vmem [thread:$0]  (!%p1218_p10), %s1368_s3, 16, %s1222_s6, [#allocation6]  }
  0x3c   : > { %p1377_p11 = scmp.ne.s32.totalorder %s1374_s25, 0 }
  0x3d   : > { %p1378_p12 = scmp.ne.s32.totalorder (!%p1377_p11), %s1375_s26, 0 }
  0x3e   : > { %249 = sbr.rel (%p1377_p11) target bundleno = 375 (0x177), region = 36 }
  0x45   : > { %1075 = dma.done.wait (%p1378_p12), [#allocation4], 16  }
  0x46   : > { %1077 = vsyncadd (%p1378_p12), [#allocation4], 4294967280 }
  0x47   : > { %1079 = dma.done.wait (%p1378_p12), [#allocation6], 16  }
  0x48   : > { %1081 = vsyncadd (%p1378_p12), [#allocation6], 4294967280  ;;  %s1283_s30 = sshll.u32 %s1092_s17, 1  ;;  %v1136_v0 = vmov 0.0   ;;  %vm1137_vm0 = vmmov 0   ;;  %v957_v1 = vld [vmem:[%s1366_s1] sm:$0xff]  }
  0x49   : > { %810 = vmatprep.subr.bf16.mxu0 %v1136_v0  ;;  %826 = vmatprep.mubr.msk.bf16.mxu0 %vm1137_vm0, %v1136_v0  ;;  %p298_p10 = scmp.lt.s32.totalorder %s1283_s30, 2  ;;  %v958_v2 = vld [vmem:[%s1366_s1 + $0x8] sm:$0xff]   ;;  %v959_v3 = vld [vmem:[%s1366_s1 + $0x10] sm:$0xff]   ;;  %v960_v4 = vld [vmem:[%s1366_s1 + $0x18] sm:$0xff]   ;;  %s290_s24 = sand.u32 1, %s1084_s15  }
  0x4a   : > { %811 = vmatpush3.bf16.msra.mxu0 %v957_v1  ;;  %v961_v5 = vld [vmem:[%s1366_s1 + $0x20] sm:$0xff]   ;;  %v962_v6 = vld [vmem:[%s1366_s1 + $0x28] sm:$0xff]   ;;  %v963_v7 = vld [vmem:[%s1366_s1 + $0x30] sm:$0xff]   ;;  %p1379_p3 = scmp.ne.s32.totalorder %s1373_s23, 0 }
  0x4b   : > { %s299_s20 = scalar_select %p298_p10, %s1283_s30, 2  ;;  %812 = vmatprep.subr.bf16.mxu0 %v1136_v0  ;;  %v964_v8 = vld [vmem:[%s1366_s1 + $0x38] sm:$0xff]   ;;  %v779_v10 = vld [vmem:[#allocation3] ss:$0 sm:$0xff]  ;;  %v780_v12 = vld [vmem:[#allocation5] ss:$0 sm:$0xff] }
  0x4c   : > { %s485_s15 = ssub.s32 (%p1379_p3), 3, %s1283_s30  ;;  %s798_s5 = sshll.u32 (%p1379_p3), %s1092_s17, 4 }
  0x4d   : > { %s769_s26 = sshll.u32 %s299_s20, 2  ;;  %p486_p8 = scmp.lt.s32.totalorder (%p1379_p3), %s485_s15, 2 }
  0x4e   : > { %813 = vmatpush3.bf16.msra.mxu0 %v958_v2  ;;  %s304_s9 = scalar_lea.vmem %s1365_s0, %s769_s26  ;;  %s767_s26 = sshll.u32 %s290_s24, 4 }
  0x4f   : > { %814 = vmatprep.subr.bf16.mxu0 %v1136_v0  ;;  %v965_v9 = vld [vmem:[%s304_s9] sm:$0xff]   ;;  %s1315_s28 = scalar_lea.vmem [#allocation7], %s767_s26   ;;  %s1326_s9 = scalar_lea.vmem (%p1379_p3), %s1369_s4, %s798_s5  }
  0x52   : > { %815 = vmatpush3.bf16.msra.mxu0 %v959_v3 }
  0x53   : > { %816 = vmatprep.subr.bf16.mxu0 %v1136_v0 }
  0x56   : > { %817 = vmatpush3.bf16.msra.mxu0 %v960_v4 }
  0x57   : > { %818 = vmatprep.subr.bf16.mxu0 %v1136_v0 }
  0x5a   : > { %819 = vmatpush3.bf16.msra.mxu0 %v961_v5 }
  0x5b   : > { %820 = vmatprep.subr.bf16.mxu0 %v1136_v0 }
  0x5e   : > { %821 = vmatpush3.bf16.msra.mxu0 %v962_v6 }
  0x5f   : > { %822 = vmatprep.subr.bf16.mxu0 %v1136_v0 }
  0x62   : > { %823 = vmatpush3.bf16.msra.mxu0 %v963_v7 }
  0x63   : > { %824 = vmatprep.subr.bf16.mxu0 %v1136_v0 }
  0x66   : > { %825 = vmatpush3.bf16.msra.mxu0 %v964_v8 }
  0x69   : > { %827 = vmatmul.mubr.bf16.vlgmr.msra.gmra.mrb[0].mxu0 %v965_v9 }
 0x13c   : > { %v439_v11 = vpop.f32.mrb[0].mxu0 }
 0x13d   : > { %v462_v13 = vmul.f32 %v779_v10, %v439_v11  ;;  %v828_v14 = vpop.f32.mrb[1].mxu0 }
 0x13e   : > { %v442_v15 = vpop.f32.mrb[2].mxu0 }
 0x13f   : > { %v471_v16 = vadd.f32 %v780_v12, %v462_v13  ;;  %v463_v17 = vmul.f32 %v779_v10, %v442_v15  ;;  %v829_v18 = vpop.f32.mrb[3].mxu0  ;;  %483 = sbr.rel (!%p1379_p3) target bundleno = 375 (0x177), region = 56 }
 0x141   : > { %v473_v19 = vmax.f32 %v471_v16, 0.0  ;;  %v472_v20 = vadd.f32 %v780_v12, %v463_v17 }
 0x143   : > { %475 = vst [vmem:[%s1315_s28] sm:$0xff] %v473_v19  ;;  %v474_v21 = vmax.f32 %v472_v20, 0.0 }
 0x145   : > { %476 = vst [vmem:[%s1315_s28 + $0x8] sm:$0xff] %v474_v21 }
 0x146   : > { %s1387_s15 = smov (!%p486_p8, %s485_s15), 2 }
 0x147   : > { %s783_s10 = sshll.u32 %s1387_s15, 7 }
 0x148   : > { %p786_p7 = scmp.eq.s32.totalorder %s783_s10, 0 }
 0x149   : > { %s1332_s11 = sshrl.u32 (!%p786_p7), %s1387_s15, 1 }
 0x14a   : > { %495 = sbr.rel (%p786_p7) target bundleno = 375 (0x177), region = 60  ;;  %p787_p13 = scmp.le.s32.totalorder (!%p786_p7), %s1332_s11, 0 }
 0x151   : > { %675 = sbr.rel (%p787_p13) target bundleno = 354 (0x162), region = 142  ;;  %s1102_s17 = smov (!%p787_p13), %s1326_s9  }
 0x152   : > { %s1106_s23 = smov (!%p787_p13), %s1315_s28   ;;  %s1110_s30 = smov (!%p787_p13), 0  }
 0x153   : > { %s1114_s29 = smov (!%p787_p13), 0  }
 0x158 LB: >> { %v559_v22 = vld [vmem:[%s1108_s23] sm:$0xff]  ;;  %v561_v23 = vld [vmem:[%s1108_s23 + $0x8] sm:$0xff]  ;;  %s563_s12 = sadd.s32 1, %s1112_s30  ;;  %s553_s29 = sadd.s32 1, %s1116_s29   ;;  %s1116_s29 = sphi %s1114_s29, %s553_s29   ;;  %s1112_s30 = sphi %s1110_s30, %s1111_s30   ;;  %s1108_s23 = sphi %s1106_s23, %s568_s23   ;;  %s1104_s17 = sphi %s1102_s17, %s569_s17  }
 0x159   : >> { %560 = vst [vmem:[%s1104_s17] sm:$0xff] %v559_v22  ;;  %562 = vst [vmem:[%s1104_s17 + $0x8] sm:$0xff] %v561_v23  ;;  %p564_p0 = scmp.ge.s32.totalorder %s563_s12, %s1332_s11  ;;  %p552_p1 = scmp.ge.s32.totalorder %s553_s29, %s1332_s11 }
 0x15b   : >> { %s1389_s12 = smov (%p564_p0, %s563_s12), 0  ;;  %555 = sbr.rel (!%p552_p1) target bundleno = 344 (0x158), region = 148 }
 0x15c   : >> { %s788_s13 = sshll.u32 %s1389_s12, 4  ;;  %s1111_s30 = smov %s1389_s12  }
 0x15d   : >> { %s568_s23 = scalar_lea.vmem %s1315_s28, %s788_s13 [#allocation7]   ;;  %s569_s17 = scalar_lea.vmem %s1326_s9, %s788_s13  }
 0x162 PF: > { %s1342_s14 = sand.u32 1, %s1387_s15   ;;  %s799_s25 = sshll.u32 %s1332_s11, 4 }
 0x163   : > { %s574_s6 = scalar_lea.vmem %s1315_s28, %s799_s25 [#allocation7]   ;;  %s576_s20 = scalar_lea.vmem %s1326_s9, %s799_s25  }
 0x164   : > { %p793_p2 = scmp.le.s32.totalorder %s1342_s14, 0 }
 0x165   : > { %s1118_s22 = smov (!%p793_p2), %s576_s20   ;;  %s1122_s24 = smov (!%p793_p2), %s574_s6  }
 0x166   : > { %689 = sbr.rel (%p793_p2) target bundleno = 375 (0x177), region = 153  ;;  %s1126_s26 = smov (!%p793_p2), 0  }
 0x167   : > { %s1130_s5 = smov (!%p793_p2), 0  }
 0x16d LB: >> { %v586_v24 = vld [vmem:[%s1124_s24] sm:$0xff]  ;;  %s588_s15 = sadd.s32 1, %s1128_s26  ;;  %s580_s5 = sadd.s32 1, %s1132_s5   ;;  %s1132_s5 = sphi %s1130_s5, %s580_s5   ;;  %s1128_s26 = sphi %s1126_s26, %s1127_s26   ;;  %s1124_s24 = sphi %s1122_s24, %s593_s24   ;;  %s1120_s22 = sphi %s1118_s22, %s594_s22  }
 0x16e   : >> { %587 = vst [vmem:[%s1120_s22] sm:$0xff] %v586_v24  ;;  %p589_p4 = scmp.ge.s32.totalorder %s588_s15, %s1342_s14  ;;  %p579_p5 = scmp.ge.s32.totalorder %s580_s5, %s1342_s14 }
 0x170   : >> { %s1391_s15 = smov (%p589_p4, %s588_s15), 0  ;;  %582 = sbr.rel (!%p579_p5) target bundleno = 365 (0x16d), region = 159 }
 0x171   : >> { %s794_s28 = sshll.u32 %s1391_s15, 3  ;;  %s1127_s26 = smov %s1391_s15  }
 0x172   : >> { %s593_s24 = scalar_lea.vmem %s574_s6, %s794_s28 [#allocation7]   ;;  %s594_s22 = scalar_lea.vmem %s576_s20, %s794_s28  }
 0x177 PF: > { %s16_s19 = sadd.s32 1, %s1100_s19   ;;  %s1380_s15 = smov %s1088_s16 }
 0x178   : > { %p13_p6 = scmp.ge.s32.totalorder %s16_s19, 4   ;;  %s1381_s16 = smov %s1212_s27 }
 0x179   : > { %s1382_s17 = smov %s1096_s18  ;;  %s1383_s18 = smov %s1385_s21 }
 0x17a   :  { %15 = sbr.rel (!%p13_p6) target bundleno = 4 (0x4), region = 170 }
 0x181   :  { %610 = vsyncpa [#allocation4], 1 }
 0x182   :  { %612 = vsyncpa [#allocation4 + $0x1], 1 }
 0x183   :  { %613 = vsyncpa [#allocation6], 1 }

// kernel: _lambda_.32
= control target key start
LH: loop header
LB: loop body
LE: loop exit
PB: predicated region body
PF: predicated region fallthrough
CT: control target
= control target key end

     0   :  { %s983_s15 = smov 0   ;;  %s985_s16 = smov 0   ;;  %s1101_s0 = inlined_call_operand.vmem [shape: bf16[32,384], index: 0, kind: input, shape index: {}]   ;;  %s1102_s1 = inlined_call_operand.vmem [shape: bf16[384,128], index: 1, kind: input, shape index: {}]   ;;  %s1103_s2 = inlined_call_operand.vmem [shape: f32[1,128], index: 2, kind: input, shape index: {}]   ;;  %s1104_s3 = inlined_call_operand.vmem [shape: f32[1,128], index: 3, kind: input, shape index: {}]   ;;  %s1105_s4 = inlined_call_operand.vmem [shape: bf16[32,128], index: 4, kind: output, shape index: {}]  }
   0x1   :  { %s987_s17 = smov 0  }
   0x2 LB: > { %s33_s18 = sadd.s32 1, %s950_s16  ;;  %p781_p0 = scmp.ge.s32.totalorder %s954_s17, 1  ;;  %s954_s17 = sphi %s987_s17, %s14_s17   ;;  %s950_s16 = sphi %s985_s16, %s1107_s16   ;;  %s946_s15 = sphi %s983_s15, %s1106_s15  }
   0x3   : > { %p35_p1 = scmp.ge.s32.totalorder %s33_s18, 2  ;;  %p224_p2 = scmp.lt.s32.totalorder %s954_s17, 3 }
   0x5   : > { %s1109_s18 = smov (%p35_p1, %s33_s18), 0  ;;  %p225_p3 = pnand %p781_p0, %p224_p2 }
   0x6   : > { %v904_v0 = vld [vmem:[%s1102_s1 + $0x40] sm:$0xff] (!%p225_p3)   ;;  %v956_v1 = vmov (!%p225_p3), 0.0   ;;  %v907_v4 = vld [vmem:[%s1102_s1 + $0x48] sm:$0xff] (!%p225_p3)   ;;  %vm957_vm0 = vmmov (!%p225_p3), 0   ;;  %v910_v7 = vld [vmem:[%s1102_s1 + $0x50] sm:$0xff] (!%p225_p3)   ;;  %s782_s9 = sshll.u32 (!%p225_p3), %s946_s15, 1 }
   0x7   : > { %228 = sbr.rel (%p225_p3) target bundleno = 265 (0x109), region = 36  ;;  %857 = vmatprep.subr.bf16.mxu1 (!%p225_p3), %v956_v1  ;;  %v905_v2 = vld [vmem:[%s1102_s1] sm:$0xff] (!%p225_p3)   ;;  %826 = vmatprep.subr.bf16.mxu0 (!%p225_p3), %v904_v0  ;;  %v908_v5 = vld [vmem:[%s1102_s1 + $0x8] sm:$0xff] (!%p225_p3)   ;;  %v911_v8 = vld [vmem:[%s1102_s1 + $0x10] sm:$0xff] (!%p225_p3)   ;;  %p274_p4 = scmp.lt.s32.totalorder (!%p225_p3), %s782_s9, 3 }
   0x8   : > { %v906_v3 = vld [vmem:[%s1102_s1 + $0x80] sm:$0xff] (!%p225_p3)   ;;  %827 = vmatpush3.bf16.msra.mxu0 (!%p225_p3), %v905_v2  ;;  %873 = vmatprep.mubr.msk.bf16.mxu1 (!%p225_p3), %vm957_vm0, %v956_v1  ;;  %v909_v6 = vld [vmem:[%s1102_s1 + $0x88] sm:$0xff] (!%p225_p3)   ;;  %v912_v9 = vld [vmem:[%s1102_s1 + $0x90] sm:$0xff] (!%p225_p3)  }
   0x9   : > { %858 = vmatpush3.bf16.msra.mxu1 (!%p225_p3), %v906_v3  ;;  %828 = vmatprep.subr.bf16.mxu0 (!%p225_p3), %v907_v4  ;;  %v913_v10 = vld [vmem:[%s1102_s1 + $0x58] sm:$0xff] (!%p225_p3)   ;;  %v916_v13 = vld [vmem:[%s1102_s1 + $0x60] sm:$0xff] (!%p225_p3)   ;;  %v919_v16 = vld [vmem:[%s1102_s1 + $0x68] sm:$0xff] (!%p225_p3)  }
   0xa   : > { %859 = vmatprep.subr.bf16.mxu1 (!%p225_p3), %v956_v1  ;;  %v914_v11 = vld [vmem:[%s1102_s1 + $0x18] sm:$0xff] (!%p225_p3)   ;;  %v917_v14 = vld [vmem:[%s1102_s1 + $0x20] sm:$0xff] (!%p225_p3)   ;;  %v920_v17 = vld [vmem:[%s1102_s1 + $0x28] sm:$0xff] (!%p225_p3)  }
   0xb   : > { %v915_v12 = vld [vmem:[%s1102_s1 + $0x98] sm:$0xff] (!%p225_p3)   ;;  %v918_v15 = vld [vmem:[%s1102_s1 + $0xa0] sm:$0xff] (!%p225_p3)   ;;  %v921_v18 = vld [vmem:[%s1102_s1 + $0xa8] sm:$0xff] (!%p225_p3)  }
   0xc   : > { %829 = vmatpush3.bf16.msra.mxu0 (!%p225_p3), %v908_v5  ;;  %v922_v19 = vld [vmem:[%s1102_s1 + $0x70] sm:$0xff] (!%p225_p3)   ;;  %v925_v22 = vld [vmem:[%s1102_s1 + $0x78] sm:$0xff] (!%p225_p3)   ;;  %v813_v34 = vld [vmem:[%s1103_s2] ss:$0 sm:$0xff] (!%p225_p3) }
   0xd   : > { %860 = vmatpush3.bf16.msra.mxu1 (!%p225_p3), %v909_v6  ;;  %830 = vmatprep.subr.bf16.mxu0 (!%p225_p3), %v910_v7  ;;  %v923_v20 = vld [vmem:[%s1102_s1 + $0x30] sm:$0xff] (!%p225_p3)   ;;  %v926_v24 = vld [vmem:[%s1102_s1 + $0x38] sm:$0xff] (!%p225_p3)   ;;  %v814_v42 = vld [vmem:[%s1104_s3] ss:$0 sm:$0xff] (!%p225_p3) }
   0xe   : > { %861 = vmatprep.subr.bf16.mxu1 %v956_v1  ;;  %s1111_s9 = smov (!%p274_p4, %s782_s9), 3  ;;  %v924_v21 = vld [vmem:[%s1102_s1 + $0xb0] sm:$0xff]   ;;  %v927_v25 = vld [vmem:[%s1102_s1 + $0xb8] sm:$0xff]  }
   0xf   : > { %s877_s5 = smul.u32 12, %s1111_s9 }
  0x10   : > { %831 = vmatpush3.bf16.msra.mxu0 %v911_v8 }
  0x11   : > { %862 = vmatpush3.bf16.msra.mxu1 %v912_v9  ;;  %832 = vmatprep.subr.bf16.mxu0 %v913_v10  ;;  %s281_s19 = scalar_lea.vmem %s1101_s0, %s877_s5  ;;  %s785_s5 = sshll.u32 %s1111_s9, 2 }
  0x12   : > { %863 = vmatprep.subr.bf16.mxu1 %v956_v1  ;;  %v930_v23 = vld [vmem:[%s281_s19 + $0x4] ss:$12 sps:$4 sm:$0xff]   ;;  %v928_v26 = vld [vmem:[%s281_s19] ss:$12 sps:$4 sm:$0xff]   ;;  %v931_v27 = vld [vmem:[%s281_s19 + $0x8] ss:$12 sps:$4 sm:$0xff]   ;;  %s306_s8 = scalar_lea.vmem %s1105_s4, %s785_s5 }
  0x13   : > { %561 = vmatprep.mubr.bf16.mxu0 %v930_v23 }
  0x14   : > { %833 = vmatpush3.bf16.msra.mxu0 %v914_v11 }
  0x15   : > { %864 = vmatpush3.bf16.msra.mxu1 %v915_v12  ;;  %834 = vmatprep.subr.bf16.mxu0 %v916_v13 }
  0x16   : > { %865 = vmatprep.subr.bf16.mxu1 %v956_v1 }
  0x18   : > { %835 = vmatpush3.bf16.msra.mxu0 %v917_v14 }
  0x19   : > { %866 = vmatpush3.bf16.msra.mxu1 %v918_v15  ;;  %836 = vmatprep.subr.bf16.mxu0 %v919_v16 }
  0x1a   : > { %867 = vmatprep.subr.bf16.mxu1 %v956_v1 }
  0x1c   : > { %837 = vmatpush3.bf16.msra.mxu0 %v920_v17 }
  0x1d   : > { %868 = vmatpush3.bf16.msra.mxu1 %v921_v18  ;;  %838 = vmatprep.subr.bf16.mxu0 %v922_v19 }
  0x1e   : > { %869 = vmatprep.subr.bf16.mxu1 %v956_v1 }
  0x20   : > { %839 = vmatpush3.bf16.msra.mxu0 %v923_v20 }
  0x21   : > { %870 = vmatpush3.bf16.msra.mxu1 %v924_v21  ;;  %840 = vmatprep.subr.bf16.mxu0 %v925_v22 }
  0x22   : > { %871 = vmatprep.subr.bf16.mxu1 %v956_v1 }
  0x24   : > { %841 = vmatpush3.bf16.msra.mxu0 %v926_v24 }
  0x25   : > { %872 = vmatpush3.bf16.msra.mxu1 %v927_v25 }
  0x27   : > { %562 = vmatmul.mubr.bf16.vlgmr.msra.gmra.mrb[0].mxu0 %v928_v26 }
  0x28   : > { %874 = vmatmul.mubr.bf16.vlgmr.msra.gmra.mrb[0].mxu1 %v931_v27 }
  0xfa   : > { %v842_v28 = vpop.f32.mrb[0].mxu0 }
  0xfb   : > { %v604_v29 = vpop.f32.mrb[0].mxu1  ;;  %v843_v30 = vpop.f32.mrb[1].mxu0 }
  0xfc   : > { %v844_v31 = vadd.f32 %v843_v30, %v842_v28  ;;  %v875_v32 = vpop.f32.mrb[1].mxu1  ;;  %v845_v33 = vpop.f32.mrb[2].mxu0 }
  0xfd   : > { %v607_v35 = vpop.f32.mrb[2].mxu1  ;;  %v846_v36 = vpop.f32.mrb[3].mxu0 }
  0xfe   : > { %v605_v37 = vadd.f32 %v844_v31, %v604_v29  ;;  %v847_v38 = vadd.f32 %v846_v36, %v845_v33  ;;  %v876_v39 = vpop.f32.mrb[3].mxu1 }
 0x100   : > { %v627_v40 = vmul.f32 %v813_v34, %v605_v37  ;;  %v608_v41 = vadd.f32 %v847_v38, %v607_v35 }
 0x102   : > { %v628_v43 = vmul.f32 %v813_v34, %v608_v41  ;;  %v636_v44 = vadd.f32 %v814_v42, %v627_v40 }
 0x104   : > { %v637_v45 = vadd.f32 %v814_v42, %v628_v43 }
 0x106   : > { %v824_v46 = vpack.c.bf16 %v637_v45, %v636_v44 }
 0x108   : > { %825 = vst [vmem:[%s306_s8] sm:$0xff] %v824_v46  }
 0x109 PF: > { %s14_s17 = sadd.s32 1, %s954_s17   ;;  %s1106_s15 = smov %s950_s16 }
 0x10a   : > { %p11_p5 = scmp.ge.s32.totalorder %s14_s17, 4   ;;  %s1107_s16 = smov %s1109_s18 }
 0x10c   :  { %13 = sbr.rel (!%p11_p5) target bundleno = 2 (0x2), region = 83 }

// kernel: _lambda_.28
= control target key start
LH: loop header
LB: loop body
LE: loop exit
PB: predicated region body
PF: predicated region fallthrough
CT: control target
= control target key end

     0   :  { %10 = vsyncpa [#allocation4], 0  ;;  %s1367_s0 = inlined_call_operand.vmem [shape: bf16[32,384], index: 0, kind: input, shape index: {}]   ;;  %s1368_s1 = inlined_call_operand.vmem [shape: bf16[384,128], index: 1, kind: input, shape index: {}]   ;;  %s1369_s2 = inlined_call_operand.hbm [shape: f32[1,128], index: 2, kind: input, shape index: {}]   ;;  %s1370_s3 = inlined_call_operand.hbm [shape: f32[1,128], index: 3, kind: input, shape index: {}]   ;;  %s1371_s4 = inlined_call_operand.vmem [shape: f32[32,128], index: 4, kind: input, shape index: {}]   ;;  %s1372_s5 = inlined_call_operand.vmem [shape: bf16[32,128], index: 5, kind: output, shape index: {}]  }
   0x1   :  { %11 = vsyncpa [#allocation6], 0  ;;  %s1174_s18 = smov 0   ;;  %s1176_s19 = smov 0  }
   0x2   :  { %s1178_s20 = smov 0  }
   0x3 LB: > { %s869_s21 = sadd.s32 4294967295, %s1138_s20   ;;  %s36_s22 = sadd.s32 1, %s1134_s19  ;;  %s1138_s20 = sphi %s1178_s20, %s17_s20   ;;  %s1134_s19 = sphi %s1176_s19, %s1382_s19   ;;  %s1130_s18 = sphi %s1174_s18, %s1381_s18  }
   0x4   : > { %p38_p0 = scmp.ge.s32.totalorder %s36_s22, 2  ;;  %p871_p1 = scmp.ge.s32.totalorder %s1138_s20, 1 }
   0x5   : > { %p205_p2 = scmp.lt.s32.totalorder %s1138_s20, 3  ;;  %p1199_p4 = scmp.eq.s32.totalorder %s869_s21, 0 }
   0x6   : > { %s1384_s22 = smov (%p38_p0, %s36_s22), 0  ;;  %s1140_s25 = smov [#allocation3]  }
   0x7   : > { %p1195_p3 = pnand %p871_p1, %p205_p2  ;;  %s232_s26 = sshll.u32 %s1140_s25, 4  ;;  %s233_s26 = int_to_ptr.vmem [resolvable:$true] %s232_s26 }
   0x8   : > { %s1377_s24 = scalar_select %p1199_p4, 1, 0 }
   0x9   : > { %s1376_s23 = scalar_select %p1195_p3, 1, 0 }
   0xa   : > { %p985_p5 = pneg %p1195_p3  ;;  %s1141_s27 = smov [#allocation5]  }
   0xb   : > { %s245_s28 = sshll.u32 %s1141_s27, 4  ;;  %s1052_s7 = scalar_lea.hbm %s1369_s2, 16  ;;  %s1211_s28 = int_to_ptr.vmem [resolvable:$true] %s245_s28 }
   0xc   : > { %p1207_p6 = pnand %p1199_p4, %p985_p5  ;;  %p1053_p7 = scmp.ne.s32.totalorder %s1369_s2, %s1052_s7 }
   0xd   : > { %p1059_p11 = scmp.lt.u32.totalorder %s1052_s7, %s1369_s2 }
   0xe   : > { %p1054_p8 = pneg %p1207_p6 }
  0x10   : > { %p1055_p9 = pnand %p1054_p8, %p1053_p7 }
  0x12   : > { %p1056_p10 = pneg %p1055_p9 }
  0x14   : > { %p1061_p12 = pnand %p1059_p11, %p1056_p10 }
  0x16   : > { %1064 = shalt.err (!%p1061_p12)
}
  0x17   : > { %s1065_s12 = scalar_lea.vmem %s233_s26, 16  ;;  %s1072_s13 = scalar_lea.vmem %s233_s26, 32 }
  0x18   : > { %p1066_p13 = scmp.ne.s32.totalorder %s233_s26, %s1065_s12  ;;  %p1073_p2 = scmp.lt.s32.totalorder %s233_s26, %s233_s26 }
  0x19   : > { %p1074_p5 = scmp.lt.s32.totalorder %s1072_s13, %s1065_s12 }
  0x1a   : > { %p1068_p0 = pnand %p1066_p13, %p1054_p8 }
  0x1b   : > { %p1075_p4 = por %p1074_p5, %p1073_p2 }
  0x1c   : > { %p1069_p1 = pneg %p1068_p0 }
  0x1e   : > { %p1076_p3 = pnand %p1075_p4, %p1069_p1 }
  0x20   : > { %1079 = shalt.err (!%p1076_p3)
}
  0x21   : > { %988 = dma.hbm_to_vmem [thread:$0]  (!%p1207_p6), %s1369_s2, 16, %s233_s26, [#allocation4]  }
  0x22   : > { %s1080_s21 = scalar_lea.hbm %s1370_s3, 16 }
  0x23   : > { %p1081_p7 = scmp.ne.s32.totalorder %s1370_s3, %s1080_s21  ;;  %p1087_p3 = scmp.lt.u32.totalorder %s1080_s21, %s1370_s3 }
  0x25   : > { %p1083_p9 = pnand %p1081_p7, %p1054_p8 }
  0x27   : > { %p1084_p4 = pneg %p1083_p9 }
  0x29   : > { %p1089_p10 = pnand %p1087_p3, %p1084_p4 }
  0x2b   : > { %1092 = shalt.err (!%p1089_p10)
}
  0x2c   : > { %s1093_s26 = scalar_lea.vmem %s1211_s28, 16  ;;  %s1100_s7 = scalar_lea.vmem %s1211_s28, 32 }
  0x2d   : > { %p1094_p11 = scmp.ne.s32.totalorder %s1211_s28, %s1093_s26  ;;  %p1101_p0 = scmp.lt.s32.totalorder %s1211_s28, %s1211_s28 }
  0x2e   : > { %p1102_p1 = scmp.lt.s32.totalorder %s1100_s7, %s1093_s26 }
  0x2f   : > { %p1096_p12 = pnand %p1094_p11, %p1054_p8 }
  0x30   : > { %p1103_p2 = por %p1102_p1, %p1101_p0 }
  0x31   : > { %p1097_p13 = pneg %p1096_p12 }
  0x33   : > { %p1104_p5 = pnand %p1103_p2, %p1097_p13 }
  0x35   : > { %1107 = shalt.err (!%p1104_p5)
}
  0x36   : > { %991 = dma.hbm_to_vmem [thread:$0]  (!%p1207_p6), %s1370_s3, 16, %s1211_s28, [#allocation6]  }
  0x37   : > { %p1379_p7 = scmp.ne.s32.totalorder %s1376_s23, 0 }
  0x38   : > { %p1380_p8 = scmp.ne.s32.totalorder (!%p1379_p7), %s1377_s24, 0 }
  0x39   : > { %285 = sbr.rel (%p1379_p7) target bundleno = 331 (0x14b), region = 40 }
  0x40   : > { %1121 = dma.done.wait (%p1380_p8), [#allocation4], 16  }
  0x41   : > { %1123 = vsyncadd (%p1380_p8), [#allocation4], 4294967280 }
  0x42   : > { %1125 = dma.done.wait (%p1380_p8), [#allocation6], 16  }
  0x43   : > { %1127 = vsyncadd (%p1380_p8), [#allocation6], 4294967280  ;;  %v1142_v0 = vmov 0.0   ;;  %vm1143_vm0 = vmmov 0   ;;  %v1024_v1 = vld [vmem:[%s1368_s1 + $0x40] sm:$0xff]   ;;  %v1027_v4 = vld [vmem:[%s1368_s1 + $0x48] sm:$0xff]  }
  0x44   : > { %956 = vmatprep.subr.bf16.mxu1 %v1142_v0  ;;  %972 = vmatprep.mubr.msk.bf16.mxu1 %vm1143_vm0, %v1142_v0  ;;  %v1025_v2 = vld [vmem:[%s1368_s1] sm:$0xff]   ;;  %v1028_v5 = vld [vmem:[%s1368_s1 + $0x8] sm:$0xff]   ;;  %v1030_v7 = vld [vmem:[%s1368_s1 + $0x50] sm:$0xff]   ;;  %s879_s6 = sshll.u32 %s1130_s18, 1 }
  0x45   : > { %925 = vmatprep.subr.bf16.mxu0 %v1024_v1  ;;  %v1026_v3 = vld [vmem:[%s1368_s1 + $0x80] sm:$0xff]   ;;  %v1029_v6 = vld [vmem:[%s1368_s1 + $0x88] sm:$0xff]   ;;  %v1031_v8 = vld [vmem:[%s1368_s1 + $0x10] sm:$0xff]   ;;  %p343_p6 = scmp.lt.s32.totalorder %s879_s6, 3 }
  0x46   : > { %926 = vmatpush3.bf16.msra.mxu0 %v1025_v2  ;;  %957 = vmatpush3.bf16.msra.mxu1 %v1026_v3  ;;  %v1032_v9 = vld [vmem:[%s1368_s1 + $0x90] sm:$0xff]   ;;  %v1033_v10 = vld [vmem:[%s1368_s1 + $0x58] sm:$0xff]   ;;  %v1036_v13 = vld [vmem:[%s1368_s1 + $0x60] sm:$0xff]  }
  0x47   : > { %927 = vmatprep.subr.bf16.mxu0 %v1027_v4  ;;  %958 = vmatprep.subr.bf16.mxu1 %v1142_v0  ;;  %v1034_v11 = vld [vmem:[%s1368_s1 + $0x18] sm:$0xff]   ;;  %v1037_v14 = vld [vmem:[%s1368_s1 + $0x20] sm:$0xff]   ;;  %s1386_s6 = smov (!%p343_p6, %s879_s6), 3  ;;  %v1039_v16 = vld [vmem:[%s1368_s1 + $0x68] sm:$0xff]  }
  0x48   : > { %v1035_v12 = vld [vmem:[%s1368_s1 + $0x98] sm:$0xff]   ;;  %v1038_v15 = vld [vmem:[%s1368_s1 + $0xa0] sm:$0xff]   ;;  %v1040_v17 = vld [vmem:[%s1368_s1 + $0x28] sm:$0xff]   ;;  %s976_s25 = smul.u32 12, %s1386_s6  ;;  %s882_s16 = sshll.u32 %s1386_s6, 3 }
  0x49   : > { %v1041_v18 = vld [vmem:[%s1368_s1 + $0xa8] sm:$0xff]   ;;  %v1042_v19 = vld [vmem:[%s1368_s1 + $0x70] sm:$0xff]   ;;  %v1045_v22 = vld [vmem:[%s1368_s1 + $0x78] sm:$0xff]   ;;  %s884_s27 = sshll.u32 %s1386_s6, 2 }
  0x4a   : > { %928 = vmatpush3.bf16.msra.mxu0 %v1028_v5  ;;  %959 = vmatpush3.bf16.msra.mxu1 %v1029_v6  ;;  %v1043_v20 = vld [vmem:[%s1368_s1 + $0x30] sm:$0xff]   ;;  %s350_s29 = scalar_lea.vmem %s1367_s0, %s976_s25  ;;  %v1046_v24 = vld [vmem:[%s1368_s1 + $0x38] sm:$0xff]   ;;  %v912_v34 = vld [vmem:[#allocation3] ss:$0 sm:$0xff]  ;;  %s369_s25 = scalar_lea.vmem %s1371_s4, %s882_s16 }
  0x4b   : > { %929 = vmatprep.subr.bf16.mxu0 %v1030_v7  ;;  %960 = vmatprep.subr.bf16.mxu1 %v1142_v0  ;;  %v1044_v21 = vld [vmem:[%s1368_s1 + $0xb0] sm:$0xff]   ;;  %v1047_v25 = vld [vmem:[%s1368_s1 + $0xb8] sm:$0xff]   ;;  %v1048_v26 = vld [vmem:[%s350_s29] ss:$12 sps:$4 sm:$0xff]   ;;  %s378_s7 = scalar_lea.vmem %s1372_s5, %s884_s27 }
  0x4c   : > { %v1050_v23 = vld [vmem:[%s350_s29 + $0x4] ss:$12 sps:$4 sm:$0xff]   ;;  %v1051_v27 = vld [vmem:[%s350_s29 + $0x8] ss:$12 sps:$4 sm:$0xff]   ;;  %v913_v40 = vld [vmem:[#allocation5] ss:$0 sm:$0xff] }
  0x4d   : > { %633 = vmatprep.mubr.bf16.mxu0 %v1050_v23  ;;  %v710_v43 = vld [vmem:[%s369_s25] sm:$0xff]  ;;  %v711_v46 = vld [vmem:[%s369_s25 + $0x8] sm:$0xff] }
  0x4e   : > { %930 = vmatpush3.bf16.msra.mxu0 %v1031_v8  ;;  %961 = vmatpush3.bf16.msra.mxu1 %v1032_v9 }
  0x4f   : > { %931 = vmatprep.subr.bf16.mxu0 %v1033_v10  ;;  %962 = vmatprep.subr.bf16.mxu1 %v1142_v0 }
  0x52   : > { %932 = vmatpush3.bf16.msra.mxu0 %v1034_v11  ;;  %963 = vmatpush3.bf16.msra.mxu1 %v1035_v12 }
  0x53   : > { %933 = vmatprep.subr.bf16.mxu0 %v1036_v13  ;;  %964 = vmatprep.subr.bf16.mxu1 %v1142_v0 }
  0x56   : > { %934 = vmatpush3.bf16.msra.mxu0 %v1037_v14  ;;  %965 = vmatpush3.bf16.msra.mxu1 %v1038_v15 }
  0x57   : > { %935 = vmatprep.subr.bf16.mxu0 %v1039_v16  ;;  %966 = vmatprep.subr.bf16.mxu1 %v1142_v0 }
  0x5a   : > { %936 = vmatpush3.bf16.msra.mxu0 %v1040_v17  ;;  %967 = vmatpush3.bf16.msra.mxu1 %v1041_v18 }
  0x5b   : > { %937 = vmatprep.subr.bf16.mxu0 %v1042_v19  ;;  %968 = vmatprep.subr.bf16.mxu1 %v1142_v0 }
  0x5e   : > { %938 = vmatpush3.bf16.msra.mxu0 %v1043_v20  ;;  %969 = vmatpush3.bf16.msra.mxu1 %v1044_v21 }
  0x5f   : > { %939 = vmatprep.subr.bf16.mxu0 %v1045_v22  ;;  %970 = vmatprep.subr.bf16.mxu1 %v1142_v0 }
  0x62   : > { %940 = vmatpush3.bf16.msra.mxu0 %v1046_v24  ;;  %971 = vmatpush3.bf16.msra.mxu1 %v1047_v25 }
  0x65   : > { %634 = vmatmul.mubr.bf16.vlgmr.msra.gmra.mrb[0].mxu0 %v1048_v26  ;;  %973 = vmatmul.mubr.bf16.vlgmr.msra.gmra.mrb[0].mxu1 %v1051_v27 }
 0x138   : > { %v941_v28 = vpop.f32.mrb[0].mxu0  ;;  %v676_v29 = vpop.f32.mrb[0].mxu1 }
 0x139   : > { %v942_v30 = vpop.f32.mrb[1].mxu0  ;;  %v974_v32 = vpop.f32.mrb[1].mxu1 }
 0x13a   : > { %v943_v31 = vadd.f32 %v942_v30, %v941_v28  ;;  %v944_v33 = vpop.f32.mrb[2].mxu0  ;;  %v679_v35 = vpop.f32.mrb[2].mxu1 }
 0x13b   : > { %v945_v36 = vpop.f32.mrb[3].mxu0  ;;  %v975_v39 = vpop.f32.mrb[3].mxu1 }
 0x13c   : > { %v677_v37 = vadd.f32 %v943_v31, %v676_v29  ;;  %v946_v38 = vadd.f32 %v945_v36, %v944_v33 }
 0x13e   : > { %v699_v41 = vmul.f32 %v912_v34, %v677_v37  ;;  %v680_v42 = vadd.f32 %v946_v38, %v679_v35 }
 0x140   : > { %v708_v44 = vadd.f32 %v913_v40, %v699_v41  ;;  %v700_v45 = vmul.f32 %v912_v34, %v680_v42 }
 0x142   : > { %v712_v47 = vadd.f32 %v710_v43, %v708_v44  ;;  %v709_v48 = vadd.f32 %v913_v40, %v700_v45 }
 0x144   : > { %v713_v49 = vadd.f32 %v711_v46, %v709_v48  ;;  %v714_v50 = vmax.f32 %v712_v47, 0.0 }
 0x146   : > { %v715_v51 = vmax.f32 %v713_v49, 0.0 }
 0x148   : > { %v923_v52 = vpack.c.bf16 %v715_v51, %v714_v50 }
 0x14a   : > { %924 = vst [vmem:[%s378_s7] sm:$0xff] %v923_v52  }
 0x14b PF: > { %s17_s20 = sadd.s32 1, %s1138_s20   ;;  %s1381_s18 = smov %s1134_s19 }
 0x14c   : > { %p14_p9 = scmp.ge.s32.totalorder %s17_s20, 4   ;;  %s1382_s19 = smov %s1384_s22 }
 0x14e   :  { %16 = sbr.rel (!%p14_p9) target bundleno = 3 (0x3), region = 95 }
 0x155   :  { %754 = vsyncpa [#allocation4], 1 }
 0x156   :  { %756 = vsyncpa [#allocation4 + $0x1], 1 }
 0x157   :  { %757 = vsyncpa [#allocation6], 1 }

// kernel: _lambda_.39
= control target key start
LH: loop header
LB: loop body
LE: loop exit
PB: predicated region body
PF: predicated region fallthrough
CT: control target
= control target key end

     0   :  { %s733_s15 = smov 0   ;;  %s735_s16 = smov 0   ;;  %s803_s0 = inlined_call_operand.vmem [shape: bf16[32,128], index: 0, kind: input, shape index: {}]   ;;  %s804_s1 = inlined_call_operand.vmem [shape: bf16[128,128], index: 1, kind: input, shape index: {}]   ;;  %s805_s2 = inlined_call_operand.vmem [shape: f32[1,128], index: 2, kind: input, shape index: {}]   ;;  %s806_s3 = inlined_call_operand.vmem [shape: f32[1,128], index: 3, kind: input, shape index: {}]   ;;  %s807_s4 = inlined_call_operand.vmem [shape: bf16[32,128], index: 4, kind: output, shape index: {}]  }
   0x1   :  { %s737_s17 = smov 0  }
   0x2 LB: > { %s33_s18 = sadd.s32 1, %s700_s16  ;;  %p591_p0 = scmp.ge.s32.totalorder %s704_s17, 1  ;;  %s704_s17 = sphi %s737_s17, %s14_s17   ;;  %s700_s16 = sphi %s735_s16, %s809_s16   ;;  %s696_s15 = sphi %s733_s15, %s808_s15  }
   0x3   : > { %p35_p1 = scmp.ge.s32.totalorder %s33_s18, 2  ;;  %p221_p2 = scmp.lt.s32.totalorder %s704_s17, 3 }
   0x5   : > { %s811_s18 = smov (%p35_p1, %s33_s18), 0  ;;  %p222_p3 = pnand %p591_p0, %p221_p2 }
   0x6   : > { %v673_v0 = vld [vmem:[%s804_s1] sm:$0xff] (!%p222_p3)   ;;  %v706_v1 = vmov (!%p222_p3), 0.0   ;;  %v674_v2 = vld [vmem:[%s804_s1 + $0x8] sm:$0xff] (!%p222_p3)   ;;  %vm707_vm0 = vmmov (!%p222_p3), 0   ;;  %s592_s23 = sshll.u32 (!%p222_p3), %s696_s15, 1  ;;  %v675_v3 = vld [vmem:[%s804_s1 + $0x10] sm:$0xff] (!%p222_p3)  }
   0x7   : > { %225 = sbr.rel (%p222_p3) target bundleno = 262 (0x106), region = 36  ;;  %627 = vmatprep.subr.bf16.mxu0 (!%p222_p3), %v706_v1  ;;  %643 = vmatprep.mubr.msk.bf16.mxu0 (!%p222_p3), %vm707_vm0, %v706_v1  ;;  %p268_p4 = scmp.lt.s32.totalorder (!%p222_p3), %s592_s23, 3  ;;  %v676_v4 = vld [vmem:[%s804_s1 + $0x18] sm:$0xff] (!%p222_p3)   ;;  %v677_v5 = vld [vmem:[%s804_s1 + $0x20] sm:$0xff] (!%p222_p3)   ;;  %v678_v6 = vld [vmem:[%s804_s1 + $0x28] sm:$0xff] (!%p222_p3)  }
   0x8   : > { %628 = vmatpush3.bf16.msra.mxu0 (!%p222_p3), %v673_v0  ;;  %v679_v7 = vld [vmem:[%s804_s1 + $0x30] sm:$0xff] (!%p222_p3)   ;;  %v680_v8 = vld [vmem:[%s804_s1 + $0x38] sm:$0xff] (!%p222_p3)   ;;  %v605_v10 = vld [vmem:[%s805_s2] ss:$0 sm:$0xff] (!%p222_p3) }
   0x9   : > { %629 = vmatprep.subr.bf16.mxu0 (!%p222_p3), %v706_v1  ;;  %v606_v12 = vld [vmem:[%s806_s3] ss:$0 sm:$0xff] (!%p222_p3) }
   0xc   : > { %630 = vmatpush3.bf16.msra.mxu0 (!%p222_p3), %v674_v2 }
   0xd   : > { %631 = vmatprep.subr.bf16.mxu0 (!%p222_p3), %v706_v1 }
   0xe   : > { %s813_s23 = smov (!%p268_p4, %s592_s23), 3 }
   0xf   : > { %s593_s26 = sshll.u32 %s813_s23, 2 }
  0x10   : > { %s274_s29 = scalar_lea.vmem %s803_s0, %s593_s26  ;;  %632 = vmatpush3.bf16.msra.mxu0 %v675_v3  ;;  %s298_s24 = scalar_lea.vmem %s807_s4, %s593_s26 }
  0x11   : > { %633 = vmatprep.subr.bf16.mxu0 %v706_v1  ;;  %v681_v9 = vld [vmem:[%s274_s29] sm:$0xff]  }
  0x14   : > { %634 = vmatpush3.bf16.msra.mxu0 %v676_v4 }
  0x15   : > { %635 = vmatprep.subr.bf16.mxu0 %v706_v1 }
  0x18   : > { %636 = vmatpush3.bf16.msra.mxu0 %v677_v5 }
  0x19   : > { %637 = vmatprep.subr.bf16.mxu0 %v706_v1 }
  0x1c   : > { %638 = vmatpush3.bf16.msra.mxu0 %v678_v6 }
  0x1d   : > { %639 = vmatprep.subr.bf16.mxu0 %v706_v1 }
  0x20   : > { %640 = vmatpush3.bf16.msra.mxu0 %v679_v7 }
  0x21   : > { %641 = vmatprep.subr.bf16.mxu0 %v706_v1 }
  0x24   : > { %642 = vmatpush3.bf16.msra.mxu0 %v680_v8 }
  0x27   : > { %644 = vmatmul.mubr.bf16.vlgmr.msra.gmra.mrb[0].mxu0 %v681_v9 }
  0xfa   : > { %v415_v11 = vpop.f32.mrb[0].mxu0 }
  0xfb   : > { %v438_v13 = vmul.f32 %v605_v10, %v415_v11  ;;  %v645_v14 = vpop.f32.mrb[1].mxu0 }
  0xfc   : > { %v418_v15 = vpop.f32.mrb[2].mxu0 }
  0xfd   : > { %v447_v16 = vadd.f32 %v606_v12, %v438_v13  ;;  %v439_v17 = vmul.f32 %v605_v10, %v418_v15  ;;  %v646_v18 = vpop.f32.mrb[3].mxu0 }
  0xff   : > { %v448_v19 = vadd.f32 %v606_v12, %v439_v17  ;;  %v449_v20 = vmax.f32 %v447_v16, 0.0 }
 0x101   : > { %v450_v21 = vmax.f32 %v448_v19, 0.0 }
 0x103   : > { %v616_v22 = vpack.c.bf16 %v450_v21, %v449_v20 }
 0x105   : > { %617 = vst [vmem:[%s298_s24] sm:$0xff] %v616_v22  }
 0x106 PF: > { %s14_s17 = sadd.s32 1, %s704_s17   ;;  %s808_s15 = smov %s700_s16 }
 0x107   : > { %p11_p5 = scmp.ge.s32.totalorder %s14_s17, 4   ;;  %s809_s16 = smov %s811_s18 }
 0x109   :  { %13 = sbr.rel (!%p11_p5) target bundleno = 2 (0x2), region = 83 }

// kernel: _lambda_.41
= control target key start
LH: loop header
LB: loop body
LE: loop exit
PB: predicated region body
PF: predicated region fallthrough
CT: control target
= control target key end

     0   :  { %s2213_s15 = smov 0   ;;  %s2215_s16 = smov 0   ;;  %s2523_s0 = inlined_call_operand.vmem [shape: bf16[512,512], index: 0, kind: input, shape index: {}]   ;;  %s2524_s1 = inlined_call_operand.vmem [shape: bf16[512,128], index: 1, kind: input, shape index: {}]   ;;  %s2525_s2 = inlined_call_operand.vmem [shape: f32[1,128], index: 2, kind: input, shape index: {}]   ;;  %s2526_s3 = inlined_call_operand.vmem [shape: f32[1,128], index: 3, kind: input, shape index: {}]   ;;  %s2527_s4 = inlined_call_operand.vmem [shape: f32[512,128], index: 4, kind: output, shape index: {}]  }
   0x1   :  { %s2217_s17 = smov 0  }
   0x2 LB: > { %s33_s18 = sadd.s32 1, %s2182_s16  ;;  %p1681_p0 = scmp.ge.s32.totalorder %s2186_s17, 1  ;;  %s2186_s17 = sphi %s2217_s17, %s14_s17   ;;  %s2182_s16 = sphi %s2215_s16, %s2529_s16   ;;  %s2178_s15 = sphi %s2213_s15, %s2528_s15  }
   0x3   : > { %p35_p1 = scmp.ge.s32.totalorder %s33_s18, 2  ;;  %p224_p2 = scmp.lt.s32.totalorder %s2186_s17, 3 }
   0x5   : > { %s2531_s18 = smov (%p35_p1, %s33_s18), 0  ;;  %p225_p3 = pnand %p1681_p0, %p224_p2 }
   0x6   : > { %v2036_v0 = vld [vmem:[%s2524_s1 + $0x40] sm:$0xff] (!%p225_p3)   ;;  %v2040_v4 = vld [vmem:[%s2524_s1 + $0x48] sm:$0xff] (!%p225_p3)   ;;  %v2044_v8 = vld [vmem:[%s2524_s1 + $0x50] sm:$0xff] (!%p225_p3)   ;;  %s1682_s29 = sshll.u32 (!%p225_p3), %s2178_s15, 5 }
   0x7   : > { %228 = sbr.rel (%p225_p3) target bundleno = 385 (0x181), region = 36  ;;  %v2037_v1 = vld [vmem:[%s2524_s1 + $0xc0] sm:$0xff] (!%p225_p3)   ;;  %1788 = vmatprep.subr.bf16.mxu0 (!%p225_p3), %v2036_v0  ;;  %v2041_v5 = vld [vmem:[%s2524_s1 + $0xc8] sm:$0xff] (!%p225_p3)   ;;  %v2045_v9 = vld [vmem:[%s2524_s1 + $0xd0] sm:$0xff] (!%p225_p3)   ;;  %p274_p4 = scmp.lt.s32.totalorder (!%p225_p3), %s1682_s29, 63 }
   0x8   : > { %v2038_v2 = vld [vmem:[%s2524_s1] sm:$0xff] (!%p225_p3)   ;;  %1900 = vmatprep.subr.bf16.mxu1 (!%p225_p3), %v2037_v1  ;;  %v2042_v6 = vld [vmem:[%s2524_s1 + $0x8] sm:$0xff] (!%p225_p3)   ;;  %v2046_v10 = vld [vmem:[%s2524_s1 + $0x10] sm:$0xff] (!%p225_p3)  }
   0x9   : > { %v2039_v3 = vld [vmem:[%s2524_s1 + $0x80] sm:$0xff] (!%p225_p3)   ;;  %1789 = vmatpush3.bf16.msra.mxu0 (!%p225_p3), %v2038_v2  ;;  %v2043_v7 = vld [vmem:[%s2524_s1 + $0x88] sm:$0xff] (!%p225_p3)   ;;  %v2047_v11 = vld [vmem:[%s2524_s1 + $0x90] sm:$0xff] (!%p225_p3)  }
   0xa   : > { %1901 = vmatpush3.bf16.msra.mxu1 (!%p225_p3), %v2039_v3  ;;  %1790 = vmatprep.subr.bf16.mxu0 (!%p225_p3), %v2040_v4  ;;  %v2048_v12 = vld [vmem:[%s2524_s1 + $0x58] sm:$0xff] (!%p225_p3)   ;;  %v2052_v16 = vld [vmem:[%s2524_s1 + $0x60] sm:$0xff] (!%p225_p3)   ;;  %v2056_v20 = vld [vmem:[%s2524_s1 + $0x68] sm:$0xff] (!%p225_p3)  }
   0xb   : > { %1902 = vmatprep.subr.bf16.mxu1 (!%p225_p3), %v2041_v5  ;;  %v2049_v13 = vld [vmem:[%s2524_s1 + $0xd8] sm:$0xff] (!%p225_p3)   ;;  %v2053_v17 = vld [vmem:[%s2524_s1 + $0xe0] sm:$0xff] (!%p225_p3)   ;;  %v2057_v21 = vld [vmem:[%s2524_s1 + $0xe8] sm:$0xff] (!%p225_p3)  }
   0xc   : > { %v2050_v14 = vld [vmem:[%s2524_s1 + $0x18] sm:$0xff] (!%p225_p3)   ;;  %v2054_v18 = vld [vmem:[%s2524_s1 + $0x20] sm:$0xff] (!%p225_p3)   ;;  %v2058_v22 = vld [vmem:[%s2524_s1 + $0x28] sm:$0xff] (!%p225_p3)  }
   0xd   : > { %1791 = vmatpush3.bf16.msra.mxu0 (!%p225_p3), %v2042_v6  ;;  %v2051_v15 = vld [vmem:[%s2524_s1 + $0x98] sm:$0xff] (!%p225_p3)   ;;  %v2055_v19 = vld [vmem:[%s2524_s1 + $0xa0] sm:$0xff] (!%p225_p3)   ;;  %v2059_v23 = vld [vmem:[%s2524_s1 + $0xa8] sm:$0xff] (!%p225_p3)  }
   0xe   : > { %1903 = vmatpush3.bf16.msra.mxu1 %v2043_v7  ;;  %1792 = vmatprep.subr.bf16.mxu0 %v2044_v8  ;;  %s2533_s29 = smov (!%p274_p4, %s1682_s29), 63  ;;  %v2060_v24 = vld [vmem:[%s2524_s1 + $0x70] sm:$0xff]   ;;  %v2064_v28 = vld [vmem:[%s2524_s1 + $0x78] sm:$0xff]  }
   0xf   : > { %1904 = vmatprep.subr.bf16.mxu1 %v2045_v9  ;;  %v2061_v25 = vld [vmem:[%s2524_s1 + $0xf0] sm:$0xff]   ;;  %s1787_s30 = sshll.u32 %s2533_s29, 4  ;;  %v2065_v29 = vld [vmem:[%s2524_s1 + $0xf8] sm:$0xff]   ;;  %s1686_s23 = sshll.u32 %s2533_s29, 3 }
  0x10   : > { %v2062_v26 = vld [vmem:[%s2524_s1 + $0x30] sm:$0xff]   ;;  %s2330_s12 = scalar_lea.vmem %s2523_s0, %s1787_s30  ;;  %v2066_v30 = vld [vmem:[%s2524_s1 + $0x38] sm:$0xff]   ;;  %s2417_s28 = scalar_lea.vmem %s2527_s4, %s1686_s23 }
  0x11   : > { %1793 = vmatpush3.bf16.msra.mxu0 %v2046_v10  ;;  %v2063_v27 = vld [vmem:[%s2524_s1 + $0xb0] sm:$0xff]   ;;  %v2067_v31 = vld [vmem:[%s2524_s1 + $0xb8] sm:$0xff]  }
  0x12   : > { %1905 = vmatpush3.bf16.msra.mxu1 %v2047_v11  ;;  %1794 = vmatprep.subr.bf16.mxu0 %v2048_v12  ;;  %v2068_v32 = vld [vmem:[%s2330_s12] ss:$16 sps:$4 sm:$0xff]   ;;  %v2070_v33 = vld [vmem:[%s2330_s12 + $0x4] ss:$16 sps:$4 sm:$0xff]   ;;  %v2071_v34 = vld [vmem:[%s2330_s12 + $0x8] ss:$16 sps:$4 sm:$0xff]  }
  0x13   : > { %1906 = vmatprep.subr.bf16.mxu1 %v2049_v13  ;;  %v2073_v35 = vld [vmem:[%s2330_s12 + $0xc] ss:$16 sps:$4 sm:$0xff]   ;;  %1049 = vmatprep.mubr.bf16.mxu0 %v2070_v33  ;;  %v2074_v36 = vld [vmem:[%s2330_s12 + $0x24] ss:$16 sps:$4 sm:$0xff]   ;;  %v2078_v38 = vld [vmem:[%s2330_s12 + $0x20] ss:$16 sps:$4 sm:$0xff]  }
  0x14   : > { %1210 = vmatprep.mubr.bf16.mxu1 %v2073_v35  ;;  %v2076_v37 = vld [vmem:[%s2330_s12 + $0x2c] ss:$16 sps:$4 sm:$0xff]   ;;  %v2079_v39 = vld [vmem:[%s2330_s12 + $0x28] ss:$16 sps:$4 sm:$0xff]   ;;  %v2080_v40 = vld [vmem:[%s2330_s12 + $0x44] ss:$16 sps:$4 sm:$0xff]  }
  0x15   : > { %1795 = vmatpush3.bf16.msra.mxu0 %v2050_v14  ;;  %v2082_v41 = vld [vmem:[%s2330_s12 + $0x4c] ss:$16 sps:$4 sm:$0xff]   ;;  %v2084_v42 = vld [vmem:[%s2330_s12 + $0x40] ss:$16 sps:$4 sm:$0xff]   ;;  %v2085_v43 = vld [vmem:[%s2330_s12 + $0x48] ss:$16 sps:$4 sm:$0xff]  }
  0x16   : > { %1907 = vmatpush3.bf16.msra.mxu1 %v2051_v15  ;;  %1796 = vmatprep.subr.bf16.mxu0 %v2052_v16  ;;  %v2086_v44 = vld [vmem:[%s2330_s12 + $0x64] ss:$16 sps:$4 sm:$0xff]   ;;  %v2088_v45 = vld [vmem:[%s2330_s12 + $0x6c] ss:$16 sps:$4 sm:$0xff]   ;;  %v2090_v46 = vld [vmem:[%s2330_s12 + $0x60] ss:$16 sps:$4 sm:$0xff]  }
  0x17   : > { %1908 = vmatprep.subr.bf16.mxu1 %v2053_v17  ;;  %v2091_v47 = vld [vmem:[%s2330_s12 + $0x68] ss:$16 sps:$4 sm:$0xff]   ;;  %v2092_v48 = vld [vmem:[%s2330_s12 + $0x84] ss:$16 sps:$4 sm:$0xff]   ;;  %v2094_v49 = vld [vmem:[%s2330_s12 + $0x8c] ss:$16 sps:$4 sm:$0xff]  }
  0x18   : > { %v2096_v50 = vld [vmem:[%s2330_s12 + $0x80] ss:$16 sps:$4 sm:$0xff]   ;;  %v2097_v51 = vld [vmem:[%s2330_s12 + $0x88] ss:$16 sps:$4 sm:$0xff]   ;;  %v2098_v52 = vld [vmem:[%s2330_s12 + $0xa4] ss:$16 sps:$4 sm:$0xff]  }
  0x19   : > { %1797 = vmatpush3.bf16.msra.mxu0 %v2054_v18  ;;  %v2100_v53 = vld [vmem:[%s2330_s12 + $0xac] ss:$16 sps:$4 sm:$0xff]   ;;  %v2102_v54 = vld [vmem:[%s2330_s12 + $0xa0] ss:$16 sps:$4 sm:$0xff]   ;;  %v2103_v55 = vld [vmem:[%s2330_s12 + $0xa8] ss:$16 sps:$4 sm:$0xff]  }
  0x1a   : > { %1909 = vmatpush3.bf16.msra.mxu1 %v2055_v19  ;;  %1798 = vmatprep.subr.bf16.mxu0 %v2056_v20  ;;  %v2104_v56 = vld [vmem:[%s2330_s12 + $0xc4] ss:$16 sps:$4 sm:$0xff]   ;;  %v2106_v57 = vld [vmem:[%s2330_s12 + $0xcc] ss:$16 sps:$4 sm:$0xff]   ;;  %v2108_v58 = vld [vmem:[%s2330_s12 + $0xc0] ss:$16 sps:$4 sm:$0xff]  }
  0x1b   : > { %1910 = vmatprep.subr.bf16.mxu1 %v2057_v21  ;;  %v2109_v59 = vld [vmem:[%s2330_s12 + $0xc8] ss:$16 sps:$4 sm:$0xff]   ;;  %v2110_v60 = vld [vmem:[%s2330_s12 + $0xe4] ss:$16 sps:$4 sm:$0xff]   ;;  %v2112_v61 = vld [vmem:[%s2330_s12 + $0xec] ss:$16 sps:$4 sm:$0xff]  }
  0x1c   : > { %v2114_v62 = vld [vmem:[%s2330_s12 + $0xe0] ss:$16 sps:$4 sm:$0xff]   ;;  %v2115_v63 = vld [vmem:[%s2330_s12 + $0xe8] ss:$16 sps:$4 sm:$0xff]   ;;  %v2116_v0 = vld [vmem:[%s2330_s12 + $0x104] ss:$16 sps:$4 sm:$0xff]  }
  0x1d   : > { %1799 = vmatpush3.bf16.msra.mxu0 %v2058_v22  ;;  %v2118_v1 = vld [vmem:[%s2330_s12 + $0x10c] ss:$16 sps:$4 sm:$0xff]   ;;  %v2120_v2 = vld [vmem:[%s2330_s12 + $0x100] ss:$16 sps:$4 sm:$0xff]   ;;  %v2121_v3 = vld [vmem:[%s2330_s12 + $0x108] ss:$16 sps:$4 sm:$0xff]  }
  0x1e   : > { %1911 = vmatpush3.bf16.msra.mxu1 %v2059_v23  ;;  %1800 = vmatprep.subr.bf16.mxu0 %v2060_v24  ;;  %v2122_v4 = vld [vmem:[%s2330_s12 + $0x124] ss:$16 sps:$4 sm:$0xff]   ;;  %v2124_v5 = vld [vmem:[%s2330_s12 + $0x12c] ss:$16 sps:$4 sm:$0xff]   ;;  %v2126_v6 = vld [vmem:[%s2330_s12 + $0x120] ss:$16 sps:$4 sm:$0xff]  }
  0x1f   : > { %1912 = vmatprep.subr.bf16.mxu1 %v2061_v25  ;;  %v2127_v7 = vld [vmem:[%s2330_s12 + $0x128] ss:$16 sps:$4 sm:$0xff]   ;;  %v2128_v8 = vld [vmem:[%s2330_s12 + $0x144] ss:$16 sps:$4 sm:$0xff]   ;;  %v2130_v9 = vld [vmem:[%s2330_s12 + $0x14c] ss:$16 sps:$4 sm:$0xff]  }
  0x20   : > { %v2132_v10 = vld [vmem:[%s2330_s12 + $0x140] ss:$16 sps:$4 sm:$0xff]   ;;  %v2133_v11 = vld [vmem:[%s2330_s12 + $0x148] ss:$16 sps:$4 sm:$0xff]   ;;  %v2134_v12 = vld [vmem:[%s2330_s12 + $0x164] ss:$16 sps:$4 sm:$0xff]  }
  0x21   : > { %1801 = vmatpush3.bf16.msra.mxu0 %v2062_v26  ;;  %v2136_v13 = vld [vmem:[%s2330_s12 + $0x16c] ss:$16 sps:$4 sm:$0xff]   ;;  %v2138_v14 = vld [vmem:[%s2330_s12 + $0x160] ss:$16 sps:$4 sm:$0xff]   ;;  %v2139_v15 = vld [vmem:[%s2330_s12 + $0x168] ss:$16 sps:$4 sm:$0xff]  }
  0x22   : > { %1913 = vmatpush3.bf16.msra.mxu1 %v2063_v27  ;;  %1802 = vmatprep.subr.bf16.mxu0 %v2064_v28  ;;  %v2140_v16 = vld [vmem:[%s2330_s12 + $0x184] ss:$16 sps:$4 sm:$0xff]   ;;  %v2142_v17 = vld [vmem:[%s2330_s12 + $0x18c] ss:$16 sps:$4 sm:$0xff]   ;;  %v2144_v18 = vld [vmem:[%s2330_s12 + $0x180] ss:$16 sps:$4 sm:$0xff]  }
  0x23   : > { %1914 = vmatprep.subr.bf16.mxu1 %v2065_v29  ;;  %v2145_v19 = vld [vmem:[%s2330_s12 + $0x188] ss:$16 sps:$4 sm:$0xff]   ;;  %v2146_v20 = vld [vmem:[%s2330_s12 + $0x1a4] ss:$16 sps:$4 sm:$0xff]   ;;  %v2148_v21 = vld [vmem:[%s2330_s12 + $0x1ac] ss:$16 sps:$4 sm:$0xff]  }
  0x24   : > { %v2150_v22 = vld [vmem:[%s2330_s12 + $0x1a0] ss:$16 sps:$4 sm:$0xff]   ;;  %v2151_v23 = vld [vmem:[%s2330_s12 + $0x1a8] ss:$16 sps:$4 sm:$0xff]   ;;  %v2152_v24 = vld [vmem:[%s2330_s12 + $0x1c4] ss:$16 sps:$4 sm:$0xff]  }
  0x25   : > { %1803 = vmatpush3.bf16.msra.mxu0 %v2066_v30  ;;  %v2154_v25 = vld [vmem:[%s2330_s12 + $0x1cc] ss:$16 sps:$4 sm:$0xff]   ;;  %v2156_v26 = vld [vmem:[%s2330_s12 + $0x1c0] ss:$16 sps:$4 sm:$0xff]   ;;  %v2157_v27 = vld [vmem:[%s2330_s12 + $0x1c8] ss:$16 sps:$4 sm:$0xff]  }
  0x26   : > { %1915 = vmatpush3.bf16.msra.mxu1 %v2067_v31  ;;  %v2158_v28 = vld [vmem:[%s2330_s12 + $0x1e4] ss:$16 sps:$4 sm:$0xff]   ;;  %v2160_v29 = vld [vmem:[%s2330_s12 + $0x1ec] ss:$16 sps:$4 sm:$0xff]   ;;  %v2162_v30 = vld [vmem:[%s2330_s12 + $0x1e0] ss:$16 sps:$4 sm:$0xff]  }
  0x27   : > { %v2163_v31 = vld [vmem:[%s2330_s12 + $0x1e8] ss:$16 sps:$4 sm:$0xff]  }
  0x28   : > { %1050 = vmatmul.mubr.bf16.vlgmr.msra.gmra.mrb[0].mxu0 %v2068_v32 }
  0x29   : > { %1211 = vmatmul.mubr.bf16.vlgmr.msra.gmra.mrb[0].mxu1 %v2071_v34  ;;  %1057 = vmatprep.mubr.bf16.mxu0 %v2074_v36 }
  0x2a   : > { %1218 = vmatprep.mubr.bf16.mxu1 %v2076_v37 }
  0x30   : > { %1058 = vmatmul.mubr.bf16.gmra.mrb[4].mxu0 %v2078_v38 }
  0x31   : > { %1219 = vmatmul.mubr.bf16.gmra.mrb[4].mxu1 %v2079_v39  ;;  %1065 = vmatprep.mubr.bf16.mxu0 %v2080_v40 }
  0x32   : > { %1226 = vmatprep.mubr.bf16.mxu1 %v2082_v41  ;;  %v2405_v41 = vld [vmem:[%s2525_s2] ss:$0 sm:$0xff] }
  0x38   : > { %1066 = vmatmul.mubr.bf16.gmra.mrb[8].mxu0 %v2084_v42 }
  0x39   : > { %1227 = vmatmul.mubr.bf16.gmra.mrb[8].mxu1 %v2085_v43  ;;  %1073 = vmatprep.mubr.bf16.mxu0 %v2086_v44 }
  0x3a   : > { %1234 = vmatprep.mubr.bf16.mxu1 %v2088_v45 }
  0x40   : > { %1074 = vmatmul.mubr.bf16.gmra.mrb[12].mxu0 %v2090_v46  ;;  %v2411_v46 = vld [vmem:[%s2526_s3] ss:$0 sm:$0xff] }
  0x41   : > { %1235 = vmatmul.mubr.bf16.gmra.mrb[12].mxu1 %v2091_v47  ;;  %1081 = vmatprep.mubr.bf16.mxu0 %v2092_v48 }
  0x42   : > { %1242 = vmatprep.mubr.bf16.mxu1 %v2094_v49 }
  0x48   : > { %1082 = vmatmul.mubr.bf16.gmra.mrb[16].mxu0 %v2096_v50 }
  0x49   : > { %1243 = vmatmul.mubr.bf16.gmra.mrb[16].mxu1 %v2097_v51  ;;  %1089 = vmatprep.mubr.bf16.mxu0 %v2098_v52 }
  0x4a   : > { %1250 = vmatprep.mubr.bf16.mxu1 %v2100_v53 }
  0x50   : > { %1090 = vmatmul.mubr.bf16.gmra.mrb[20].mxu0 %v2102_v54 }
  0x51   : > { %1251 = vmatmul.mubr.bf16.gmra.mrb[20].mxu1 %v2103_v55  ;;  %1097 = vmatprep.mubr.bf16.mxu0 %v2104_v56 }
  0x52   : > { %1258 = vmatprep.mubr.bf16.mxu1 %v2106_v57 }
  0x58   : > { %1098 = vmatmul.mubr.bf16.gmra.mrb[24].mxu0 %v2108_v58 }
  0x59   : > { %1259 = vmatmul.mubr.bf16.gmra.mrb[24].mxu1 %v2109_v59  ;;  %1105 = vmatprep.mubr.bf16.mxu0 %v2110_v60 }
  0x5a   : > { %1266 = vmatprep.mubr.bf16.mxu1 %v2112_v61 }
  0x60   : > { %1106 = vmatmul.mubr.bf16.gmra.mrb[28].mxu0 %v2114_v62 }
  0x61   : > { %1267 = vmatmul.mubr.bf16.gmra.mrb[28].mxu1 %v2115_v63  ;;  %1113 = vmatprep.mubr.bf16.mxu0 %v2116_v0 }
  0x62   : > { %1274 = vmatprep.mubr.bf16.mxu1 %v2118_v1 }
  0x68   : > { %1114 = vmatmul.mubr.bf16.gmra.mrb[32].mxu0 %v2120_v2 }
  0x69   : > { %1275 = vmatmul.mubr.bf16.gmra.mrb[32].mxu1 %v2121_v3  ;;  %1121 = vmatprep.mubr.bf16.mxu0 %v2122_v4 }
  0x6a   : > { %1282 = vmatprep.mubr.bf16.mxu1 %v2124_v5 }
  0x70   : > { %1122 = vmatmul.mubr.bf16.gmra.mrb[36].mxu0 %v2126_v6 }
  0x71   : > { %1283 = vmatmul.mubr.bf16.gmra.mrb[36].mxu1 %v2127_v7  ;;  %1129 = vmatprep.mubr.bf16.mxu0 %v2128_v8 }
  0x72   : > { %1290 = vmatprep.mubr.bf16.mxu1 %v2130_v9 }
  0x78   : > { %1130 = vmatmul.mubr.bf16.gmra.mrb[40].mxu0 %v2132_v10 }
  0x79   : > { %1291 = vmatmul.mubr.bf16.gmra.mrb[40].mxu1 %v2133_v11  ;;  %1137 = vmatprep.mubr.bf16.mxu0 %v2134_v12 }
  0x7a   : > { %1298 = vmatprep.mubr.bf16.mxu1 %v2136_v13 }
  0x80   : > { %1138 = vmatmul.mubr.bf16.gmra.mrb[44].mxu0 %v2138_v14 }
  0x81   : > { %1299 = vmatmul.mubr.bf16.gmra.mrb[44].mxu1 %v2139_v15  ;;  %1145 = vmatprep.mubr.bf16.mxu0 %v2140_v16 }
  0x82   : > { %1306 = vmatprep.mubr.bf16.mxu1 %v2142_v17 }
  0x88   : > { %1146 = vmatmul.mubr.bf16.gmra.mrb[48].mxu0 %v2144_v18 }
  0x89   : > { %1307 = vmatmul.mubr.bf16.gmra.mrb[48].mxu1 %v2145_v19  ;;  %1153 = vmatprep.mubr.bf16.mxu0 %v2146_v20 }
  0x8a   : > { %1314 = vmatprep.mubr.bf16.mxu1 %v2148_v21 }
  0x90   : > { %1154 = vmatmul.mubr.bf16.gmra.mrb[52].mxu0 %v2150_v22 }
  0x91   : > { %1315 = vmatmul.mubr.bf16.gmra.mrb[52].mxu1 %v2151_v23  ;;  %1161 = vmatprep.mubr.bf16.mxu0 %v2152_v24 }
  0x92   : > { %1322 = vmatprep.mubr.bf16.mxu1 %v2154_v25 }
  0x98   : > { %1162 = vmatmul.mubr.bf16.gmra.mrb[56].mxu0 %v2156_v26 }
  0x99   : > { %1323 = vmatmul.mubr.bf16.gmra.mrb[56].mxu1 %v2157_v27  ;;  %1169 = vmatprep.mubr.bf16.mxu0 %v2158_v28 }
  0x9a   : > { %1330 = vmatprep.mubr.bf16.mxu1 %v2160_v29 }
  0xa0   : > { %1170 = vmatmul.mubr.bf16.gmra.mrb[60].mxu0 %v2162_v30 }
  0xa1   : > { %1331 = vmatmul.mubr.bf16.gmra.mrb[60].mxu1 %v2163_v31 }
  0xfb   : > { %v1804_v32 = vpop.f32.mrb[0].mxu0 }
  0xfc   : > { %v1916_v33 = vpop.f32.mrb[0].mxu1  ;;  %v1805_v34 = vpop.f32.mrb[1].mxu0 }
  0xfd   : > { %v1806_v35 = vadd.f32 %v1805_v34, %v1804_v32  ;;  %v1917_v36 = vpop.f32.mrb[1].mxu1  ;;  %v1807_v37 = vpop.f32.mrb[2].mxu0 }
  0xfe   : > { %v1918_v38 = vadd.f32 %v1917_v36, %v1916_v33  ;;  %v1919_v39 = vpop.f32.mrb[2].mxu1  ;;  %v1808_v40 = vpop.f32.mrb[3].mxu0 }
  0xff   : > { %v1809_v42 = vadd.f32 %v1808_v40, %v1807_v37  ;;  %v1920_v43 = vpop.f32.mrb[3].mxu1 }
 0x100   : > { %v1213_v44 = vadd.f32 %v1918_v38, %v1806_v35  ;;  %v1921_v45 = vadd.f32 %v1920_v43, %v1919_v39 }
 0x102   : > { %v1445_v47 = vmul.f32 %v2405_v41, %v1213_v44  ;;  %v1216_v48 = vadd.f32 %v1921_v45, %v1809_v42 }
 0x103   : > { %v1810_v49 = vpop.f32.mrb[4].mxu0 }
 0x104   : > { %v1484_v50 = vadd.f32 %v2411_v46, %v1445_v47  ;;  %v1446_v51 = vmul.f32 %v2405_v41, %v1216_v48  ;;  %v1922_v52 = vpop.f32.mrb[4].mxu1  ;;  %v1811_v53 = vpop.f32.mrb[5].mxu0 }
 0x105   : > { %v1812_v54 = vadd.f32 %v1811_v53, %v1810_v49  ;;  %v1923_v55 = vpop.f32.mrb[5].mxu1  ;;  %v1813_v56 = vpop.f32.mrb[6].mxu0 }
 0x106   : > { %1516 = vst [vmem:[%s2417_s28] sm:$0xff] %v1484_v50  ;;  %v1485_v57 = vadd.f32 %v2411_v46, %v1446_v51  ;;  %v1924_v58 = vadd.f32 %v1923_v55, %v1922_v52  ;;  %v1925_v59 = vpop.f32.mrb[6].mxu1  ;;  %v1814_v60 = vpop.f32.mrb[7].mxu0 }
 0x107   : > { %v1815_v61 = vadd.f32 %v1814_v60, %v1813_v56  ;;  %v1926_v62 = vpop.f32.mrb[7].mxu1 }
 0x108   : > { %1517 = vst [vmem:[%s2417_s28 + $0x8] sm:$0xff] %v1485_v57  ;;  %v1221_v63 = vadd.f32 %v1924_v58, %v1812_v54  ;;  %v1927_v0 = vadd.f32 %v1926_v62, %v1925_v59 }
 0x10a   : > { %v1447_v1 = vmul.f32 %v2405_v41, %v1221_v63  ;;  %v1224_v2 = vadd.f32 %v1927_v0, %v1815_v61 }
 0x10b   : > { %v1816_v3 = vpop.f32.mrb[8].mxu0 }
 0x10c   : > { %v1486_v4 = vadd.f32 %v2411_v46, %v1447_v1  ;;  %v1448_v5 = vmul.f32 %v2405_v41, %v1224_v2  ;;  %v1928_v6 = vpop.f32.mrb[8].mxu1  ;;  %v1817_v7 = vpop.f32.mrb[9].mxu0 }
 0x10d   : > { %v1818_v8 = vadd.f32 %v1817_v7, %v1816_v3  ;;  %v1929_v9 = vpop.f32.mrb[9].mxu1  ;;  %v1819_v10 = vpop.f32.mrb[10].mxu0 }
 0x10e   : > { %1518 = vst [vmem:[%s2417_s28 + $0x10] sm:$0xff] %v1486_v4  ;;  %v1487_v11 = vadd.f32 %v2411_v46, %v1448_v5  ;;  %v1930_v12 = vadd.f32 %v1929_v9, %v1928_v6  ;;  %v1931_v13 = vpop.f32.mrb[10].mxu1  ;;  %v1820_v14 = vpop.f32.mrb[11].mxu0 }
 0x10f   : > { %v1821_v15 = vadd.f32 %v1820_v14, %v1819_v10  ;;  %v1932_v16 = vpop.f32.mrb[11].mxu1 }
 0x110   : > { %1519 = vst [vmem:[%s2417_s28 + $0x18] sm:$0xff] %v1487_v11  ;;  %v1229_v17 = vadd.f32 %v1930_v12, %v1818_v8  ;;  %v1933_v18 = vadd.f32 %v1932_v16, %v1931_v13 }
 0x112   : > { %v1449_v19 = vmul.f32 %v2405_v41, %v1229_v17  ;;  %v1232_v20 = vadd.f32 %v1933_v18, %v1821_v15 }
 0x113   : > { %v1822_v21 = vpop.f32.mrb[12].mxu0 }
 0x114   : > { %v1488_v22 = vadd.f32 %v2411_v46, %v1449_v19  ;;  %v1450_v23 = vmul.f32 %v2405_v41, %v1232_v20  ;;  %v1934_v24 = vpop.f32.mrb[12].mxu1  ;;  %v1823_v25 = vpop.f32.mrb[13].mxu0 }
 0x115   : > { %v1824_v26 = vadd.f32 %v1823_v25, %v1822_v21  ;;  %v1935_v27 = vpop.f32.mrb[13].mxu1  ;;  %v1825_v28 = vpop.f32.mrb[14].mxu0 }
 0x116   : > { %1520 = vst [vmem:[%s2417_s28 + $0x20] sm:$0xff] %v1488_v22  ;;  %v1489_v29 = vadd.f32 %v2411_v46, %v1450_v23  ;;  %v1936_v30 = vadd.f32 %v1935_v27, %v1934_v24  ;;  %v1937_v31 = vpop.f32.mrb[14].mxu1  ;;  %v1826_v32 = vpop.f32.mrb[15].mxu0 }
 0x117   : > { %v1827_v33 = vadd.f32 %v1826_v32, %v1825_v28  ;;  %v1938_v34 = vpop.f32.mrb[15].mxu1 }
 0x118   : > { %1521 = vst [vmem:[%s2417_s28 + $0x28] sm:$0xff] %v1489_v29  ;;  %v1237_v35 = vadd.f32 %v1936_v30, %v1824_v26  ;;  %v1939_v36 = vadd.f32 %v1938_v34, %v1937_v31 }
 0x11a   : > { %v1451_v37 = vmul.f32 %v2405_v41, %v1237_v35  ;;  %v1240_v38 = vadd.f32 %v1939_v36, %v1827_v33 }
 0x11b   : > { %v1828_v39 = vpop.f32.mrb[16].mxu0 }
 0x11c   : > { %v1490_v40 = vadd.f32 %v2411_v46, %v1451_v37  ;;  %v1452_v42 = vmul.f32 %v2405_v41, %v1240_v38  ;;  %v1940_v43 = vpop.f32.mrb[16].mxu1  ;;  %v1829_v44 = vpop.f32.mrb[17].mxu0 }
 0x11d   : > { %v1830_v45 = vadd.f32 %v1829_v44, %v1828_v39  ;;  %v1941_v47 = vpop.f32.mrb[17].mxu1  ;;  %v1831_v48 = vpop.f32.mrb[18].mxu0 }
 0x11e   : > { %1522 = vst [vmem:[%s2417_s28 + $0x30] sm:$0xff] %v1490_v40  ;;  %v1491_v49 = vadd.f32 %v2411_v46, %v1452_v42  ;;  %v1942_v50 = vadd.f32 %v1941_v47, %v1940_v43  ;;  %v1943_v51 = vpop.f32.mrb[18].mxu1  ;;  %v1832_v52 = vpop.f32.mrb[19].mxu0 }
 0x11f   : > { %v1833_v53 = vadd.f32 %v1832_v52, %v1831_v48  ;;  %v1944_v54 = vpop.f32.mrb[19].mxu1 }
 0x120   : > { %1523 = vst [vmem:[%s2417_s28 + $0x38] sm:$0xff] %v1491_v49  ;;  %v1245_v55 = vadd.f32 %v1942_v50, %v1830_v45  ;;  %v1945_v56 = vadd.f32 %v1944_v54, %v1943_v51 }
 0x122   : > { %v1453_v57 = vmul.f32 %v2405_v41, %v1245_v55  ;;  %v1248_v58 = vadd.f32 %v1945_v56, %v1833_v53 }
 0x123   : > { %v1834_v59 = vpop.f32.mrb[20].mxu0 }
 0x124   : > { %v1492_v60 = vadd.f32 %v2411_v46, %v1453_v57  ;;  %v1454_v61 = vmul.f32 %v2405_v41, %v1248_v58  ;;  %v1946_v62 = vpop.f32.mrb[20].mxu1  ;;  %v1835_v63 = vpop.f32.mrb[21].mxu0 }
 0x125   : > { %v1836_v0 = vadd.f32 %v1835_v63, %v1834_v59  ;;  %v1947_v1 = vpop.f32.mrb[21].mxu1  ;;  %v1837_v2 = vpop.f32.mrb[22].mxu0 }
 0x126   : > { %1524 = vst [vmem:[%s2417_s28 + $0x40] sm:$0xff] %v1492_v60  ;;  %v1493_v3 = vadd.f32 %v2411_v46, %v1454_v61  ;;  %v1948_v4 = vadd.f32 %v1947_v1, %v1946_v62  ;;  %v1949_v5 = vpop.f32.mrb[22].mxu1  ;;  %v1838_v6 = vpop.f32.mrb[23].mxu0 }
 0x127   : > { %v1839_v7 = vadd.f32 %v1838_v6, %v1837_v2  ;;  %v1950_v8 = vpop.f32.mrb[23].mxu1 }
 0x128   : > { %1525 = vst [vmem:[%s2417_s28 + $0x48] sm:$0xff] %v1493_v3  ;;  %v1253_v9 = vadd.f32 %v1948_v4, %v1836_v0  ;;  %v1951_v10 = vadd.f32 %v1950_v8, %v1949_v5 }
 0x12a   : > { %v1455_v11 = vmul.f32 %v2405_v41, %v1253_v9  ;;  %v1256_v12 = vadd.f32 %v1951_v10, %v1839_v7 }
 0x12b   : > { %v1840_v13 = vpop.f32.mrb[24].mxu0 }
 0x12c   : > { %v1494_v14 = vadd.f32 %v2411_v46, %v1455_v11  ;;  %v1456_v15 = vmul.f32 %v2405_v41, %v1256_v12  ;;  %v1952_v16 = vpop.f32.mrb[24].mxu1  ;;  %v1841_v17 = vpop.f32.mrb[25].mxu0 }
 0x12d   : > { %v1842_v18 = vadd.f32 %v1841_v17, %v1840_v13  ;;  %v1953_v19 = vpop.f32.mrb[25].mxu1  ;;  %v1843_v20 = vpop.f32.mrb[26].mxu0 }
 0x12e   : > { %1526 = vst [vmem:[%s2417_s28 + $0x50] sm:$0xff] %v1494_v14  ;;  %v1495_v21 = vadd.f32 %v2411_v46, %v1456_v15  ;;  %v1954_v22 = vadd.f32 %v1953_v19, %v1952_v16  ;;  %v1955_v23 = vpop.f32.mrb[26].mxu1  ;;  %v1844_v24 = vpop.f32.mrb[27].mxu0 }
 0x12f   : > { %v1845_v25 = vadd.f32 %v1844_v24, %v1843_v20  ;;  %v1956_v26 = vpop.f32.mrb[27].mxu1 }
 0x130   : > { %1527 = vst [vmem:[%s2417_s28 + $0x58] sm:$0xff] %v1495_v21  ;;  %v1261_v27 = vadd.f32 %v1954_v22, %v1842_v18  ;;  %v1957_v28 = vadd.f32 %v1956_v26, %v1955_v23 }
 0x132   : > { %v1457_v29 = vmul.f32 %v2405_v41, %v1261_v27  ;;  %v1264_v30 = vadd.f32 %v1957_v28, %v1845_v25 }
 0x133   : > { %v1846_v31 = vpop.f32.mrb[28].mxu0 }
 0x134   : > { %v1496_v32 = vadd.f32 %v2411_v46, %v1457_v29  ;;  %v1458_v33 = vmul.f32 %v2405_v41, %v1264_v30  ;;  %v1958_v34 = vpop.f32.mrb[28].mxu1  ;;  %v1847_v35 = vpop.f32.mrb[29].mxu0 }
 0x135   : > { %v1848_v36 = vadd.f32 %v1847_v35, %v1846_v31  ;;  %v1959_v37 = vpop.f32.mrb[29].mxu1  ;;  %v1849_v38 = vpop.f32.mrb[30].mxu0 }
 0x136   : > { %1528 = vst [vmem:[%s2417_s28 + $0x60] sm:$0xff] %v1496_v32  ;;  %v1497_v39 = vadd.f32 %v2411_v46, %v1458_v33  ;;  %v1960_v40 = vadd.f32 %v1959_v37, %v1958_v34  ;;  %v1961_v42 = vpop.f32.mrb[30].mxu1  ;;  %v1850_v43 = vpop.f32.mrb[31].mxu0 }
 0x137   : > { %v1851_v44 = vadd.f32 %v1850_v43, %v1849_v38  ;;  %v1962_v45 = vpop.f32.mrb[31].mxu1 }
 0x138   : > { %1529 = vst [vmem:[%s2417_s28 + $0x68] sm:$0xff] %v1497_v39  ;;  %v1269_v47 = vadd.f32 %v1960_v40, %v1848_v36  ;;  %v1963_v48 = vadd.f32 %v1962_v45, %v1961_v42 }
 0x13a   : > { %v1459_v49 = vmul.f32 %v2405_v41, %v1269_v47  ;;  %v1272_v50 = vadd.f32 %v1963_v48, %v1851_v44 }
 0x13b   : > { %v1852_v51 = vpop.f32.mrb[32].mxu0 }
 0x13c   : > { %v1498_v52 = vadd.f32 %v2411_v46, %v1459_v49  ;;  %v1460_v53 = vmul.f32 %v2405_v41, %v1272_v50  ;;  %v1964_v54 = vpop.f32.mrb[32].mxu1  ;;  %v1853_v55 = vpop.f32.mrb[33].mxu0 }
 0x13d   : > { %v1854_v56 = vadd.f32 %v1853_v55, %v1852_v51  ;;  %v1965_v57 = vpop.f32.mrb[33].mxu1  ;;  %v1855_v58 = vpop.f32.mrb[34].mxu0 }
 0x13e   : > { %1530 = vst [vmem:[%s2417_s28 + $0x70] sm:$0xff] %v1498_v52  ;;  %v1499_v59 = vadd.f32 %v2411_v46, %v1460_v53  ;;  %v1966_v60 = vadd.f32 %v1965_v57, %v1964_v54  ;;  %v1967_v61 = vpop.f32.mrb[34].mxu1  ;;  %v1856_v62 = vpop.f32.mrb[35].mxu0 }
 0x13f   : > { %v1857_v63 = vadd.f32 %v1856_v62, %v1855_v58  ;;  %v1968_v0 = vpop.f32.mrb[35].mxu1 }
 0x140   : > { %1531 = vst [vmem:[%s2417_s28 + $0x78] sm:$0xff] %v1499_v59  ;;  %v1277_v1 = vadd.f32 %v1966_v60, %v1854_v56  ;;  %v1969_v2 = vadd.f32 %v1968_v0, %v1967_v61 }
 0x142   : > { %v1461_v3 = vmul.f32 %v2405_v41, %v1277_v1  ;;  %v1280_v4 = vadd.f32 %v1969_v2, %v1857_v63 }
 0x143   : > { %v1858_v5 = vpop.f32.mrb[36].mxu0 }
 0x144   : > { %v1500_v6 = vadd.f32 %v2411_v46, %v1461_v3  ;;  %v1462_v7 = vmul.f32 %v2405_v41, %v1280_v4  ;;  %v1970_v8 = vpop.f32.mrb[36].mxu1  ;;  %v1859_v9 = vpop.f32.mrb[37].mxu0 }
 0x145   : > { %v1860_v10 = vadd.f32 %v1859_v9, %v1858_v5  ;;  %v1971_v11 = vpop.f32.mrb[37].mxu1  ;;  %v1861_v12 = vpop.f32.mrb[38].mxu0 }
 0x146   : > { %1532 = vst [vmem:[%s2417_s28 + $0x80] sm:$0xff] %v1500_v6  ;;  %v1501_v13 = vadd.f32 %v2411_v46, %v1462_v7  ;;  %v1972_v14 = vadd.f32 %v1971_v11, %v1970_v8  ;;  %v1973_v15 = vpop.f32.mrb[38].mxu1  ;;  %v1862_v16 = vpop.f32.mrb[39].mxu0 }
 0x147   : > { %v1863_v17 = vadd.f32 %v1862_v16, %v1861_v12  ;;  %v1974_v18 = vpop.f32.mrb[39].mxu1 }
 0x148   : > { %1533 = vst [vmem:[%s2417_s28 + $0x88] sm:$0xff] %v1501_v13  ;;  %v1285_v19 = vadd.f32 %v1972_v14, %v1860_v10  ;;  %v1975_v20 = vadd.f32 %v1974_v18, %v1973_v15 }
 0x14a   : > { %v1463_v21 = vmul.f32 %v2405_v41, %v1285_v19  ;;  %v1288_v22 = vadd.f32 %v1975_v20, %v1863_v17 }
 0x14b   : > { %v1864_v23 = vpop.f32.mrb[40].mxu0 }
 0x14c   : > { %v1502_v24 = vadd.f32 %v2411_v46, %v1463_v21  ;;  %v1464_v25 = vmul.f32 %v2405_v41, %v1288_v22  ;;  %v1976_v26 = vpop.f32.mrb[40].mxu1  ;;  %v1865_v27 = vpop.f32.mrb[41].mxu0 }
 0x14d   : > { %v1866_v28 = vadd.f32 %v1865_v27, %v1864_v23  ;;  %v1977_v29 = vpop.f32.mrb[41].mxu1  ;;  %v1867_v30 = vpop.f32.mrb[42].mxu0 }
 0x14e   : > { %1534 = vst [vmem:[%s2417_s28 + $0x90] sm:$0xff] %v1502_v24  ;;  %v1503_v31 = vadd.f32 %v2411_v46, %v1464_v25  ;;  %v1978_v32 = vadd.f32 %v1977_v29, %v1976_v26  ;;  %v1979_v33 = vpop.f32.mrb[42].mxu1  ;;  %v1868_v34 = vpop.f32.mrb[43].mxu0 }
 0x14f   : > { %v1869_v35 = vadd.f32 %v1868_v34, %v1867_v30  ;;  %v1980_v36 = vpop.f32.mrb[43].mxu1 }
 0x150   : > { %1535 = vst [vmem:[%s2417_s28 + $0x98] sm:$0xff] %v1503_v31  ;;  %v1293_v37 = vadd.f32 %v1978_v32, %v1866_v28  ;;  %v1981_v38 = vadd.f32 %v1980_v36, %v1979_v33 }
 0x152   : > { %v1465_v39 = vmul.f32 %v2405_v41, %v1293_v37  ;;  %v1296_v40 = vadd.f32 %v1981_v38, %v1869_v35 }
 0x153   : > { %v1870_v42 = vpop.f32.mrb[44].mxu0 }
 0x154   : > { %v1504_v43 = vadd.f32 %v2411_v46, %v1465_v39  ;;  %v1466_v44 = vmul.f32 %v2405_v41, %v1296_v40  ;;  %v1982_v45 = vpop.f32.mrb[44].mxu1  ;;  %v1871_v47 = vpop.f32.mrb[45].mxu0 }
 0x155   : > { %v1872_v48 = vadd.f32 %v1871_v47, %v1870_v42  ;;  %v1983_v49 = vpop.f32.mrb[45].mxu1  ;;  %v1873_v50 = vpop.f32.mrb[46].mxu0 }
 0x156   : > { %1536 = vst [vmem:[%s2417_s28 + $0xa0] sm:$0xff] %v1504_v43  ;;  %v1505_v51 = vadd.f32 %v2411_v46, %v1466_v44  ;;  %v1984_v52 = vadd.f32 %v1983_v49, %v1982_v45  ;;  %v1985_v53 = vpop.f32.mrb[46].mxu1  ;;  %v1874_v54 = vpop.f32.mrb[47].mxu0 }
 0x157   : > { %v1875_v55 = vadd.f32 %v1874_v54, %v1873_v50  ;;  %v1986_v56 = vpop.f32.mrb[47].mxu1 }
 0x158   : > { %1537 = vst [vmem:[%s2417_s28 + $0xa8] sm:$0xff] %v1505_v51  ;;  %v1301_v57 = vadd.f32 %v1984_v52, %v1872_v48  ;;  %v1987_v58 = vadd.f32 %v1986_v56, %v1985_v53 }
 0x15a   : > { %v1467_v59 = vmul.f32 %v2405_v41, %v1301_v57  ;;  %v1304_v60 = vadd.f32 %v1987_v58, %v1875_v55 }
 0x15b   : > { %v1876_v61 = vpop.f32.mrb[48].mxu0 }
 0x15c   : > { %v1506_v62 = vadd.f32 %v2411_v46, %v1467_v59  ;;  %v1468_v63 = vmul.f32 %v2405_v41, %v1304_v60  ;;  %v1988_v0 = vpop.f32.mrb[48].mxu1  ;;  %v1877_v1 = vpop.f32.mrb[49].mxu0 }
 0x15d   : > { %v1878_v2 = vadd.f32 %v1877_v1, %v1876_v61  ;;  %v1989_v3 = vpop.f32.mrb[49].mxu1  ;;  %v1879_v4 = vpop.f32.mrb[50].mxu0 }
 0x15e   : > { %1538 = vst [vmem:[%s2417_s28 + $0xb0] sm:$0xff] %v1506_v62  ;;  %v1507_v5 = vadd.f32 %v2411_v46, %v1468_v63  ;;  %v1990_v6 = vadd.f32 %v1989_v3, %v1988_v0  ;;  %v1991_v7 = vpop.f32.mrb[50].mxu1  ;;  %v1880_v8 = vpop.f32.mrb[51].mxu0 }
 0x15f   : > { %v1881_v9 = vadd.f32 %v1880_v8, %v1879_v4  ;;  %v1992_v10 = vpop.f32.mrb[51].mxu1 }
 0x160   : > { %1539 = vst [vmem:[%s2417_s28 + $0xb8] sm:$0xff] %v1507_v5  ;;  %v1309_v11 = vadd.f32 %v1990_v6, %v1878_v2  ;;  %v1993_v12 = vadd.f32 %v1992_v10, %v1991_v7 }
 0x162   : > { %v1469_v13 = vmul.f32 %v2405_v41, %v1309_v11  ;;  %v1312_v14 = vadd.f32 %v1993_v12, %v1881_v9 }
 0x163   : > { %v1882_v15 = vpop.f32.mrb[52].mxu0 }
 0x164   : > { %v1508_v16 = vadd.f32 %v2411_v46, %v1469_v13  ;;  %v1470_v17 = vmul.f32 %v2405_v41, %v1312_v14  ;;  %v1994_v18 = vpop.f32.mrb[52].mxu1  ;;  %v1883_v19 = vpop.f32.mrb[53].mxu0 }
 0x165   : > { %v1884_v20 = vadd.f32 %v1883_v19, %v1882_v15  ;;  %v1995_v21 = vpop.f32.mrb[53].mxu1  ;;  %v1885_v22 = vpop.f32.mrb[54].mxu0 }
 0x166   : > { %1540 = vst [vmem:[%s2417_s28 + $0xc0] sm:$0xff] %v1508_v16  ;;  %v1509_v23 = vadd.f32 %v2411_v46, %v1470_v17  ;;  %v1996_v24 = vadd.f32 %v1995_v21, %v1994_v18  ;;  %v1997_v25 = vpop.f32.mrb[54].mxu1  ;;  %v1886_v26 = vpop.f32.mrb[55].mxu0 }
 0x167   : > { %v1887_v27 = vadd.f32 %v1886_v26, %v1885_v22  ;;  %v1998_v28 = vpop.f32.mrb[55].mxu1 }
 0x168   : > { %1541 = vst [vmem:[%s2417_s28 + $0xc8] sm:$0xff] %v1509_v23  ;;  %v1317_v29 = vadd.f32 %v1996_v24, %v1884_v20  ;;  %v1999_v30 = vadd.f32 %v1998_v28, %v1997_v25 }
 0x16a   : > { %v1471_v31 = vmul.f32 %v2405_v41, %v1317_v29  ;;  %v1320_v32 = vadd.f32 %v1999_v30, %v1887_v27 }
 0x16b   : > { %v1888_v33 = vpop.f32.mrb[56].mxu0 }
 0x16c   : > { %v1510_v34 = vadd.f32 %v2411_v46, %v1471_v31  ;;  %v1472_v35 = vmul.f32 %v2405_v41, %v1320_v32  ;;  %v2000_v36 = vpop.f32.mrb[56].mxu1  ;;  %v1889_v37 = vpop.f32.mrb[57].mxu0 }
 0x16d   : > { %v1890_v38 = vadd.f32 %v1889_v37, %v1888_v33  ;;  %v2001_v39 = vpop.f32.mrb[57].mxu1  ;;  %v1891_v40 = vpop.f32.mrb[58].mxu0 }
 0x16e   : > { %1542 = vst [vmem:[%s2417_s28 + $0xd0] sm:$0xff] %v1510_v34  ;;  %v1511_v42 = vadd.f32 %v2411_v46, %v1472_v35  ;;  %v2002_v43 = vadd.f32 %v2001_v39, %v2000_v36  ;;  %v2003_v44 = vpop.f32.mrb[58].mxu1  ;;  %v1892_v45 = vpop.f32.mrb[59].mxu0 }
 0x16f   : > { %v1893_v47 = vadd.f32 %v1892_v45, %v1891_v40  ;;  %v2004_v48 = vpop.f32.mrb[59].mxu1 }
 0x170   : > { %1543 = vst [vmem:[%s2417_s28 + $0xd8] sm:$0xff] %v1511_v42  ;;  %v1325_v49 = vadd.f32 %v2002_v43, %v1890_v38  ;;  %v2005_v50 = vadd.f32 %v2004_v48, %v2003_v44 }
 0x172   : > { %v1473_v51 = vmul.f32 %v2405_v41, %v1325_v49  ;;  %v1328_v52 = vadd.f32 %v2005_v50, %v1893_v47 }
 0x173   : > { %v1894_v53 = vpop.f32.mrb[60].mxu0 }
 0x174   : > { %v1512_v54 = vadd.f32 %v2411_v46, %v1473_v51  ;;  %v1474_v55 = vmul.f32 %v2405_v41, %v1328_v52  ;;  %v2006_v56 = vpop.f32.mrb[60].mxu1  ;;  %v1895_v57 = vpop.f32.mrb[61].mxu0 }
 0x175   : > { %v1896_v58 = vadd.f32 %v1895_v57, %v1894_v53  ;;  %v2007_v59 = vpop.f32.mrb[61].mxu1  ;;  %v1897_v60 = vpop.f32.mrb[62].mxu0 }
 0x176   : > { %1544 = vst [vmem:[%s2417_s28 + $0xe0] sm:$0xff] %v1512_v54  ;;  %v1513_v61 = vadd.f32 %v2411_v46, %v1474_v55  ;;  %v2008_v62 = vadd.f32 %v2007_v59, %v2006_v56  ;;  %v2009_v63 = vpop.f32.mrb[62].mxu1  ;;  %v1898_v0 = vpop.f32.mrb[63].mxu0 }
 0x177   : > { %v1899_v1 = vadd.f32 %v1898_v0, %v1897_v60  ;;  %v2010_v2 = vpop.f32.mrb[63].mxu1 }
 0x178   : > { %1545 = vst [vmem:[%s2417_s28 + $0xe8] sm:$0xff] %v1513_v61  ;;  %v1333_v3 = vadd.f32 %v2008_v62, %v1896_v58  ;;  %v2011_v4 = vadd.f32 %v2010_v2, %v2009_v63 }
 0x17a   : > { %v1475_v5 = vmul.f32 %v2405_v41, %v1333_v3  ;;  %v1336_v6 = vadd.f32 %v2011_v4, %v1899_v1 }
 0x17c   : > { %v1514_v7 = vadd.f32 %v2411_v46, %v1475_v5  ;;  %v1476_v8 = vmul.f32 %v2405_v41, %v1336_v6 }
 0x17e   : > { %1546 = vst [vmem:[%s2417_s28 + $0xf0] sm:$0xff] %v1514_v7  ;;  %v1515_v9 = vadd.f32 %v2411_v46, %v1476_v8 }
 0x180   : > { %1547 = vst [vmem:[%s2417_s28 + $0xf8] sm:$0xff] %v1515_v9 }
 0x181 PF: > { %s14_s17 = sadd.s32 1, %s2186_s17   ;;  %s2528_s15 = smov %s2182_s16 }
 0x182   : > { %p11_p5 = scmp.ge.s32.totalorder %s14_s17, 4   ;;  %s2529_s16 = smov %s2531_s18 }
 0x184   :  { %13 = sbr.rel (!%p11_p5) target bundleno = 2 (0x2), region = 83 }

</bundles_post_ra>
